<compile_context>
chip_gen: v6e
topology: v6e:2x2x1
jax: 0.10.0
libtpu: 0.0.40
codegen_flags: <defaults>
</compile_context>

<pallas_src>
import functools

import jax
import jax.numpy as jnp
from jax import lax
from jax.experimental import pallas as pl
from jax.experimental.pallas import tpu as pltpu

_CONV_STACK = ("conv1", "conv2", "conv3")      # conv4 is fused into the tail kernel
_VMEM_LIMIT = 32 * 1024 * 1024                 # fits v7x's 64 MiB with headroom


def _round_up(x, m):
    return (x + m - 1) // m * m


# ----------------------------------------------------------------------------
# Pallas kernel 1: single-shot  Y = relu(X @ W + b)
#   One K step per layer -> no accumulator scratch, no reduction grid axis.
# ----------------------------------------------------------------------------
def _conv_matmul_relu_kernel(x_ref, w_ref, b_ref, o_ref):
    y = jnp.dot(x_ref[...], w_ref[...], preferred_element_type=jnp.float32)
    y = jnp.maximum(y + b_ref[...], 0.0)
    o_ref[...] = y.astype(o_ref.dtype)


def conv_matmul_relu(x, w, b):
    """x: (M, K) bf16, w: (K, N) bf16, b: (1, N) f32 -> (M, N) bf16."""
    M, K = x.shape
    K2, N = w.shape
    assert K == K2 and b.shape == (1, N)
    assert K % 128 == 0, "patch feature dim must be lane-dense"
    # >= 2 M tiles so both v7x TensorCores get work; large tiles amortize the
    # ~0.35 us per-grid-step overhead; 16-aligned for bf16 sublane packing.
    tm = min(1024, max(16, _round_up(pl.cdiv(M, 2), 16)))
    grid = (pl.cdiv(M, tm),)          # ragged last tile handled by store masking
    return pl.pallas_call(
        _conv_matmul_relu_kernel,
        out_shape=jax.ShapeDtypeStruct((M, N), jnp.bfloat16),
        grid_spec=pltpu.PrefetchScalarGridSpec(
            num_scalar_prefetch=0,
            grid=grid,
            in_specs=[
                pl.BlockSpec((tm, K), lambda i: (i, 0)),
                pl.BlockSpec((K, N), lambda i: (0, 0)),   # weight stays VMEM-resident
                pl.BlockSpec((1, N), lambda i: (0, 0)),
            ],
            out_specs=pl.BlockSpec((tm, N), lambda i: (i, 0)),
        ),
        compiler_params=pltpu.CompilerParams(
            dimension_semantics=("parallel",),
            vmem_limit_bytes=_VMEM_LIMIT,
        ),
    )(x, w, b)


# ----------------------------------------------------------------------------
# Pallas kernel 2: fused tail
#   conv4 (as 4 per-output-position matmuls) + ReLU + Flatten + fc1 +
#   LeakyReLU + fc2, all weights VMEM-resident, grid over batch blocks.
#   The NHWC flatten is folded away: output position s of conv4 multiplies the
#   fc1 weight rows [s*C4, (s+1)*C4).
# ----------------------------------------------------------------------------
def _fused_tail_kernel(c4_ref, w4_ref, b4_ref, w1_ref, b1_ref, w2_ref, b2_ref,
                       o_ref):
    S = c4_ref.shape[0]               # conv4 output positions (2*2 = 4), static
    C4 = w4_ref.shape[1]              # conv4 out channels (64)
    h = b1_ref[...]                   # (1, 256) f32; broadcasts over batch rows
    for s in range(S):                # static unroll
        y = jnp.dot(c4_ref[s], w4_ref[...], preferred_element_type=jnp.float32)
        y = jnp.maximum(y + b4_ref[...], 0.0).astype(jnp.bfloat16)   # ReLU
        h = h + jnp.dot(y, w1_ref[s * C4:(s + 1) * C4, :],
                        preferred_element_type=jnp.float32)
    h = jnp.where(h >= 0.0, h, 0.01 * h)                # LeakyReLU(0.01)
    out = jnp.dot(h.astype(jnp.bfloat16), w2_ref[...],
                  preferred_element_type=jnp.float32)
    o_ref[...] = (out + b2_ref[...]).astype(o_ref.dtype)


def fused_tail(col4, w4, b4, w1, b1, w2, b2):
    """col4: (S, B, K4) bf16; w4: (K4, C4); w1: (S*C4, H1); w2: (H1, NO)."""
    S, B, K4 = col4.shape
    C4 = w4.shape[1]
    H1 = w1.shape[1]
    NO = w2.shape[1]
    assert w4.shape[0] == K4 and w1.shape[0] == S * C4 and w2.shape[0] == H1
    assert b4.shape == (1, C4) and b1.shape == (1, H1) and b2.shape == (1, NO)
    bb = B if B <= 8 else min(128, max(16, _round_up(pl.cdiv(B, 2), 16)))
    grid = (pl.cdiv(B, bb),)
    return pl.pallas_call(
        _fused_tail_kernel,
        out_shape=jax.ShapeDtypeStruct((B, NO), jnp.float32),
        grid_spec=pltpu.PrefetchScalarGridSpec(
            num_scalar_prefetch=0,
            grid=grid,
            in_specs=[
                pl.BlockSpec((S, bb, K4), lambda i: (0, i, 0)),
                pl.BlockSpec((K4, C4), lambda i: (0, 0)),
                pl.BlockSpec((1, C4), lambda i: (0, 0)),
                pl.BlockSpec((S * C4, H1), lambda i: (0, 0)),
                pl.BlockSpec((1, H1), lambda i: (0, 0)),
                pl.BlockSpec((H1, NO), lambda i: (0, 0)),
                pl.BlockSpec((1, NO), lambda i: (0, 0)),
            ],
            out_specs=pl.BlockSpec((bb, NO), lambda i: (i, 0)),
        ),
        compiler_params=pltpu.CompilerParams(
            dimension_semantics=("parallel",),
            vmem_limit_bytes=_VMEM_LIMIT,
        ),
    )(col4, w4, b4, w1, b1, w2, b2)


# ----------------------------------------------------------------------------
# im2col (NHWC, channels-last): strided slices + stack, no transposes.
# ----------------------------------------------------------------------------
def im2col_nhwc(x, k=4, s=2):
    """x: (B, H, W, C) -> (B*Ho*Wo, k*k*C), feature order (p, q, c)."""
    B, H, W, C = x.shape
    Ho = (H - k) // s + 1
    Wo = (W - k) // s + 1
    taps = [x[:, p:p + s * Ho:s, q:q + s * Wo:s, :]
            for p in range(k) for q in range(k)]
    col = jnp.stack(taps, axis=3).reshape(B * Ho * Wo, k * k * C)
    return col, Ho, Wo


# ----------------------------------------------------------------------------
# Parameter init (deterministic, PyTorch-default-like uniform fan-in init)
# ----------------------------------------------------------------------------
def init_conv(key, cin, cout, k=4):
    k1, k2 = jax.random.split(key)
    bound = 1.0 / (cin * k * k) ** 0.5
    w = jax.random.uniform(k1, (cout, cin, k, k), jnp.float32, -bound, bound)
    b = jax.random.uniform(k2, (cout,), jnp.float32, -bound, bound)
    return w, b


def init_linear(key, fin, fout):
    k1, k2 = jax.random.split(key)
    bound = 1.0 / fin ** 0.5
    w = jax.random.uniform(k1, (fout, fin), jnp.float32, -bound, bound)
    b = jax.random.uniform(k2, (fout,), jnp.float32, -bound, bound)
    return w, b


def init_params(key, input_size=3, output_size=10):
    keys = jax.random.split(key, 6)
    return {
        "conv1": init_conv(keys[0], input_size, 32),
        "conv2": init_conv(keys[1], 32, 32),
        "conv3": init_conv(keys[2], 32, 64),
        "conv4": init_conv(keys[3], 64, 64),
        "fc1": init_linear(keys[4], 64 * 4, 256),
        "fc2": init_linear(keys[5], 256, output_size),
    }


# ----------------------------------------------------------------------------
# One-time weight packing into kernel-ready bf16 matrices.
# ----------------------------------------------------------------------------
def pack_params(params):
    packed = {}
    for name in ("conv1", "conv2", "conv3", "conv4"):
        w, b = params[name]                      # (Cout, Cin, 4, 4), (Cout,)
        if name == "conv1":
            cin = w.shape[1]
            pad = _round_up(cin, 8) - cin        # K: 16*3=48 -> 16*8=128, lane-dense
            if pad:
                w = jnp.pad(w, ((0, 0), (0, pad), (0, 0), (0, 0)))
        cout = w.shape[0]
        # rows ordered (p, q, cin) to match the NHWC im2col feature order
        w_mat = jnp.transpose(w, (2, 3, 1, 0)).reshape(-1, cout)
        packed[name] = (w_mat.astype(jnp.bfloat16),
                        b.reshape(1, -1).astype(jnp.float32))

    # fc1: permute input features from PyTorch's channel-major (c, h, w) flatten
    # order to the kernel's (h, w, c) order; store as (in, out).
    w1, b1 = params["fc1"]                       # (256, 64*2*2 chw-order)
    cout4 = params["conv4"][0].shape[0]
    hw = int(round((w1.shape[1] // cout4) ** 0.5))
    w1 = w1.reshape(w1.shape[0], cout4, hw, hw).transpose(0, 2, 3, 1)
    w1 = w1.reshape(w1.shape[0], -1).T           # (S*C4, 256)
    packed["fc1"] = (w1.astype(jnp.bfloat16),
                     b1.reshape(1, -1).astype(jnp.float32))

    w2, b2 = params["fc2"]                       # (out, 256)
    packed["fc2"] = (w2.T.astype(jnp.bfloat16),
                     b2.reshape(1, -1).astype(jnp.float32))
    return packed


# ----------------------------------------------------------------------------
# Forward pass (ConvEncoder.forward), jit-compiled.
# ----------------------------------------------------------------------------
@jax.jit
def conv_encoder_forward(packed, x_nchw):
    B, C, _, _ = x_nchw.shape
    h = jnp.transpose(x_nchw, (0, 2, 3, 1))           # NHWC
    c_pad = _round_up(C, 8)                           # conv1 K = 16*8 = 128
    if c_pad != C:
        h = jnp.pad(h, ((0, 0), (0, 0), (0, 0), (0, c_pad - C)))
    h = h.astype(jnp.bfloat16)

    for name in _CONV_STACK:                          # conv1..conv3 (+ fused ReLU)
        w_mat, b_row = packed[name]
        col, Ho, Wo = im2col_nhwc(h)                  # XLA strided-slice im2col
        y = conv_matmul_relu(col, w_mat, b_row)       # (B*Ho*Wo, cout) bf16
        h = y.reshape(B, Ho, Wo, y.shape[-1])         # trailing dim kept -> cheap

    # Fused tail: conv4 + ReLU + Flatten + fc1 + LeakyReLU + fc2 (one call).
    col4, Ho4, Wo4 = im2col_nhwc(h)                   # (B*S, 16*C3)
    S = Ho4 * Wo4
    col4 = col4.reshape(B, S, col4.shape[-1]).transpose(1, 0, 2)   # (S, B, K4)
    w4, b4 = packed["conv4"]
    w1, b1 = packed["fc1"]
    w2, b2 = packed["fc2"]
    return fused_tail(col4, w4, b4, w1, b1, w2, b2)   # (B, output_size) f32


# ----------------------------------------------------------------------------
# Pure-XLA f32 reference (mirrors the PyTorch ConvEncoder exactly).
# ----------------------------------------------------------------------------
def reference_forward(params, x):
    h = x.astype(jnp.float32)
    for name in ("conv1", "conv2", "conv3", "conv4"):
        w, b = params[name]
        h = lax.conv_general_dilated(
            h, w, window_strides=(2, 2), padding="VALID",
            dimension_numbers=("NCHW", "OIHW", "NCHW"))
        h = jnp.maximum(h + b[None, :, None, None], 0.0)
    h = h.reshape(h.shape[0], -1)                     # channel-major flatten
    w1, b1 = params["fc1"]
    h = h @ w1.T + b1
    h = jnp.where(h >= 0.0, h, 0.01 * h)
    w2, b2 = params["fc2"]
    return h @ w2.T + b2


if __name__ == "__main__":
    key = jax.random.PRNGKey(0)
    key_p, key_x = jax.random.split(key)
    params = init_params(key_p, input_size=3, output_size=10)
    packed = pack_params(params)
    # batch=2, channels=3, spatial=64x64 (required by Flatten -> Linear(64*4, 256))
    x = jax.random.normal(key_x, (2, 3, 64, 64), dtype=jnp.float32)

    y = jax.block_until_ready(conv_encoder_forward(packed, x))
    assert y.shape == (2, 10), y.shape
    assert y.dtype == jnp.float32, y.dtype

    # Loose-tolerance check vs. the f32 reference (kernel uses a bf16 MXU path).
    ref = reference_forward(params, x)
    max_err = float(jnp.max(jnp.abs(y - ref)))
    assert max_err < 5e-2, f"max abs err vs f32 reference: {max_err}"

    print("KERNEL_OK")
</pallas_src>

<mosaic_0001>
module attributes {stable_mosaic.version = 11 : i64} {
  func.func @_conv_matmul_relu_kernel(%arg0: i32, %arg1: memref<976x128xbf16, #tpu.memory_space<vmem>>, %arg2: memref<128x32xbf16, #tpu.memory_space<vmem>>, %arg3: memref<1x32xf32, #tpu.memory_space<vmem>>, %arg4: memref<976x32xbf16, #tpu.memory_space<vmem>>) attributes {dimension_semantics = [#tpu.dimension_semantics<parallel>], iteration_bounds = array<i64: 2>, scalar_prefetch = 0 : i64, scratch_operands = 0 : i64, tpu.core_type = #tpu.core_type<tc>, window_params = [{transform_indices = @transform_0, window_bounds = array<i64: 976, 128>}, {pipeline_mode = #tpu.pipeline_mode<synchronous>, transform_indices = @transform_1, window_bounds = array<i64: 128, 32>}, {pipeline_mode = #tpu.pipeline_mode<synchronous>, transform_indices = @transform_2, window_bounds = array<i64: 1, 32>}, {transform_indices = @transform_3, window_bounds = array<i64: 976, 32>}]} {
    %c0 = arith.constant 0 : index
    %c0_0 = arith.constant 0 : index
    %0 = vector.load %arg1[%c0, %c0_0] : memref<976x128xbf16, #tpu.memory_space<vmem>>, vector<976x128xbf16>
    %c0_1 = arith.constant 0 : index
    %c0_2 = arith.constant 0 : index
    %1 = vector.load %arg2[%c0_1, %c0_2] : memref<128x32xbf16, #tpu.memory_space<vmem>>, vector<128x32xbf16>
    %cst = arith.constant dense<0.000000e+00> : vector<976x32xf32>
    %2 = tpu.matmul %0, %1, %cst {dimension_numbers = #tpu.dot_dimension_numbers<[1], [0], [0], [1], [0, 0, 1, 1], [], []>} : vector<976x128xbf16>, vector<128x32xbf16>, vector<976x32xf32> -> vector<976x32xf32>
    %c0_3 = arith.constant 0 : index
    %c0_4 = arith.constant 0 : index
    %3 = vector.load %arg3[%c0_3, %c0_4] : memref<1x32xf32, #tpu.memory_space<vmem>>, vector<1x32xf32>
    %4 = vector.broadcast %3 : vector<1x32xf32> to vector<976x32xf32>
    %5 = arith.addf %2, %4 : vector<976x32xf32>
    %cst_5 = arith.constant 0.000000e+00 : f32
    %6 = vector.broadcast %cst_5 : f32 to vector<976x32xf32>
    %7 = arith.maximumf %5, %6 : vector<976x32xf32>
    %8 = arith.truncf %7 : vector<976x32xf32> to vector<976x32xbf16>
    %c0_6 = arith.constant 0 : index
    %c0_7 = arith.constant 0 : index
    %9 = vector.load %arg4[%c0_6, %c0_7] : memref<976x32xbf16, #tpu.memory_space<vmem>>, vector<976x32xbf16>
    tpu.vector_store %arg4[%c0_6, %c0_7], %8 {strides = array<i32>} : memref<976x32xbf16, #tpu.memory_space<vmem>>, vector<976x32xbf16>,
    return
  }
  func.func @transform_0(%arg0: i32) -> (i32, i32) {
    %c0_i32 = arith.constant 0 : i32
    %c0_i32_0 = arith.constant 0 : i32
    return %arg0, %c0_i32 : i32, i32
  }
  func.func @transform_1(%arg0: i32) -> (i32, i32) {
    %c0_i32 = arith.constant 0 : i32
    %c0_i32_0 = arith.constant 0 : i32
    %c0_i32_1 = arith.constant 0 : i32
    return %c0_i32, %c0_i32_0 : i32, i32
  }
  func.func @transform_2(%arg0: i32) -> (i32, i32) {
    %c0_i32 = arith.constant 0 : i32
    %c0_i32_0 = arith.constant 0 : i32
    %c0_i32_1 = arith.constant 0 : i32
    return %c0_i32, %c0_i32_0 : i32, i32
  }
  func.func @transform_3(%arg0: i32) -> (i32, i32) {
    %c0_i32 = arith.constant 0 : i32
    %c0_i32_0 = arith.constant 0 : i32
    return %arg0, %c0_i32 : i32, i32
  }
}

module attributes {stable_mosaic.version = 11 : i64} {
  func.func @_conv_matmul_relu_kernel(%arg0: i32, %arg1: memref<208x512xbf16, #tpu.memory_space<vmem>>, %arg2: memref<512x32xbf16, #tpu.memory_space<vmem>>, %arg3: memref<1x32xf32, #tpu.memory_space<vmem>>, %arg4: memref<208x32xbf16, #tpu.memory_space<vmem>>) attributes {dimension_semantics = [#tpu.dimension_semantics<parallel>], iteration_bounds = array<i64: 2>, scalar_prefetch = 0 : i64, scratch_operands = 0 : i64, tpu.core_type = #tpu.core_type<tc>, window_params = [{transform_indices = @transform_0, window_bounds = array<i64: 208, 512>}, {pipeline_mode = #tpu.pipeline_mode<synchronous>, transform_indices = @transform_1, window_bounds = array<i64: 512, 32>}, {pipeline_mode = #tpu.pipeline_mode<synchronous>, transform_indices = @transform_2, window_bounds = array<i64: 1, 32>}, {transform_indices = @transform_3, window_bounds = array<i64: 208, 32>}]} {
    %c0 = arith.constant 0 : index
    %c0_0 = arith.constant 0 : index
    %0 = vector.load %arg1[%c0, %c0_0] : memref<208x512xbf16, #tpu.memory_space<vmem>>, vector<208x512xbf16>
    %c0_1 = arith.constant 0 : index
    %c0_2 = arith.constant 0 : index
    %1 = vector.load %arg2[%c0_1, %c0_2] : memref<512x32xbf16, #tpu.memory_space<vmem>>, vector<512x32xbf16>
    %cst = arith.constant dense<0.000000e+00> : vector<208x32xf32>
    %2 = tpu.matmul %0, %1, %cst {dimension_numbers = #tpu.dot_dimension_numbers<[1], [0], [0], [1], [0, 0, 1, 1], [], []>} : vector<208x512xbf16>, vector<512x32xbf16>, vector<208x32xf32> -> vector<208x32xf32>
    %c0_3 = arith.constant 0 : index
    %c0_4 = arith.constant 0 : index
    %3 = vector.load %arg3[%c0_3, %c0_4] : memref<1x32xf32, #tpu.memory_space<vmem>>, vector<1x32xf32>
    %4 = vector.broadcast %3 : vector<1x32xf32> to vector<208x32xf32>
    %5 = arith.addf %2, %4 : vector<208x32xf32>
    %cst_5 = arith.constant 0.000000e+00 : f32
    %6 = vector.broadcast %cst_5 : f32 to vector<208x32xf32>
    %7 = arith.maximumf %5, %6 : vector<208x32xf32>
    %8 = arith.truncf %7 : vector<208x32xf32> to vector<208x32xbf16>
    %c0_6 = arith.constant 0 : index
    %c0_7 = arith.constant 0 : index
    %9 = vector.load %arg4[%c0_6, %c0_7] : memref<208x32xbf16, #tpu.memory_space<vmem>>, vector<208x32xbf16>
    tpu.vector_store %arg4[%c0_6, %c0_7], %8 {strides = array<i32>} : memref<208x32xbf16, #tpu.memory_space<vmem>>, vector<208x32xbf16>,
    return
  }
  func.func @transform_0(%arg0: i32) -> (i32, i32) {
    %c0_i32 = arith.constant 0 : i32
    %c0_i32_0 = arith.constant 0 : i32
    return %arg0, %c0_i32 : i32, i32
  }
  func.func @transform_1(%arg0: i32) -> (i32, i32) {
    %c0_i32 = arith.constant 0 : i32
    %c0_i32_0 = arith.constant 0 : i32
    %c0_i32_1 = arith.constant 0 : i32
    return %c0_i32, %c0_i32_0 : i32, i32
  }
  func.func @transform_2(%arg0: i32) -> (i32, i32) {
    %c0_i32 = arith.constant 0 : i32
    %c0_i32_0 = arith.constant 0 : i32
    %c0_i32_1 = arith.constant 0 : i32
    return %c0_i32, %c0_i32_0 : i32, i32
  }
  func.func @transform_3(%arg0: i32) -> (i32, i32) {
    %c0_i32 = arith.constant 0 : i32
    %c0_i32_0 = arith.constant 0 : i32
    return %arg0, %c0_i32 : i32, i32
  }
}

module attributes {stable_mosaic.version = 11 : i64} {
  func.func @_conv_matmul_relu_kernel(%arg0: i32, %arg1: memref<48x512xbf16, #tpu.memory_space<vmem>>, %arg2: memref<512x64xbf16, #tpu.memory_space<vmem>>, %arg3: memref<1x64xf32, #tpu.memory_space<vmem>>, %arg4: memref<48x64xbf16, #tpu.memory_space<vmem>>) attributes {dimension_semantics = [#tpu.dimension_semantics<parallel>], iteration_bounds = array<i64: 2>, scalar_prefetch = 0 : i64, scratch_operands = 0 : i64, tpu.core_type = #tpu.core_type<tc>, window_params = [{transform_indices = @transform_0, window_bounds = array<i64: 48, 512>}, {pipeline_mode = #tpu.pipeline_mode<synchronous>, transform_indices = @transform_1, window_bounds = array<i64: 512, 64>}, {pipeline_mode = #tpu.pipeline_mode<synchronous>, transform_indices = @transform_2, window_bounds = array<i64: 1, 64>}, {transform_indices = @transform_3, window_bounds = array<i64: 48, 64>}]} {
    %c0 = arith.constant 0 : index
    %c0_0 = arith.constant 0 : index
    %0 = vector.load %arg1[%c0, %c0_0] : memref<48x512xbf16, #tpu.memory_space<vmem>>, vector<48x512xbf16>
    %c0_1 = arith.constant 0 : index
    %c0_2 = arith.constant 0 : index
    %1 = vector.load %arg2[%c0_1, %c0_2] : memref<512x64xbf16, #tpu.memory_space<vmem>>, vector<512x64xbf16>
    %cst = arith.constant dense<0.000000e+00> : vector<48x64xf32>
    %2 = tpu.matmul %0, %1, %cst {dimension_numbers = #tpu.dot_dimension_numbers<[1], [0], [0], [1], [0, 0, 1, 1], [], []>} : vector<48x512xbf16>, vector<512x64xbf16>, vector<48x64xf32> -> vector<48x64xf32>
    %c0_3 = arith.constant 0 : index
    %c0_4 = arith.constant 0 : index
    %3 = vector.load %arg3[%c0_3, %c0_4] : memref<1x64xf32, #tpu.memory_space<vmem>>, vector<1x64xf32>
    %4 = vector.broadcast %3 : vector<1x64xf32> to vector<48x64xf32>
    %5 = arith.addf %2, %4 : vector<48x64xf32>
    %cst_5 = arith.constant 0.000000e+00 : f32
    %6 = vector.broadcast %cst_5 : f32 to vector<48x64xf32>
    %7 = arith.maximumf %5, %6 : vector<48x64xf32>
    %8 = arith.truncf %7 : vector<48x64xf32> to vector<48x64xbf16>
    %c0_6 = arith.constant 0 : index
    %c0_7 = arith.constant 0 : index
    %9 = vector.load %arg4[%c0_6, %c0_7] : memref<48x64xbf16, #tpu.memory_space<vmem>>, vector<48x64xbf16>
    tpu.vector_store %arg4[%c0_6, %c0_7], %8 {strides = array<i32>} : memref<48x64xbf16, #tpu.memory_space<vmem>>, vector<48x64xbf16>,
    return
  }
  func.func @transform_0(%arg0: i32) -> (i32, i32) {
    %c0_i32 = arith.constant 0 : i32
    %c0_i32_0 = arith.constant 0 : i32
    return %arg0, %c0_i32 : i32, i32
  }
  func.func @transform_1(%arg0: i32) -> (i32, i32) {
    %c0_i32 = arith.constant 0 : i32
    %c0_i32_0 = arith.constant 0 : i32
    %c0_i32_1 = arith.constant 0 : i32
    return %c0_i32, %c0_i32_0 : i32, i32
  }
  func.func @transform_2(%arg0: i32) -> (i32, i32) {
    %c0_i32 = arith.constant 0 : i32
    %c0_i32_0 = arith.constant 0 : i32
    %c0_i32_1 = arith.constant 0 : i32
    return %c0_i32, %c0_i32_0 : i32, i32
  }
  func.func @transform_3(%arg0: i32) -> (i32, i32) {
    %c0_i32 = arith.constant 0 : i32
    %c0_i32_0 = arith.constant 0 : i32
    return %arg0, %c0_i32 : i32, i32
  }
}

module attributes {stable_mosaic.version = 11 : i64} {
  func.func @_fused_tail_kernel(%arg0: i32, %arg1: memref<4x2x1024xbf16, #tpu.memory_space<vmem>>, %arg2: memref<1024x64xbf16, #tpu.memory_space<vmem>>, %arg3: memref<1x64xf32, #tpu.memory_space<vmem>>, %arg4: memref<256x256xbf16, #tpu.memory_space<vmem>>, %arg5: memref<1x256xf32, #tpu.memory_space<vmem>>, %arg6: memref<256x10xbf16, #tpu.memory_space<vmem>>, %arg7: memref<1x10xf32, #tpu.memory_space<vmem>>, %arg8: memref<2x10xf32, #tpu.memory_space<vmem>>) attributes {dimension_semantics = [#tpu.dimension_semantics<parallel>], iteration_bounds = array<i64: 1>, scalar_prefetch = 0 : i64, scratch_operands = 0 : i64, tpu.core_type = #tpu.core_type<tc>, window_params = [{transform_indices = @transform_0, window_bounds = array<i64: 4, 2, 1024>}, {pipeline_mode = #tpu.pipeline_mode<synchronous>, transform_indices = @transform_1, window_bounds = array<i64: 1024, 64>}, {pipeline_mode = #tpu.pipeline_mode<synchronous>, transform_indices = @transform_2, window_bounds = array<i64: 1, 64>}, {pipeline_mode = #tpu.pipeline_mode<synchronous>, transform_indices = @transform_3, window_bounds = array<i64: 256, 256>}, {pipeline_mode = #tpu.pipeline_mode<synchronous>, transform_indices = @transform_4, window_bounds = array<i64: 1, 256>}, {pipeline_mode = #tpu.pipeline_mode<synchronous>, transform_indices = @transform_5, window_bounds = array<i64: 256, 10>}, {pipeline_mode = #tpu.pipeline_mode<synchronous>, transform_indices = @transform_6, window_bounds = array<i64: 1, 10>}, {transform_indices = @transform_7, window_bounds = array<i64: 2, 10>}]} {
    %c0 = arith.constant 0 : index
    %c0_0 = arith.constant 0 : index
    %0 = vector.load %arg5[%c0, %c0_0] : memref<1x256xf32, #tpu.memory_space<vmem>>, vector<1x256xf32>
    %c0_1 = arith.constant 0 : index
    %c0_2 = arith.constant 0 : index
    %c0_3 = arith.constant 0 : index
    %1 = vector.load %arg1[%c0_1, %c0_2, %c0_3] : memref<4x2x1024xbf16, #tpu.memory_space<vmem>>, vector<1x2x1024xbf16>
    %2 = vector.shape_cast %1 : vector<1x2x1024xbf16> to vector<2x1024xbf16>
    %c0_4 = arith.constant 0 : index
    %c0_5 = arith.constant 0 : index
    %3 = vector.load %arg2[%c0_4, %c0_5] : memref<1024x64xbf16, #tpu.memory_space<vmem>>, vector<1024x64xbf16>
    %cst = arith.constant dense<0.000000e+00> : vector<2x64xf32>
    %4 = tpu.matmul %2, %3, %cst {dimension_numbers = #tpu.dot_dimension_numbers<[1], [0], [0], [1], [0, 0, 1, 1], [], []>} : vector<2x1024xbf16>, vector<1024x64xbf16>, vector<2x64xf32> -> vector<2x64xf32>
    %c0_6 = arith.constant 0 : index
    %c0_7 = arith.constant 0 : index
    %5 = vector.load %arg3[%c0_6, %c0_7] : memref<1x64xf32, #tpu.memory_space<vmem>>, vector<1x64xf32>
    %6 = vector.broadcast %5 : vector<1x64xf32> to vector<2x64xf32>
    %7 = arith.addf %4, %6 : vector<2x64xf32>
    %cst_8 = arith.constant 0.000000e+00 : f32
    %8 = vector.broadcast %cst_8 : f32 to vector<2x64xf32>
    %9 = arith.maximumf %7, %8 : vector<2x64xf32>
    %10 = arith.truncf %9 : vector<2x64xf32> to vector<2x64xbf16>
    %c0_9 = arith.constant 0 : index
    %c0_10 = arith.constant 0 : index
    %11 = vector.load %arg4[%c0_9, %c0_10] : memref<256x256xbf16, #tpu.memory_space<vmem>>, vector<64x256xbf16>
    %cst_11 = arith.constant dense<0.000000e+00> : vector<2x256xf32>
    %12 = tpu.matmul %10, %11, %cst_11 {dimension_numbers = #tpu.dot_dimension_numbers<[1], [0], [0], [1], [0, 0, 1, 1], [], []>} : vector<2x64xbf16>, vector<64x256xbf16>, vector<2x256xf32> -> vector<2x256xf32>
    %13 = vector.broadcast %0 : vector<1x256xf32> to vector<2x256xf32>
    %14 = arith.addf %13, %12 : vector<2x256xf32>
    %c1 = arith.constant 1 : index
    %c0_12 = arith.constant 0 : index
    %c0_13 = arith.constant 0 : index
    %15 = vector.load %arg1[%c1, %c0_12, %c0_13] : memref<4x2x1024xbf16, #tpu.memory_space<vmem>>, vector<1x2x1024xbf16>
    %16 = vector.shape_cast %15 : vector<1x2x1024xbf16> to vector<2x1024xbf16>
    %c0_14 = arith.constant 0 : index
    %c0_15 = arith.constant 0 : index
    %17 = vector.load %arg2[%c0_14, %c0_15] : memref<1024x64xbf16, #tpu.memory_space<vmem>>, vector<1024x64xbf16>
    %cst_16 = arith.constant dense<0.000000e+00> : vector<2x64xf32>
    %18 = tpu.matmul %16, %17, %cst_16 {dimension_numbers = #tpu.dot_dimension_numbers<[1], [0], [0], [1], [0, 0, 1, 1], [], []>} : vector<2x1024xbf16>, vector<1024x64xbf16>, vector<2x64xf32> -> vector<2x64xf32>
    %c0_17 = arith.constant 0 : index
    %c0_18 = arith.constant 0 : index
    %19 = vector.load %arg3[%c0_17, %c0_18] : memref<1x64xf32, #tpu.memory_space<vmem>>, vector<1x64xf32>
    %20 = vector.broadcast %19 : vector<1x64xf32> to vector<2x64xf32>
    %21 = arith.addf %18, %20 : vector<2x64xf32>
    %cst_19 = arith.constant 0.000000e+00 : f32
    %22 = vector.broadcast %cst_19 : f32 to vector<2x64xf32>
    %23 = arith.maximumf %21, %22 : vector<2x64xf32>
    %24 = arith.truncf %23 : vector<2x64xf32> to vector<2x64xbf16>
    %c64 = arith.constant 64 : index
    %c0_20 = arith.constant 0 : index
    %25 = vector.load %arg4[%c64, %c0_20] : memref<256x256xbf16, #tpu.memory_space<vmem>>, vector<64x256xbf16>
    %cst_21 = arith.constant dense<0.000000e+00> : vector<2x256xf32>
    %26 = tpu.matmul %24, %25, %cst_21 {dimension_numbers = #tpu.dot_dimension_numbers<[1], [0], [0], [1], [0, 0, 1, 1], [], []>} : vector<2x64xbf16>, vector<64x256xbf16>, vector<2x256xf32> -> vector<2x256xf32>
    %27 = arith.addf %14, %26 : vector<2x256xf32>
    %c2 = arith.constant 2 : index
    %c0_22 = arith.constant 0 : index
    %c0_23 = arith.constant 0 : index
    %28 = vector.load %arg1[%c2, %c0_22, %c0_23] : memref<4x2x1024xbf16, #tpu.memory_space<vmem>>, vector<1x2x1024xbf16>
    %29 = vector.shape_cast %28 : vector<1x2x1024xbf16> to vector<2x1024xbf16>
    %c0_24 = arith.constant 0 : index
    %c0_25 = arith.constant 0 : index
    %30 = vector.load %arg2[%c0_24, %c0_25] : memref<1024x64xbf16, #tpu.memory_space<vmem>>, vector<1024x64xbf16>
    %cst_26 = arith.constant dense<0.000000e+00> : vector<2x64xf32>
    %31 = tpu.matmul %29, %30, %cst_26 {dimension_numbers = #tpu.dot_dimension_numbers<[1], [0], [0], [1], [0, 0, 1, 1], [], []>} : vector<2x1024xbf16>, vector<1024x64xbf16>, vector<2x64xf32> -> vector<2x64xf32>
    %c0_27 = arith.constant 0 : index
    %c0_28 = arith.constant 0 : index
    %32 = vector.load %arg3[%c0_27, %c0_28] : memref<1x64xf32, #tpu.memory_space<vmem>>, vector<1x64xf32>
    %33 = vector.broadcast %32 : vector<1x64xf32> to vector<2x64xf32>
    %34 = arith.addf %31, %33 : vector<2x64xf32>
    %cst_29 = arith.constant 0.000000e+00 : f32
    %35 = vector.broadcast %cst_29 : f32 to vector<2x64xf32>
    %36 = arith.maximumf %34, %35 : vector<2x64xf32>
    %37 = arith.truncf %36 : vector<2x64xf32> to vector<2x64xbf16>
    %c128 = arith.constant 128 : index
    %c0_30 = arith.constant 0 : index
    %38 = vector.load %arg4[%c128, %c0_30] : memref<256x256xbf16, #tpu.memory_space<vmem>>, vector<64x256xbf16>
    %cst_31 = arith.constant dense<0.000000e+00> : vector<2x256xf32>
    %39 = tpu.matmul %37, %38, %cst_31 {dimension_numbers = #tpu.dot_dimension_numbers<[1], [0], [0], [1], [0, 0, 1, 1], [], []>} : vector<2x64xbf16>, vector<64x256xbf16>, vector<2x256xf32> -> vector<2x256xf32>
    %40 = arith.addf %27, %39 : vector<2x256xf32>
    %c3 = arith.constant 3 : index
    %c0_32 = arith.constant 0 : index
    %c0_33 = arith.constant 0 : index
    %41 = vector.load %arg1[%c3, %c0_32, %c0_33] : memref<4x2x1024xbf16, #tpu.memory_space<vmem>>, vector<1x2x1024xbf16>
    %42 = vector.shape_cast %41 : vector<1x2x1024xbf16> to vector<2x1024xbf16>
    %c0_34 = arith.constant 0 : index
    %c0_35 = arith.constant 0 : index
    %43 = vector.load %arg2[%c0_34, %c0_35] : memref<1024x64xbf16, #tpu.memory_space<vmem>>, vector<1024x64xbf16>
    %cst_36 = arith.constant dense<0.000000e+00> : vector<2x64xf32>
    %44 = tpu.matmul %42, %43, %cst_36 {dimension_numbers = #tpu.dot_dimension_numbers<[1], [0], [0], [1], [0, 0, 1, 1], [], []>} : vector<2x1024xbf16>, vector<1024x64xbf16>, vector<2x64xf32> -> vector<2x64xf32>
    %c0_37 = arith.constant 0 : index
    %c0_38 = arith.constant 0 : index
    %45 = vector.load %arg3[%c0_37, %c0_38] : memref<1x64xf32, #tpu.memory_space<vmem>>, vector<1x64xf32>
    %46 = vector.broadcast %45 : vector<1x64xf32> to vector<2x64xf32>
    %47 = arith.addf %44, %46 : vector<2x64xf32>
    %cst_39 = arith.constant 0.000000e+00 : f32
    %48 = vector.broadcast %cst_39 : f32 to vector<2x64xf32>
    %49 = arith.maximumf %47, %48 : vector<2x64xf32>
    %50 = arith.truncf %49 : vector<2x64xf32> to vector<2x64xbf16>
    %c192 = arith.constant 192 : index
    %c0_40 = arith.constant 0 : index
    %51 = vector.load %arg4[%c192, %c0_40] : memref<256x256xbf16, #tpu.memory_space<vmem>>, vector<64x256xbf16>
    %cst_41 = arith.constant dense<0.000000e+00> : vector<2x256xf32>
    %52 = tpu.matmul %50, %51, %cst_41 {dimension_numbers = #tpu.dot_dimension_numbers<[1], [0], [0], [1], [0, 0, 1, 1], [], []>} : vector<2x64xbf16>, vector<64x256xbf16>, vector<2x256xf32> -> vector<2x256xf32>
    %53 = arith.addf %40, %52 : vector<2x256xf32>
    %cst_42 = arith.constant 0.000000e+00 : f32
    %54 = vector.broadcast %cst_42 : f32 to vector<2x256xf32>
    %55 = arith.cmpf oge, %53, %54 : vector<2x256xf32>
    %cst_43 = arith.constant 0.00999999977 : f32
    %56 = vector.broadcast %cst_43 : f32 to vector<2x256xf32>
    %57 = arith.mulf %56, %53 : vector<2x256xf32>
    %58 = arith.select %55, %53, %57 : vector<2x256xi1>, vector<2x256xf32>
    %59 = arith.truncf %58 : vector<2x256xf32> to vector<2x256xbf16>
    %c0_44 = arith.constant 0 : index
    %c0_45 = arith.constant 0 : index
    %60 = vector.load %arg6[%c0_44, %c0_45] : memref<256x10xbf16, #tpu.memory_space<vmem>>, vector<256x10xbf16>
    %cst_46 = arith.constant dense<0.000000e+00> : vector<2x10xf32>
    %61 = tpu.matmul %59, %60, %cst_46 {dimension_numbers = #tpu.dot_dimension_numbers<[1], [0], [0], [1], [0, 0, 1, 1], [], []>} : vector<2x256xbf16>, vector<256x10xbf16>, vector<2x10xf32> -> vector<2x10xf32>
    %c0_47 = arith.constant 0 : index
    %c0_48 = arith.constant 0 : index
    %62 = vector.load %arg7[%c0_47, %c0_48] : memref<1x10xf32, #tpu.memory_space<vmem>>, vector<1x10xf32>
    %63 = vector.broadcast %62 : vector<1x10xf32> to vector<2x10xf32>
    %64 = arith.addf %61, %63 : vector<2x10xf32>
    %c0_49 = arith.constant 0 : index
    %c0_50 = arith.constant 0 : index
    %65 = vector.load %arg8[%c0_49, %c0_50] : memref<2x10xf32, #tpu.memory_space<vmem>>, vector<2x10xf32>
    tpu.vector_store %arg8[%c0_49, %c0_50], %64 {strides = array<i32>} : memref<2x10xf32, #tpu.memory_space<vmem>>, vector<2x10xf32>,
    return
  }
  func.func @transform_0(%arg0: i32) -> (i32, i32, i32) {
    %c0_i32 = arith.constant 0 : i32
    %c0_i32_0 = arith.constant 0 : i32
    %c0_i32_1 = arith.constant 0 : i32
    return %c0_i32, %arg0, %c0_i32_0 : i32, i32, i32
  }
  func.func @transform_1(%arg0: i32) -> (i32, i32) {
    %c0_i32 = arith.constant 0 : i32
    %c0_i32_0 = arith.constant 0 : i32
    %c0_i32_1 = arith.constant 0 : i32
    return %c0_i32, %c0_i32_0 : i32, i32
  }
  func.func @transform_2(%arg0: i32) -> (i32, i32) {
    %c0_i32 = arith.constant 0 : i32
    %c0_i32_0 = arith.constant 0 : i32
    %c0_i32_1 = arith.constant 0 : i32
    return %c0_i32, %c0_i32_0 : i32, i32
  }
  func.func @transform_3(%arg0: i32) -> (i32, i32) {
    %c0_i32 = arith.constant 0 : i32
    %c0_i32_0 = arith.constant 0 : i32
    %c0_i32_1 = arith.constant 0 : i32
    return %c0_i32, %c0_i32_0 : i32, i32
  }
  func.func @transform_4(%arg0: i32) -> (i32, i32) {
    %c0_i32 = arith.constant 0 : i32
    %c0_i32_0 = arith.constant 0 : i32
    %c0_i32_1 = arith.constant 0 : i32
    return %c0_i32, %c0_i32_0 : i32, i32
  }
  func.func @transform_5(%arg0: i32) -> (i32, i32) {
    %c0_i32 = arith.constant 0 : i32
    %c0_i32_0 = arith.constant 0 : i32
    %c0_i32_1 = arith.constant 0 : i32
    return %c0_i32, %c0_i32_0 : i32, i32
  }
  func.func @transform_6(%arg0: i32) -> (i32, i32) {
    %c0_i32 = arith.constant 0 : i32
    %c0_i32_0 = arith.constant 0 : i32
    %c0_i32_1 = arith.constant 0 : i32
    return %c0_i32, %c0_i32_0 : i32, i32
  }
  func.func @transform_7(%arg0: i32) -> (i32, i32) {
    %c0_i32 = arith.constant 0 : i32
    %c0_i32_0 = arith.constant 0 : i32
    return %arg0, %c0_i32 : i32, i32
  }
}

</mosaic_0001>

<bundles_post_ra>
// kernel: conv_encoder_forward.4
= control target key start
LH: loop header
LB: loop body
LE: loop exit
PB: predicated region body
PF: predicated region fallthrough
CT: control target
= control target key end

     0   :  { %s3427_s12 = smov 0   ;;  %s3429_s13 = smov 0   ;;  %s4267_s0 = inlined_call_operand.vmem [shape: bf16[1922,128], index: 0, kind: input, shape index: {}]   ;;  %s4268_s1 = inlined_call_operand.vmem [shape: bf16[128,32], index: 1, kind: input, shape index: {}]   ;;  %s4269_s2 = inlined_call_operand.vmem [shape: f32[1,32], index: 2, kind: input, shape index: {}]   ;;  %s4270_s3 = inlined_call_operand.vmem [shape: bf16[1922,32], index: 3, kind: output, shape index: {}]  }
   0x1   :  { %s3431_s14 = smov 0  }
   0x2 LB: > { %s3440_s15 = sadd.s32 4294967295, %s3371_s14   ;;  %s3442_s16 = sadd.s32 1, %s3371_s14   ;;  %s3371_s14 = sphi %s3431_s14, %s4277_s14   ;;  %s3367_s13 = sphi %s3429_s13, %s4276_s13   ;;  %s3363_s12 = sphi %s3427_s12, %s4275_s12  }
   0x3   : > { %s85_s17 = ssub.s32 %s3371_s14, %s3442_s16  ;;  %s88_s18 = sadd.s32 1, %s3367_s13 }
   0x4   : > { %p86_p0 = scmp.eq.s32.totalorder %s85_s17, 0  ;;  %p98_p1 = scmp.ne.s32.totalorder %s3367_s13, %s3363_s12 }
   0x5   : > { %p99_p2 = scmp.eq.s32.totalorder %s3440_s15, 1  ;;  %p2477_p3 = scmp.ge.s32.totalorder %s3371_s14, 1 }
   0x6   : > { %s3450_s19 = scalar_select %p86_p0, %s3367_s13, %s88_s18  }
   0x7   : > { %p3452_p4 = por %p99_p2, %p98_p1  ;;  %p146_p5 = scmp.lt.s32.totalorder %s3371_s14, 3 }
   0x9   : > { %p147_p6 = pnand %p2477_p3, %p146_p5 }
   0xa   : > { %s3465_s25 = smul.u32 (!%p147_p6), 122, %s3440_s15  ;;  %s170_s22 = sand.u32 (!%p147_p6), 1, %s3363_s12  }
   0xb   : > { %150 = sbr.rel (%p147_p6) target bundleno = 574 (0x23e), region = 32 }
   0xc   : > { %p178_p7 = scmp.lt.s32.totalorder (!%p147_p6), %s3465_s25, 240  ;;  %s3156_s26 = smul.u32 (!%p147_p6), 488, %s170_s22 }
   0xe   : > { %s3672_s12 = scalar_lea.vmem (!%p147_p6), [#allocation2], %s3156_s26  }
  0x10   : > { %v3247_v0 = vld [vmem:[%s4268_s1 + $0x38] sm:$0xff]   ;;  %v3405_v1 = vmov 0.0   ;;  %v3248_v2 = vld [vmem:[%s4268_s1 + $0x30] sm:$0xff]   ;;  %vm3406_vm0 = vmmov 0   ;;  %v3249_v3 = vld [vmem:[%s4268_s1 + $0x28] sm:$0xff]   ;;  %s179_s28 = scalar_select %p178_p7, %s3465_s25, 240 }
  0x11   : > { %2880 = vmatprep.subr.bf16.mxu0 %v3405_v1  ;;  %3140 = vmatprep.subr.bf16.mxu1 %v3405_v1  ;;  %v3250_v4 = vld [vmem:[%s4268_s1 + $0x20] sm:$0xff]   ;;  %v3251_v5 = vld [vmem:[%s4268_s1 + $0x18] sm:$0xff]   ;;  %v3252_v6 = vld [vmem:[%s4268_s1 + $0x10] sm:$0xff]   ;;  %vm1883_vm1 = vcmask 257024   ;;  %s2808_s30 = smul.u32 (%p3452_p4), 488, %s3440_s15 }
  0x12   : > { %2881 = vmatpush3.bf16.msra.mxu0 %v3247_v0  ;;  %3148 = vmatpush3.bf16.msra.mxu1 %v3247_v0  ;;  %s2478_s29 = sshll.u32 %s179_s28, 2  ;;  %v3253_v7 = vld [vmem:[%s4268_s1 + $0x8] sm:$0xff]   ;;  %v3254_v8 = vld [vmem:[%s4268_s1] sm:$0xff]  }
  0x13   : > { %2882 = vmatprep.subr.bf16.mxu0 %v3405_v1  ;;  %3141 = vmatprep.subr.bf16.mxu1 %v3405_v1  ;;  %s3483_s5 = scalar_lea.vmem %s4267_s0, %s2478_s29  ;;  %v3660_v59 = vld [vmem:[%s4269_s2] ss:$0 sm:$0xff]  ;;  %s2014_s29 = ssub.s32 (%p3452_p4), 241, %s3465_s25 }
  0x14   : > { %2896 = vmatprep.mubr.msk.bf16.mxu0 %vm3406_vm0, %v3405_v1  ;;  %3020 = vmatprep.mubr.msk.bf16.mxu1 %vm3406_vm0, %v3405_v1  ;;  %v3255_v9 = vld [vmem:[%s3483_s5] sm:$0xff]   ;;  %v3256_v10 = vld [vmem:[%s3483_s5 + $0xf8] sm:$0xff]   ;;  %v3257_v11 = vld [vmem:[%s3483_s5 + $0x8] sm:$0xff]   ;;  %p2015_p8 = scmp.lt.s32.totalorder (%p3452_p4), %s2014_s29, 122  ;;  %s4075_s6 = scalar_lea.vmem (%p3452_p4), %s4270_s3, %s2808_s30  }
  0x15   : > { %v3258_v12 = vld [vmem:[%s3483_s5 + $0x100] sm:$0xff]   ;;  %v3259_v13 = vld [vmem:[%s3483_s5 + $0x10] sm:$0xff]   ;;  %v3260_v14 = vld [vmem:[%s3483_s5 + $0x108] sm:$0xff]  }
  0x16   : > { %2883 = vmatpush3.bf16.msra.mxu0 %v3248_v2  ;;  %3149 = vmatpush3.bf16.msra.mxu1 %v3248_v2  ;;  %v3261_v15 = vld [vmem:[%s3483_s5 + $0x18] sm:$0xff]   ;;  %v3262_v16 = vld [vmem:[%s3483_s5 + $0x110] sm:$0xff]   ;;  %v3263_v17 = vld [vmem:[%s3483_s5 + $0x20] sm:$0xff]  }
  0x17   : > { %2884 = vmatprep.subr.bf16.mxu0 %v3405_v1  ;;  %3142 = vmatprep.subr.bf16.mxu1 %v3405_v1  ;;  %v3264_v18 = vld [vmem:[%s3483_s5 + $0x118] sm:$0xff]   ;;  %v3265_v19 = vld [vmem:[%s3483_s5 + $0x28] sm:$0xff]   ;;  %v3266_v20 = vld [vmem:[%s3483_s5 + $0x120] sm:$0xff]  }
  0x18   : > { %v3267_v21 = vld [vmem:[%s3483_s5 + $0x30] sm:$0xff]   ;;  %v3268_v22 = vld [vmem:[%s3483_s5 + $0x128] sm:$0xff]   ;;  %v3269_v23 = vld [vmem:[%s3483_s5 + $0x38] sm:$0xff]  }
  0x19   : > { %v3270_v24 = vld [vmem:[%s3483_s5 + $0x130] sm:$0xff]   ;;  %v3271_v25 = vld [vmem:[%s3483_s5 + $0x40] sm:$0xff]   ;;  %v3272_v26 = vld [vmem:[%s3483_s5 + $0x138] sm:$0xff]  }
  0x1a   : > { %2885 = vmatpush3.bf16.msra.mxu0 %v3249_v3  ;;  %3150 = vmatpush3.bf16.msra.mxu1 %v3249_v3  ;;  %v3273_v27 = vld [vmem:[%s3483_s5 + $0x48] sm:$0xff]   ;;  %v3274_v28 = vld [vmem:[%s3483_s5 + $0x140] sm:$0xff]   ;;  %v3275_v29 = vld [vmem:[%s3483_s5 + $0x50] sm:$0xff]  }
  0x1b   : > { %2886 = vmatprep.subr.bf16.mxu0 %v3405_v1  ;;  %3143 = vmatprep.subr.bf16.mxu1 %v3405_v1  ;;  %v3276_v30 = vld [vmem:[%s3483_s5 + $0x148] sm:$0xff]   ;;  %v3277_v31 = vld [vmem:[%s3483_s5 + $0x58] sm:$0xff]   ;;  %v3278_v32 = vld [vmem:[%s3483_s5 + $0x150] sm:$0xff]  }
  0x1c   : > { %v3279_v33 = vld [vmem:[%s3483_s5 + $0x60] sm:$0xff]   ;;  %v3280_v34 = vld [vmem:[%s3483_s5 + $0x158] sm:$0xff]   ;;  %v3281_v35 = vld [vmem:[%s3483_s5 + $0x68] sm:$0xff]  }
  0x1d   : > { %v3282_v36 = vld [vmem:[%s3483_s5 + $0x160] sm:$0xff]   ;;  %v3283_v37 = vld [vmem:[%s3483_s5 + $0x70] sm:$0xff]   ;;  %v3284_v38 = vld [vmem:[%s3483_s5 + $0x168] sm:$0xff]  }
  0x1e   : > { %2887 = vmatpush3.bf16.msra.mxu0 %v3250_v4  ;;  %3151 = vmatpush3.bf16.msra.mxu1 %v3250_v4  ;;  %v3285_v39 = vld [vmem:[%s3483_s5 + $0x78] sm:$0xff]   ;;  %v3286_v40 = vld [vmem:[%s3483_s5 + $0x170] sm:$0xff]   ;;  %v3287_v41 = vld [vmem:[%s3483_s5 + $0x80] sm:$0xff]  }
  0x1f   : > { %2888 = vmatprep.subr.bf16.mxu0 %v3405_v1  ;;  %3144 = vmatprep.subr.bf16.mxu1 %v3405_v1  ;;  %v3288_v42 = vld [vmem:[%s3483_s5 + $0x178] sm:$0xff]   ;;  %v3289_v43 = vld [vmem:[%s3483_s5 + $0x88] sm:$0xff]   ;;  %v3290_v44 = vld [vmem:[%s3483_s5 + $0x180] sm:$0xff]  }
  0x20   : > { %v3291_v45 = vld [vmem:[%s3483_s5 + $0x90] sm:$0xff]   ;;  %v3292_v46 = vld [vmem:[%s3483_s5 + $0x188] sm:$0xff]   ;;  %v3293_v47 = vld [vmem:[%s3483_s5 + $0x98] sm:$0xff]  }
  0x21   : > { %v3294_v48 = vld [vmem:[%s3483_s5 + $0x190] sm:$0xff]   ;;  %v3295_v49 = vld [vmem:[%s3483_s5 + $0xa0] sm:$0xff]   ;;  %v3296_v50 = vld [vmem:[%s3483_s5 + $0x198] sm:$0xff]  }
  0x22   : > { %2889 = vmatpush3.bf16.msra.mxu0 %v3251_v5  ;;  %3152 = vmatpush3.bf16.msra.mxu1 %v3251_v5  ;;  %v3297_v51 = vld [vmem:[%s3483_s5 + $0xa8] sm:$0xff]   ;;  %v3298_v52 = vld [vmem:[%s3483_s5 + $0x1a0] sm:$0xff]   ;;  %v3299_v53 = vld [vmem:[%s3483_s5 + $0xb0] sm:$0xff]  }
  0x23   : > { %2890 = vmatprep.subr.bf16.mxu0 %v3405_v1  ;;  %3145 = vmatprep.subr.bf16.mxu1 %v3405_v1  ;;  %v3300_v54 = vld [vmem:[%s3483_s5 + $0x1a8] sm:$0xff]   ;;  %v3301_v55 = vld [vmem:[%s3483_s5 + $0xb8] sm:$0xff]   ;;  %v3302_v56 = vld [vmem:[%s3483_s5 + $0x1b0] sm:$0xff]  }
  0x24   : > { %v3303_v57 = vld [vmem:[%s3483_s5 + $0xc0] sm:$0xff]   ;;  %v3304_v58 = vld [vmem:[%s3483_s5 + $0x1b8] sm:$0xff]  }
  0x26   : > { %2891 = vmatpush3.bf16.msra.mxu0 %v3252_v6  ;;  %3153 = vmatpush3.bf16.msra.mxu1 %v3252_v6 }
  0x27   : > { %2892 = vmatprep.subr.bf16.mxu0 %v3405_v1  ;;  %3146 = vmatprep.subr.bf16.mxu1 %v3405_v1 }
  0x2a   : > { %2893 = vmatpush3.bf16.msra.mxu0 %v3253_v7  ;;  %3154 = vmatpush3.bf16.msra.mxu1 %v3253_v7  ;;  %v3305_v7 = vld [vmem:[%s3483_s5 + $0xc8] sm:$0xff]  }
  0x2b   : > { %2894 = vmatprep.subr.bf16.mxu0 %v3405_v1  ;;  %3147 = vmatprep.subr.bf16.mxu1 %v3405_v1 }
  0x2e   : > { %2895 = vmatpush3.bf16.msra.mxu0 %v3254_v8  ;;  %3155 = vmatpush3.bf16.msra.mxu1 %v3254_v8  ;;  %v3306_v8 = vld [vmem:[%s3483_s5 + $0x1c0] sm:$0xff]  }
  0x31   : > { %2897 = vmatmul.mubr.bf16.vlgmr.msra.gmra.mxu0 %v3255_v9  ;;  %3021 = vmatmul.mubr.bf16.vlgmr.msra.gmra.mxu1 %v3256_v10 }
  0x32   : > { %2900 = vmatprep.mubr.msk.bf16.mxu0 %vm3406_vm0, %v3405_v1  ;;  %3024 = vmatprep.mubr.msk.bf16.mxu1 %vm3406_vm0, %v3405_v1 }
  0x39   : > { %2901 = vmatmul.mubr.bf16.gmra.mxu0 %v3257_v11  ;;  %3025 = vmatmul.mubr.bf16.gmra.mxu1 %v3258_v12 }
  0x3a   : > { %2904 = vmatprep.mubr.msk.bf16.mxu0 %vm3406_vm0, %v3405_v1  ;;  %3028 = vmatprep.mubr.msk.bf16.mxu1 %vm3406_vm0, %v3405_v1 }
  0x41   : > { %2905 = vmatmul.mubr.bf16.gmra.mxu0 %v3259_v13  ;;  %3029 = vmatmul.mubr.bf16.gmra.mxu1 %v3260_v14 }
  0x42   : > { %2908 = vmatprep.mubr.msk.bf16.mxu0 %vm3406_vm0, %v3405_v1  ;;  %3032 = vmatprep.mubr.msk.bf16.mxu1 %vm3406_vm0, %v3405_v1 }
  0x49   : > { %2909 = vmatmul.mubr.bf16.gmra.mxu0 %v3261_v15  ;;  %3033 = vmatmul.mubr.bf16.gmra.mxu1 %v3262_v16 }
  0x4a   : > { %2912 = vmatprep.mubr.msk.bf16.mxu0 %vm3406_vm0, %v3405_v1  ;;  %3036 = vmatprep.mubr.msk.bf16.mxu1 %vm3406_vm0, %v3405_v1 }
  0x51   : > { %2913 = vmatmul.mubr.bf16.gmra.mxu0 %v3263_v17  ;;  %3037 = vmatmul.mubr.bf16.gmra.mxu1 %v3264_v18 }
  0x52   : > { %2916 = vmatprep.mubr.msk.bf16.mxu0 %vm3406_vm0, %v3405_v1  ;;  %3040 = vmatprep.mubr.msk.bf16.mxu1 %vm3406_vm0, %v3405_v1 }
  0x59   : > { %2917 = vmatmul.mubr.bf16.gmra.mxu0 %v3265_v19  ;;  %3041 = vmatmul.mubr.bf16.gmra.mxu1 %v3266_v20 }
  0x5a   : > { %2920 = vmatprep.mubr.msk.bf16.mxu0 %vm3406_vm0, %v3405_v1  ;;  %3044 = vmatprep.mubr.msk.bf16.mxu1 %vm3406_vm0, %v3405_v1 }
  0x61   : > { %2921 = vmatmul.mubr.bf16.gmra.mxu0 %v3267_v21  ;;  %3045 = vmatmul.mubr.bf16.gmra.mxu1 %v3268_v22 }
  0x62   : > { %2924 = vmatprep.mubr.msk.bf16.mxu0 %vm3406_vm0, %v3405_v1  ;;  %3048 = vmatprep.mubr.msk.bf16.mxu1 %vm3406_vm0, %v3405_v1 }
  0x69   : > { %2925 = vmatmul.mubr.bf16.gmra.mxu0 %v3269_v23  ;;  %3049 = vmatmul.mubr.bf16.gmra.mxu1 %v3270_v24 }
  0x6a   : > { %2928 = vmatprep.mubr.msk.bf16.mxu0 %vm3406_vm0, %v3405_v1  ;;  %3052 = vmatprep.mubr.msk.bf16.mxu1 %vm3406_vm0, %v3405_v1 }
  0x71   : > { %2929 = vmatmul.mubr.bf16.gmra.mxu0 %v3271_v25  ;;  %3053 = vmatmul.mubr.bf16.gmra.mxu1 %v3272_v26 }
  0x72   : > { %2932 = vmatprep.mubr.msk.bf16.mxu0 %vm3406_vm0, %v3405_v1  ;;  %3056 = vmatprep.mubr.msk.bf16.mxu1 %vm3406_vm0, %v3405_v1 }
  0x79   : > { %2933 = vmatmul.mubr.bf16.gmra.mxu0 %v3273_v27  ;;  %3057 = vmatmul.mubr.bf16.gmra.mxu1 %v3274_v28 }
  0x7a   : > { %2936 = vmatprep.mubr.msk.bf16.mxu0 %vm3406_vm0, %v3405_v1  ;;  %3060 = vmatprep.mubr.msk.bf16.mxu1 %vm3406_vm0, %v3405_v1 }
  0x81   : > { %2937 = vmatmul.mubr.bf16.gmra.mxu0 %v3275_v29  ;;  %3061 = vmatmul.mubr.bf16.gmra.mxu1 %v3276_v30  ;;  %v3307_v29 = vld [vmem:[%s3483_s5 + $0xd0] sm:$0xff]   ;;  %v3308_v30 = vld [vmem:[%s3483_s5 + $0x1c8] sm:$0xff]  }
  0x82   : > { %2940 = vmatprep.mubr.msk.bf16.mxu0 %vm3406_vm0, %v3405_v1  ;;  %3064 = vmatprep.mubr.msk.bf16.mxu1 %vm3406_vm0, %v3405_v1 }
  0x89   : > { %2941 = vmatmul.mubr.bf16.gmra.mxu0 %v3277_v31  ;;  %3065 = vmatmul.mubr.bf16.gmra.mxu1 %v3278_v32 }
  0x8a   : > { %2944 = vmatprep.mubr.msk.bf16.mxu0 %vm3406_vm0, %v3405_v1  ;;  %3068 = vmatprep.mubr.msk.bf16.mxu1 %vm3406_vm0, %v3405_v1 }
  0x91   : > { %2945 = vmatmul.mubr.bf16.gmra.mxu0 %v3279_v33  ;;  %3069 = vmatmul.mubr.bf16.gmra.mxu1 %v3280_v34 }
  0x92   : > { %2948 = vmatprep.mubr.msk.bf16.mxu0 %vm3406_vm0, %v3405_v1  ;;  %3072 = vmatprep.mubr.msk.bf16.mxu1 %vm3406_vm0, %v3405_v1 }
  0x99   : > { %2949 = vmatmul.mubr.bf16.gmra.mxu0 %v3281_v35  ;;  %3073 = vmatmul.mubr.bf16.gmra.mxu1 %v3282_v36 }
  0x9a   : > { %2952 = vmatprep.mubr.msk.bf16.mxu0 %vm3406_vm0, %v3405_v1  ;;  %3076 = vmatprep.mubr.msk.bf16.mxu1 %vm3406_vm0, %v3405_v1 }
  0xa1   : > { %2953 = vmatmul.mubr.bf16.gmra.mxu0 %v3283_v37  ;;  %3077 = vmatmul.mubr.bf16.gmra.mxu1 %v3284_v38 }
  0xa2   : > { %2956 = vmatprep.mubr.msk.bf16.mxu0 %vm3406_vm0, %v3405_v1  ;;  %3080 = vmatprep.mubr.msk.bf16.mxu1 %vm3406_vm0, %v3405_v1 }
  0xa9   : > { %2957 = vmatmul.mubr.bf16.gmra.mxu0 %v3285_v39  ;;  %3081 = vmatmul.mubr.bf16.gmra.mxu1 %v3286_v40 }
  0xaa   : > { %2960 = vmatprep.mubr.msk.bf16.mxu0 %vm3406_vm0, %v3405_v1  ;;  %3084 = vmatprep.mubr.msk.bf16.mxu1 %vm3406_vm0, %v3405_v1 }
  0xb1   : > { %2961 = vmatmul.mubr.bf16.gmra.mxu0 %v3287_v41  ;;  %3085 = vmatmul.mubr.bf16.gmra.mxu1 %v3288_v42 }
  0xb2   : > { %2964 = vmatprep.mubr.msk.bf16.mxu0 %vm3406_vm0, %v3405_v1  ;;  %3088 = vmatprep.mubr.msk.bf16.mxu1 %vm3406_vm0, %v3405_v1 }
  0xb9   : > { %2965 = vmatmul.mubr.bf16.gmra.mxu0 %v3289_v43  ;;  %3089 = vmatmul.mubr.bf16.gmra.mxu1 %v3290_v44 }
  0xba   : > { %2968 = vmatprep.mubr.msk.bf16.mxu0 %vm3406_vm0, %v3405_v1  ;;  %3092 = vmatprep.mubr.msk.bf16.mxu1 %vm3406_vm0, %v3405_v1 }
  0xc1   : > { %2969 = vmatmul.mubr.bf16.gmra.mxu0 %v3291_v45  ;;  %3093 = vmatmul.mubr.bf16.gmra.mxu1 %v3292_v46 }
  0xc2   : > { %2972 = vmatprep.mubr.msk.bf16.mxu0 %vm3406_vm0, %v3405_v1  ;;  %3096 = vmatprep.mubr.msk.bf16.mxu1 %vm3406_vm0, %v3405_v1 }
  0xc9   : > { %2973 = vmatmul.mubr.bf16.gmra.mxu0 %v3293_v47  ;;  %3097 = vmatmul.mubr.bf16.gmra.mxu1 %v3294_v48 }
  0xca   : > { %2976 = vmatprep.mubr.msk.bf16.mxu0 %vm3406_vm0, %v3405_v1  ;;  %3100 = vmatprep.mubr.msk.bf16.mxu1 %vm3406_vm0, %v3405_v1 }
  0xd1   : > { %2977 = vmatmul.mubr.bf16.gmra.mxu0 %v3295_v49  ;;  %3101 = vmatmul.mubr.bf16.gmra.mxu1 %v3296_v50 }
  0xd2   : > { %2980 = vmatprep.mubr.msk.bf16.mxu0 %vm3406_vm0, %v3405_v1  ;;  %3104 = vmatprep.mubr.msk.bf16.mxu1 %vm3406_vm0, %v3405_v1 }
  0xd9   : > { %2981 = vmatmul.mubr.bf16.gmra.mxu0 %v3297_v51  ;;  %3105 = vmatmul.mubr.bf16.gmra.mxu1 %v3298_v52  ;;  %v3309_v51 = vld [vmem:[%s3483_s5 + $0xd8] sm:$0xff]   ;;  %v3310_v52 = vld [vmem:[%s3483_s5 + $0x1d0] sm:$0xff]  }
  0xda   : > { %2984 = vmatprep.mubr.msk.bf16.mxu0 %vm3406_vm0, %v3405_v1  ;;  %3108 = vmatprep.mubr.msk.bf16.mxu1 %vm3406_vm0, %v3405_v1 }
  0xe1   : > { %2985 = vmatmul.mubr.bf16.gmra.mxu0 %v3299_v53  ;;  %3109 = vmatmul.mubr.bf16.gmra.mxu1 %v3300_v54 }
  0xe2   : > { %2988 = vmatprep.mubr.msk.bf16.mxu0 %vm3406_vm0, %v3405_v1  ;;  %3112 = vmatprep.mubr.msk.bf16.mxu1 %vm3406_vm0, %v3405_v1 }
  0xe9   : > { %2989 = vmatmul.mubr.bf16.gmra.mxu0 %v3301_v55  ;;  %3113 = vmatmul.mubr.bf16.gmra.mxu1 %v3302_v56 }
  0xea   : > { %2992 = vmatprep.mubr.msk.bf16.mxu0 %vm3406_vm0, %v3405_v1  ;;  %3116 = vmatprep.mubr.msk.bf16.mxu1 %vm3406_vm0, %v3405_v1 }
  0xf1   : > { %v786_v60 = vpop.f32.mrf.mxu0  ;;  %2993 = vmatmul.mubr.bf16.gmra.mxu0 %v3303_v57  ;;  %v1034_v61 = vpop.f32.mrf.mxu1  ;;  %3117 = vmatmul.mubr.bf16.gmra.mxu1 %v3304_v58 }
  0xf2   : > { %v787_v62 = vadd.f32 %v3660_v59, %v786_v60  ;;  %v1035_v63 = vadd.f32 %v3660_v59, %v1034_v61  ;;  %2996 = vmatprep.mubr.msk.bf16.mxu0 %vm3406_vm0, %v3405_v1  ;;  %3120 = vmatprep.mubr.msk.bf16.mxu1 %vm3406_vm0, %v3405_v1 }
  0xf3   : > { %v2898_v0 = vpop.f32.mrf.mxu0  ;;  %v3022_v2 = vpop.f32.mrf.mxu1 }
  0xf4   : > { %v1273_v3 = vmax.f32 %v787_v62, 0.0  ;;  %v1335_v4 = vmax.f32 %v1035_v63, 0.0 }
  0xf5   : > { %v789_v5 = vpop.f32.mrf.mxu0  ;;  %v1037_v6 = vpop.f32.mrf.mxu1 }
  0xf6   : > { %v2686_v9 = vpack.c.bf16 %v1273_v3, %v1273_v3  ;;  %v2748_v10 = vpack.c.bf16 %v1335_v4, %v1335_v4  ;;  %v790_v11 = vadd.f32 %v3660_v59, %v789_v5  ;;  %v1038_v12 = vadd.f32 %v3660_v59, %v1037_v6 }
  0xf7   : > { %v2899_v13 = vpop.f32.mrf.mxu0  ;;  %v3023_v14 = vpop.f32.mrf.mxu1 }
  0xf8   : > { %1884 = vst.msk [vmem:[%s3672_s12] sm:$0xf] %vm1883_vm1, %v2686_v9  ;;  %1946 = vst.msk [vmem:[%s3672_s12 + $0xf8] sm:$0xf] %vm1883_vm1, %v2748_v10  ;;  %v1274_v15 = vmax.f32 %v790_v11, 0.0  ;;  %v1336_v16 = vmax.f32 %v1038_v12, 0.0 }
  0xf9   : > { %v794_v17 = vpop.f32.mrf.mxu0  ;;  %2997 = vmatmul.mubr.bf16.gmra.mxu0 %v3305_v7  ;;  %v1042_v18 = vpop.f32.mrf.mxu1  ;;  %3121 = vmatmul.mubr.bf16.gmra.mxu1 %v3306_v8  ;;  %v3311_v11 = vld [vmem:[%s3483_s5 + $0xe0] sm:$0xff]   ;;  %v3312_v12 = vld [vmem:[%s3483_s5 + $0x1d8] sm:$0xff]  }
  0xfa   : > { %v2687_v19 = vpack.c.bf16 %v1274_v15, %v1274_v15  ;;  %v2749_v20 = vpack.c.bf16 %v1336_v16, %v1336_v16  ;;  %v795_v21 = vadd.f32 %v3660_v59, %v794_v17  ;;  %v1043_v22 = vadd.f32 %v3660_v59, %v1042_v18  ;;  %3000 = vmatprep.mubr.msk.bf16.mxu0 %vm3406_vm0, %v3405_v1 }
  0xfb   : > { %v2902_v23 = vpop.f32.mrf.mxu0  ;;  %v3026_v24 = vpop.f32.mrf.mxu1  ;;  %3124 = vmatprep.mubr.msk.bf16.mxu1 %vm3406_vm0, %v3405_v1 }
  0xfc   : > { %1885 = vst.msk [vmem:[%s3672_s12 + $0x4] sm:$0xf] %vm1883_vm1, %v2687_v19  ;;  %1947 = vst.msk [vmem:[%s3672_s12 + $0xfc] sm:$0xf] %vm1883_vm1, %v2749_v20  ;;  %v1275_v25 = vmax.f32 %v795_v21, 0.0  ;;  %v1337_v26 = vmax.f32 %v1043_v22, 0.0 }
  0xfd   : > { %v797_v27 = vpop.f32.mrf.mxu0  ;;  %v1045_v28 = vpop.f32.mrf.mxu1 }
  0xfe   : > { %v2688_v31 = vpack.c.bf16 %v1275_v25, %v1275_v25  ;;  %v2750_v32 = vpack.c.bf16 %v1337_v26, %v1337_v26  ;;  %v798_v33 = vadd.f32 %v3660_v59, %v797_v27  ;;  %v1046_v34 = vadd.f32 %v3660_v59, %v1045_v28 }
  0xff   : > { %v2903_v35 = vpop.f32.mrf.mxu0  ;;  %v3027_v36 = vpop.f32.mrf.mxu1 }
 0x100   : > { %1886 = vst.msk [vmem:[%s3672_s12 + $0x8] sm:$0xf] %vm1883_vm1, %v2688_v31  ;;  %1948 = vst.msk [vmem:[%s3672_s12 + $0x100] sm:$0xf] %vm1883_vm1, %v2750_v32  ;;  %v1276_v37 = vmax.f32 %v798_v33, 0.0  ;;  %v1338_v38 = vmax.f32 %v1046_v34, 0.0 }
 0x101   : > { %v802_v39 = vpop.f32.mrf.mxu0  ;;  %3001 = vmatmul.mubr.bf16.gmra.mxu0 %v3307_v29  ;;  %v1050_v40 = vpop.f32.mrf.mxu1  ;;  %3125 = vmatmul.mubr.bf16.gmra.mxu1 %v3308_v30  ;;  %v3313_v33 = vld [vmem:[%s3483_s5 + $0xe8] sm:$0xff]   ;;  %v3314_v34 = vld [vmem:[%s3483_s5 + $0x1e0] sm:$0xff]  }
 0x102   : > { %v2689_v41 = vpack.c.bf16 %v1276_v37, %v1276_v37  ;;  %v2751_v42 = vpack.c.bf16 %v1338_v38, %v1338_v38  ;;  %v803_v43 = vadd.f32 %v3660_v59, %v802_v39  ;;  %v1051_v44 = vadd.f32 %v3660_v59, %v1050_v40  ;;  %3004 = vmatprep.mubr.msk.bf16.mxu0 %vm3406_vm0, %v3405_v1 }
 0x103   : > { %v2906_v45 = vpop.f32.mrf.mxu0  ;;  %v3030_v46 = vpop.f32.mrf.mxu1  ;;  %3128 = vmatprep.mubr.msk.bf16.mxu1 %vm3406_vm0, %v3405_v1 }
 0x104   : > { %1887 = vst.msk [vmem:[%s3672_s12 + $0xc] sm:$0xf] %vm1883_vm1, %v2689_v41  ;;  %1949 = vst.msk [vmem:[%s3672_s12 + $0x104] sm:$0xf] %vm1883_vm1, %v2751_v42  ;;  %v1277_v47 = vmax.f32 %v803_v43, 0.0  ;;  %v1339_v48 = vmax.f32 %v1051_v44, 0.0 }
 0x105   : > { %v805_v49 = vpop.f32.mrf.mxu0  ;;  %v1053_v50 = vpop.f32.mrf.mxu1 }
 0x106   : > { %v2690_v53 = vpack.c.bf16 %v1277_v47, %v1277_v47  ;;  %v2752_v54 = vpack.c.bf16 %v1339_v48, %v1339_v48  ;;  %v806_v55 = vadd.f32 %v3660_v59, %v805_v49  ;;  %v1054_v56 = vadd.f32 %v3660_v59, %v1053_v50 }
 0x107   : > { %v2907_v57 = vpop.f32.mrf.mxu0  ;;  %v3031_v58 = vpop.f32.mrf.mxu1 }
 0x108   : > { %1888 = vst.msk [vmem:[%s3672_s12 + $0x10] sm:$0xf] %vm1883_vm1, %v2690_v53  ;;  %1950 = vst.msk [vmem:[%s3672_s12 + $0x108] sm:$0xf] %vm1883_vm1, %v2752_v54  ;;  %v1278_v60 = vmax.f32 %v806_v55, 0.0  ;;  %v1340_v61 = vmax.f32 %v1054_v56, 0.0 }
 0x109   : > { %v810_v62 = vpop.f32.mrf.mxu0  ;;  %3005 = vmatmul.mubr.bf16.gmra.mxu0 %v3309_v51  ;;  %v1058_v63 = vpop.f32.mrf.mxu1  ;;  %3129 = vmatmul.mubr.bf16.gmra.mxu1 %v3310_v52  ;;  %v3315_v55 = vld [vmem:[%s3483_s5 + $0xf0] sm:$0xff]  }
 0x10a   : > { %v2691_v0 = vpack.c.bf16 %v1278_v60, %v1278_v60  ;;  %v2753_v2 = vpack.c.bf16 %v1340_v61, %v1340_v61  ;;  %v811_v3 = vadd.f32 %v3660_v59, %v810_v62  ;;  %v1059_v4 = vadd.f32 %v3660_v59, %v1058_v63  ;;  %3008 = vmatprep.mubr.msk.bf16.mxu0 %vm3406_vm0, %v3405_v1 }
 0x10b   : > { %v2910_v5 = vpop.f32.mrf.mxu0  ;;  %v3034_v6 = vpop.f32.mrf.mxu1  ;;  %3132 = vmatprep.mubr.msk.bf16.mxu1 %vm3406_vm0, %v3405_v1 }
 0x10c   : > { %1889 = vst.msk [vmem:[%s3672_s12 + $0x14] sm:$0xf] %vm1883_vm1, %v2691_v0  ;;  %1951 = vst.msk [vmem:[%s3672_s12 + $0x10c] sm:$0xf] %vm1883_vm1, %v2753_v2  ;;  %v1279_v7 = vmax.f32 %v811_v3, 0.0  ;;  %v1341_v8 = vmax.f32 %v1059_v4, 0.0 }
 0x10d   : > { %v813_v9 = vpop.f32.mrf.mxu0  ;;  %v1061_v10 = vpop.f32.mrf.mxu1 }
 0x10e   : > { %v2692_v13 = vpack.c.bf16 %v1279_v7, %v1279_v7  ;;  %v2754_v14 = vpack.c.bf16 %v1341_v8, %v1341_v8  ;;  %v814_v15 = vadd.f32 %v3660_v59, %v813_v9  ;;  %v1062_v16 = vadd.f32 %v3660_v59, %v1061_v10 }
 0x10f   : > { %v2911_v17 = vpop.f32.mrf.mxu0  ;;  %v3035_v18 = vpop.f32.mrf.mxu1 }
 0x110   : > { %1890 = vst.msk [vmem:[%s3672_s12 + $0x18] sm:$0xf] %vm1883_vm1, %v2692_v13  ;;  %1952 = vst.msk [vmem:[%s3672_s12 + $0x110] sm:$0xf] %vm1883_vm1, %v2754_v14  ;;  %v1280_v19 = vmax.f32 %v814_v15, 0.0  ;;  %v1342_v20 = vmax.f32 %v1062_v16, 0.0 }
 0x111   : > { %v818_v21 = vpop.f32.mrf.mxu0  ;;  %3009 = vmatmul.mubr.bf16.gmra.mxu0 %v3311_v11  ;;  %v1066_v22 = vpop.f32.mrf.mxu1  ;;  %3133 = vmatmul.mubr.bf16.gmra.mxu1 %v3312_v12 }
 0x112   : > { %v2693_v23 = vpack.c.bf16 %v1280_v19, %v1280_v19  ;;  %v2755_v24 = vpack.c.bf16 %v1342_v20, %v1342_v20  ;;  %v819_v25 = vadd.f32 %v3660_v59, %v818_v21  ;;  %v1067_v26 = vadd.f32 %v3660_v59, %v1066_v22  ;;  %3012 = vmatprep.mubr.msk.bf16.mxu0 %vm3406_vm0, %v3405_v1 }
 0x113   : > { %v2914_v27 = vpop.f32.mrf.mxu0  ;;  %v3038_v28 = vpop.f32.mrf.mxu1  ;;  %3136 = vmatprep.mubr.msk.bf16.mxu1 %vm3406_vm0, %v3405_v1 }
 0x114   : > { %1891 = vst.msk [vmem:[%s3672_s12 + $0x1c] sm:$0xf] %vm1883_vm1, %v2693_v23  ;;  %1953 = vst.msk [vmem:[%s3672_s12 + $0x114] sm:$0xf] %vm1883_vm1, %v2755_v24  ;;  %v1281_v29 = vmax.f32 %v819_v25, 0.0  ;;  %v1343_v30 = vmax.f32 %v1067_v26, 0.0 }
 0x115   : > { %v821_v31 = vpop.f32.mrf.mxu0  ;;  %v1069_v32 = vpop.f32.mrf.mxu1 }
 0x116   : > { %v2694_v35 = vpack.c.bf16 %v1281_v29, %v1281_v29  ;;  %v2756_v36 = vpack.c.bf16 %v1343_v30, %v1343_v30  ;;  %v822_v37 = vadd.f32 %v3660_v59, %v821_v31  ;;  %v1070_v38 = vadd.f32 %v3660_v59, %v1069_v32 }
 0x117   : > { %v2915_v39 = vpop.f32.mrf.mxu0  ;;  %v3039_v40 = vpop.f32.mrf.mxu1 }
 0x118   : > { %1892 = vst.msk [vmem:[%s3672_s12 + $0x20] sm:$0xf] %vm1883_vm1, %v2694_v35  ;;  %1954 = vst.msk [vmem:[%s3672_s12 + $0x118] sm:$0xf] %vm1883_vm1, %v2756_v36  ;;  %v1282_v41 = vmax.f32 %v822_v37, 0.0  ;;  %v1344_v42 = vmax.f32 %v1070_v38, 0.0 }
 0x119   : > { %v826_v43 = vpop.f32.mrf.mxu0  ;;  %3013 = vmatmul.mubr.bf16.gmra.mxu0 %v3313_v33  ;;  %v1074_v44 = vpop.f32.mrf.mxu1  ;;  %3137 = vmatmul.mubr.bf16.gmra.mxu1 %v3314_v34 }
 0x11a   : > { %v2695_v45 = vpack.c.bf16 %v1282_v41, %v1282_v41  ;;  %v2757_v46 = vpack.c.bf16 %v1344_v42, %v1344_v42  ;;  %v827_v47 = vadd.f32 %v3660_v59, %v826_v43  ;;  %v1075_v48 = vadd.f32 %v3660_v59, %v1074_v44  ;;  %3016 = vmatprep.mubr.msk.bf16.mxu0 %vm3406_vm0, %v3405_v1 }
 0x11b   : > { %v2918_v49 = vpop.f32.mrf.mxu0  ;;  %v3042_v50 = vpop.f32.mrf.mxu1 }
 0x11c   : > { %1893 = vst.msk [vmem:[%s3672_s12 + $0x24] sm:$0xf] %vm1883_vm1, %v2695_v45  ;;  %1955 = vst.msk [vmem:[%s3672_s12 + $0x11c] sm:$0xf] %vm1883_vm1, %v2757_v46  ;;  %v1283_v51 = vmax.f32 %v827_v47, 0.0  ;;  %v1345_v52 = vmax.f32 %v1075_v48, 0.0 }
 0x11d   : > { %v829_v53 = vpop.f32.mrf.mxu0  ;;  %v1077_v54 = vpop.f32.mrf.mxu1 }
 0x11e   : > { %v2696_v56 = vpack.c.bf16 %v1283_v51, %v1283_v51  ;;  %v2758_v57 = vpack.c.bf16 %v1345_v52, %v1345_v52  ;;  %v830_v58 = vadd.f32 %v3660_v59, %v829_v53  ;;  %v1078_v60 = vadd.f32 %v3660_v59, %v1077_v54 }
 0x11f   : > { %v2919_v1 = vpop.f32.mrf.mxu0  ;;  %v3043_v61 = vpop.f32.mrf.mxu1 }
 0x120   : > { %1894 = vst.msk [vmem:[%s3672_s12 + $0x28] sm:$0xf] %vm1883_vm1, %v2696_v56  ;;  %1956 = vst.msk [vmem:[%s3672_s12 + $0x120] sm:$0xf] %vm1883_vm1, %v2758_v57  ;;  %v1284_v62 = vmax.f32 %v830_v58, 0.0  ;;  %v1346_v63 = vmax.f32 %v1078_v60, 0.0 }
 0x121   : > { %v834_v0 = vpop.f32.mrf.mxu0  ;;  %3017 = vmatmul.mubr.bf16.gmra.mxu0 %v3315_v55  ;;  %v1082_v2 = vpop.f32.mrf.mxu1 }
 0x122   : > { %v2697_v3 = vpack.c.bf16 %v1284_v62, %v1284_v62  ;;  %v2759_v4 = vpack.c.bf16 %v1346_v63, %v1346_v63  ;;  %v835_v5 = vadd.f32 %v3660_v59, %v834_v0  ;;  %v1083_v6 = vadd.f32 %v3660_v59, %v1082_v2 }
 0x123   : > { %v2922_v7 = vpop.f32.mrf.mxu0  ;;  %v3046_v8 = vpop.f32.mrf.mxu1 }
 0x124   : > { %1895 = vst.msk [vmem:[%s3672_s12 + $0x2c] sm:$0xf] %vm1883_vm1, %v2697_v3  ;;  %1957 = vst.msk [vmem:[%s3672_s12 + $0x124] sm:$0xf] %vm1883_vm1, %v2759_v4  ;;  %v1285_v9 = vmax.f32 %v835_v5, 0.0  ;;  %v1347_v10 = vmax.f32 %v1083_v6, 0.0 }
 0x125   : > { %v837_v11 = vpop.f32.mrf.mxu0  ;;  %v1085_v12 = vpop.f32.mrf.mxu1 }
 0x126   : > { %v2698_v13 = vpack.c.bf16 %v1285_v9, %v1285_v9  ;;  %v2760_v14 = vpack.c.bf16 %v1347_v10, %v1347_v10  ;;  %v838_v15 = vadd.f32 %v3660_v59, %v837_v11  ;;  %v1086_v16 = vadd.f32 %v3660_v59, %v1085_v12 }
 0x127   : > { %v2923_v17 = vpop.f32.mrf.mxu0  ;;  %v3047_v18 = vpop.f32.mrf.mxu1 }
 0x128   : > { %1896 = vst.msk [vmem:[%s3672_s12 + $0x30] sm:$0xf] %vm1883_vm1, %v2698_v13  ;;  %1958 = vst.msk [vmem:[%s3672_s12 + $0x128] sm:$0xf] %vm1883_vm1, %v2760_v14  ;;  %v1286_v19 = vmax.f32 %v838_v15, 0.0  ;;  %v1348_v20 = vmax.f32 %v1086_v16, 0.0 }
 0x129   : > { %v842_v21 = vpop.f32.mrf.mxu0  ;;  %v1090_v22 = vpop.f32.mrf.mxu1 }
 0x12a   : > { %v2699_v23 = vpack.c.bf16 %v1286_v19, %v1286_v19  ;;  %v2761_v24 = vpack.c.bf16 %v1348_v20, %v1348_v20  ;;  %v843_v25 = vadd.f32 %v3660_v59, %v842_v21  ;;  %v1091_v26 = vadd.f32 %v3660_v59, %v1090_v22 }
 0x12b   : > { %v2926_v27 = vpop.f32.mrf.mxu0  ;;  %v3050_v28 = vpop.f32.mrf.mxu1 }
 0x12c   : > { %1897 = vst.msk [vmem:[%s3672_s12 + $0x34] sm:$0xf] %vm1883_vm1, %v2699_v23  ;;  %1959 = vst.msk [vmem:[%s3672_s12 + $0x12c] sm:$0xf] %vm1883_vm1, %v2761_v24  ;;  %v1287_v29 = vmax.f32 %v843_v25, 0.0  ;;  %v1349_v30 = vmax.f32 %v1091_v26, 0.0 }
 0x12d   : > { %v845_v31 = vpop.f32.mrf.mxu0  ;;  %v1093_v32 = vpop.f32.mrf.mxu1 }
 0x12e   : > { %v2700_v33 = vpack.c.bf16 %v1287_v29, %v1287_v29  ;;  %v2762_v34 = vpack.c.bf16 %v1349_v30, %v1349_v30  ;;  %v846_v35 = vadd.f32 %v3660_v59, %v845_v31  ;;  %v1094_v36 = vadd.f32 %v3660_v59, %v1093_v32 }
 0x12f   : > { %v2927_v37 = vpop.f32.mrf.mxu0  ;;  %v3051_v38 = vpop.f32.mrf.mxu1 }
 0x130   : > { %1898 = vst.msk [vmem:[%s3672_s12 + $0x38] sm:$0xf] %vm1883_vm1, %v2700_v33  ;;  %1960 = vst.msk [vmem:[%s3672_s12 + $0x130] sm:$0xf] %vm1883_vm1, %v2762_v34  ;;  %v1288_v39 = vmax.f32 %v846_v35, 0.0  ;;  %v1350_v40 = vmax.f32 %v1094_v36, 0.0 }
 0x131   : > { %v850_v41 = vpop.f32.mrf.mxu0  ;;  %v1098_v42 = vpop.f32.mrf.mxu1 }
 0x132   : > { %v2701_v43 = vpack.c.bf16 %v1288_v39, %v1288_v39  ;;  %v2763_v44 = vpack.c.bf16 %v1350_v40, %v1350_v40  ;;  %v851_v45 = vadd.f32 %v3660_v59, %v850_v41  ;;  %v1099_v46 = vadd.f32 %v3660_v59, %v1098_v42 }
 0x133   : > { %v2930_v47 = vpop.f32.mrf.mxu0  ;;  %v3054_v48 = vpop.f32.mrf.mxu1 }
 0x134   : > { %1899 = vst.msk [vmem:[%s3672_s12 + $0x3c] sm:$0xf] %vm1883_vm1, %v2701_v43  ;;  %1961 = vst.msk [vmem:[%s3672_s12 + $0x134] sm:$0xf] %vm1883_vm1, %v2763_v44  ;;  %v1289_v49 = vmax.f32 %v851_v45, 0.0  ;;  %v1351_v50 = vmax.f32 %v1099_v46, 0.0 }
 0x135   : > { %v853_v51 = vpop.f32.mrf.mxu0  ;;  %v1101_v52 = vpop.f32.mrf.mxu1 }
 0x136   : > { %v2702_v53 = vpack.c.bf16 %v1289_v49, %v1289_v49  ;;  %v2764_v54 = vpack.c.bf16 %v1351_v50, %v1351_v50  ;;  %v854_v55 = vadd.f32 %v3660_v59, %v853_v51  ;;  %v1102_v56 = vadd.f32 %v3660_v59, %v1101_v52 }
 0x137   : > { %v2931_v57 = vpop.f32.mrf.mxu0  ;;  %v3055_v58 = vpop.f32.mrf.mxu1 }
 0x138   : > { %1900 = vst.msk [vmem:[%s3672_s12 + $0x40] sm:$0xf] %vm1883_vm1, %v2702_v53  ;;  %1962 = vst.msk [vmem:[%s3672_s12 + $0x138] sm:$0xf] %vm1883_vm1, %v2764_v54  ;;  %v1290_v60 = vmax.f32 %v854_v55, 0.0  ;;  %v1352_v1 = vmax.f32 %v1102_v56, 0.0 }
 0x139   : > { %v858_v61 = vpop.f32.mrf.mxu0  ;;  %v1106_v62 = vpop.f32.mrf.mxu1 }
 0x13a   : > { %v2703_v63 = vpack.c.bf16 %v1290_v60, %v1290_v60  ;;  %v2765_v0 = vpack.c.bf16 %v1352_v1, %v1352_v1  ;;  %v859_v2 = vadd.f32 %v3660_v59, %v858_v61  ;;  %v1107_v3 = vadd.f32 %v3660_v59, %v1106_v62 }
 0x13b   : > { %v2934_v4 = vpop.f32.mrf.mxu0  ;;  %v3058_v5 = vpop.f32.mrf.mxu1 }
 0x13c   : > { %1901 = vst.msk [vmem:[%s3672_s12 + $0x44] sm:$0xf] %vm1883_vm1, %v2703_v63  ;;  %1963 = vst.msk [vmem:[%s3672_s12 + $0x13c] sm:$0xf] %vm1883_vm1, %v2765_v0  ;;  %v1291_v6 = vmax.f32 %v859_v2, 0.0  ;;  %v1353_v7 = vmax.f32 %v1107_v3, 0.0 }
 0x13d   : > { %v861_v8 = vpop.f32.mrf.mxu0  ;;  %v1109_v9 = vpop.f32.mrf.mxu1 }
 0x13e   : > { %v2704_v10 = vpack.c.bf16 %v1291_v6, %v1291_v6  ;;  %v2766_v11 = vpack.c.bf16 %v1353_v7, %v1353_v7  ;;  %v862_v12 = vadd.f32 %v3660_v59, %v861_v8  ;;  %v1110_v13 = vadd.f32 %v3660_v59, %v1109_v9 }
 0x13f   : > { %v2935_v14 = vpop.f32.mrf.mxu0  ;;  %v3059_v15 = vpop.f32.mrf.mxu1 }
 0x140   : > { %1902 = vst.msk [vmem:[%s3672_s12 + $0x48] sm:$0xf] %vm1883_vm1, %v2704_v10  ;;  %1964 = vst.msk [vmem:[%s3672_s12 + $0x140] sm:$0xf] %vm1883_vm1, %v2766_v11  ;;  %v1292_v16 = vmax.f32 %v862_v12, 0.0  ;;  %v1354_v17 = vmax.f32 %v1110_v13, 0.0 }
 0x141   : > { %v866_v18 = vpop.f32.mrf.mxu0  ;;  %v1114_v19 = vpop.f32.mrf.mxu1 }
 0x142   : > { %v2705_v20 = vpack.c.bf16 %v1292_v16, %v1292_v16  ;;  %v2767_v21 = vpack.c.bf16 %v1354_v17, %v1354_v17  ;;  %v867_v22 = vadd.f32 %v3660_v59, %v866_v18  ;;  %v1115_v23 = vadd.f32 %v3660_v59, %v1114_v19 }
 0x143   : > { %v2938_v24 = vpop.f32.mrf.mxu0  ;;  %v3062_v25 = vpop.f32.mrf.mxu1 }
 0x144   : > { %1903 = vst.msk [vmem:[%s3672_s12 + $0x4c] sm:$0xf] %vm1883_vm1, %v2705_v20  ;;  %1965 = vst.msk [vmem:[%s3672_s12 + $0x144] sm:$0xf] %vm1883_vm1, %v2767_v21  ;;  %v1293_v26 = vmax.f32 %v867_v22, 0.0  ;;  %v1355_v27 = vmax.f32 %v1115_v23, 0.0 }
 0x145   : > { %v869_v28 = vpop.f32.mrf.mxu0  ;;  %v1117_v29 = vpop.f32.mrf.mxu1 }
 0x146   : > { %v2706_v30 = vpack.c.bf16 %v1293_v26, %v1293_v26  ;;  %v2768_v31 = vpack.c.bf16 %v1355_v27, %v1355_v27  ;;  %v870_v32 = vadd.f32 %v3660_v59, %v869_v28  ;;  %v1118_v33 = vadd.f32 %v3660_v59, %v1117_v29 }
 0x147   : > { %v2939_v34 = vpop.f32.mrf.mxu0  ;;  %v3063_v35 = vpop.f32.mrf.mxu1 }
 0x148   : > { %1904 = vst.msk [vmem:[%s3672_s12 + $0x50] sm:$0xf] %vm1883_vm1, %v2706_v30  ;;  %1966 = vst.msk [vmem:[%s3672_s12 + $0x148] sm:$0xf] %vm1883_vm1, %v2768_v31  ;;  %v1294_v36 = vmax.f32 %v870_v32, 0.0  ;;  %v1356_v37 = vmax.f32 %v1118_v33, 0.0 }
 0x149   : > { %v874_v38 = vpop.f32.mrf.mxu0  ;;  %v1122_v39 = vpop.f32.mrf.mxu1 }
 0x14a   : > { %v2707_v40 = vpack.c.bf16 %v1294_v36, %v1294_v36  ;;  %v2769_v41 = vpack.c.bf16 %v1356_v37, %v1356_v37  ;;  %v875_v42 = vadd.f32 %v3660_v59, %v874_v38  ;;  %v1123_v43 = vadd.f32 %v3660_v59, %v1122_v39 }
 0x14b   : > { %v2942_v44 = vpop.f32.mrf.mxu0  ;;  %v3066_v45 = vpop.f32.mrf.mxu1 }
 0x14c   : > { %1905 = vst.msk [vmem:[%s3672_s12 + $0x54] sm:$0xf] %vm1883_vm1, %v2707_v40  ;;  %1967 = vst.msk [vmem:[%s3672_s12 + $0x14c] sm:$0xf] %vm1883_vm1, %v2769_v41  ;;  %v1295_v46 = vmax.f32 %v875_v42, 0.0  ;;  %v1357_v47 = vmax.f32 %v1123_v43, 0.0 }
 0x14d   : > { %v877_v48 = vpop.f32.mrf.mxu0  ;;  %v1125_v49 = vpop.f32.mrf.mxu1 }
 0x14e   : > { %v2708_v50 = vpack.c.bf16 %v1295_v46, %v1295_v46  ;;  %v2770_v51 = vpack.c.bf16 %v1357_v47, %v1357_v47  ;;  %v878_v52 = vadd.f32 %v3660_v59, %v877_v48  ;;  %v1126_v53 = vadd.f32 %v3660_v59, %v1125_v49 }
 0x14f   : > { %v2943_v54 = vpop.f32.mrf.mxu0  ;;  %v3067_v55 = vpop.f32.mrf.mxu1 }
 0x150   : > { %1906 = vst.msk [vmem:[%s3672_s12 + $0x58] sm:$0xf] %vm1883_vm1, %v2708_v50  ;;  %1968 = vst.msk [vmem:[%s3672_s12 + $0x150] sm:$0xf] %vm1883_vm1, %v2770_v51  ;;  %v1296_v56 = vmax.f32 %v878_v52, 0.0  ;;  %v1358_v57 = vmax.f32 %v1126_v53, 0.0 }
 0x151   : > { %v882_v58 = vpop.f32.mrf.mxu0  ;;  %v1130_v60 = vpop.f32.mrf.mxu1 }
 0x152   : > { %v2709_v1 = vpack.c.bf16 %v1296_v56, %v1296_v56  ;;  %v2771_v61 = vpack.c.bf16 %v1358_v57, %v1358_v57  ;;  %v883_v62 = vadd.f32 %v3660_v59, %v882_v58  ;;  %v1131_v63 = vadd.f32 %v3660_v59, %v1130_v60 }
 0x153   : > { %v2946_v0 = vpop.f32.mrf.mxu0  ;;  %v3070_v2 = vpop.f32.mrf.mxu1 }
 0x154   : > { %1907 = vst.msk [vmem:[%s3672_s12 + $0x5c] sm:$0xf] %vm1883_vm1, %v2709_v1  ;;  %1969 = vst.msk [vmem:[%s3672_s12 + $0x154] sm:$0xf] %vm1883_vm1, %v2771_v61  ;;  %v1297_v3 = vmax.f32 %v883_v62, 0.0  ;;  %v1359_v4 = vmax.f32 %v1131_v63, 0.0 }
 0x155   : > { %v885_v5 = vpop.f32.mrf.mxu0  ;;  %v1133_v6 = vpop.f32.mrf.mxu1 }
 0x156   : > { %v2710_v7 = vpack.c.bf16 %v1297_v3, %v1297_v3  ;;  %v2772_v8 = vpack.c.bf16 %v1359_v4, %v1359_v4  ;;  %v886_v9 = vadd.f32 %v3660_v59, %v885_v5  ;;  %v1134_v10 = vadd.f32 %v3660_v59, %v1133_v6 }
 0x157   : > { %v2947_v11 = vpop.f32.mrf.mxu0  ;;  %v3071_v12 = vpop.f32.mrf.mxu1 }
 0x158   : > { %1908 = vst.msk [vmem:[%s3672_s12 + $0x60] sm:$0xf] %vm1883_vm1, %v2710_v7  ;;  %1970 = vst.msk [vmem:[%s3672_s12 + $0x158] sm:$0xf] %vm1883_vm1, %v2772_v8  ;;  %v1298_v13 = vmax.f32 %v886_v9, 0.0  ;;  %v1360_v14 = vmax.f32 %v1134_v10, 0.0 }
 0x159   : > { %v890_v15 = vpop.f32.mrf.mxu0  ;;  %v1138_v16 = vpop.f32.mrf.mxu1 }
 0x15a   : > { %v2711_v17 = vpack.c.bf16 %v1298_v13, %v1298_v13  ;;  %v2773_v18 = vpack.c.bf16 %v1360_v14, %v1360_v14  ;;  %v891_v19 = vadd.f32 %v3660_v59, %v890_v15  ;;  %v1139_v20 = vadd.f32 %v3660_v59, %v1138_v16 }
 0x15b   : > { %v2950_v21 = vpop.f32.mrf.mxu0  ;;  %v3074_v22 = vpop.f32.mrf.mxu1 }
 0x15c   : > { %1909 = vst.msk [vmem:[%s3672_s12 + $0x64] sm:$0xf] %vm1883_vm1, %v2711_v17  ;;  %1971 = vst.msk [vmem:[%s3672_s12 + $0x15c] sm:$0xf] %vm1883_vm1, %v2773_v18  ;;  %v1299_v23 = vmax.f32 %v891_v19, 0.0  ;;  %v1361_v24 = vmax.f32 %v1139_v20, 0.0 }
 0x15d   : > { %v893_v25 = vpop.f32.mrf.mxu0  ;;  %v1141_v26 = vpop.f32.mrf.mxu1 }
 0x15e   : > { %v2712_v27 = vpack.c.bf16 %v1299_v23, %v1299_v23  ;;  %v2774_v28 = vpack.c.bf16 %v1361_v24, %v1361_v24  ;;  %v894_v29 = vadd.f32 %v3660_v59, %v893_v25  ;;  %v1142_v30 = vadd.f32 %v3660_v59, %v1141_v26 }
 0x15f   : > { %v2951_v31 = vpop.f32.mrf.mxu0  ;;  %v3075_v32 = vpop.f32.mrf.mxu1 }
 0x160   : > { %1910 = vst.msk [vmem:[%s3672_s12 + $0x68] sm:$0xf] %vm1883_vm1, %v2712_v27  ;;  %1972 = vst.msk [vmem:[%s3672_s12 + $0x160] sm:$0xf] %vm1883_vm1, %v2774_v28  ;;  %v1300_v33 = vmax.f32 %v894_v29, 0.0  ;;  %v1362_v34 = vmax.f32 %v1142_v30, 0.0 }
 0x161   : > { %v898_v35 = vpop.f32.mrf.mxu0  ;;  %v1146_v36 = vpop.f32.mrf.mxu1 }
 0x162   : > { %v2713_v37 = vpack.c.bf16 %v1300_v33, %v1300_v33  ;;  %v2775_v38 = vpack.c.bf16 %v1362_v34, %v1362_v34  ;;  %v899_v39 = vadd.f32 %v3660_v59, %v898_v35  ;;  %v1147_v40 = vadd.f32 %v3660_v59, %v1146_v36 }
 0x163   : > { %v2954_v41 = vpop.f32.mrf.mxu0  ;;  %v3078_v42 = vpop.f32.mrf.mxu1 }
 0x164   : > { %1911 = vst.msk [vmem:[%s3672_s12 + $0x6c] sm:$0xf] %vm1883_vm1, %v2713_v37  ;;  %1973 = vst.msk [vmem:[%s3672_s12 + $0x164] sm:$0xf] %vm1883_vm1, %v2775_v38  ;;  %v1301_v43 = vmax.f32 %v899_v39, 0.0  ;;  %v1363_v44 = vmax.f32 %v1147_v40, 0.0 }
 0x165   : > { %v901_v45 = vpop.f32.mrf.mxu0  ;;  %v1149_v46 = vpop.f32.mrf.mxu1 }
 0x166   : > { %v2714_v47 = vpack.c.bf16 %v1301_v43, %v1301_v43  ;;  %v2776_v48 = vpack.c.bf16 %v1363_v44, %v1363_v44  ;;  %v902_v49 = vadd.f32 %v3660_v59, %v901_v45  ;;  %v1150_v50 = vadd.f32 %v3660_v59, %v1149_v46 }
 0x167   : > { %v2955_v51 = vpop.f32.mrf.mxu0  ;;  %v3079_v52 = vpop.f32.mrf.mxu1 }
 0x168   : > { %1912 = vst.msk [vmem:[%s3672_s12 + $0x70] sm:$0xf] %vm1883_vm1, %v2714_v47  ;;  %1974 = vst.msk [vmem:[%s3672_s12 + $0x168] sm:$0xf] %vm1883_vm1, %v2776_v48  ;;  %v1302_v53 = vmax.f32 %v902_v49, 0.0  ;;  %v1364_v54 = vmax.f32 %v1150_v50, 0.0 }
 0x169   : > { %v906_v55 = vpop.f32.mrf.mxu0  ;;  %v1154_v56 = vpop.f32.mrf.mxu1 }
 0x16a   : > { %v2715_v57 = vpack.c.bf16 %v1302_v53, %v1302_v53  ;;  %v2777_v58 = vpack.c.bf16 %v1364_v54, %v1364_v54  ;;  %v907_v60 = vadd.f32 %v3660_v59, %v906_v55  ;;  %v1155_v1 = vadd.f32 %v3660_v59, %v1154_v56 }
 0x16b   : > { %v2958_v61 = vpop.f32.mrf.mxu0  ;;  %v3082_v62 = vpop.f32.mrf.mxu1 }
 0x16c   : > { %1913 = vst.msk [vmem:[%s3672_s12 + $0x74] sm:$0xf] %vm1883_vm1, %v2715_v57  ;;  %1975 = vst.msk [vmem:[%s3672_s12 + $0x16c] sm:$0xf] %vm1883_vm1, %v2777_v58  ;;  %v1303_v63 = vmax.f32 %v907_v60, 0.0  ;;  %v1365_v0 = vmax.f32 %v1155_v1, 0.0 }
 0x16d   : > { %v909_v2 = vpop.f32.mrf.mxu0  ;;  %v1157_v3 = vpop.f32.mrf.mxu1 }
 0x16e   : > { %v2716_v4 = vpack.c.bf16 %v1303_v63, %v1303_v63  ;;  %v2778_v5 = vpack.c.bf16 %v1365_v0, %v1365_v0  ;;  %v910_v6 = vadd.f32 %v3660_v59, %v909_v2  ;;  %v1158_v7 = vadd.f32 %v3660_v59, %v1157_v3 }
 0x16f   : > { %v2959_v8 = vpop.f32.mrf.mxu0  ;;  %v3083_v9 = vpop.f32.mrf.mxu1 }
 0x170   : > { %1914 = vst.msk [vmem:[%s3672_s12 + $0x78] sm:$0xf] %vm1883_vm1, %v2716_v4  ;;  %1976 = vst.msk [vmem:[%s3672_s12 + $0x170] sm:$0xf] %vm1883_vm1, %v2778_v5  ;;  %v1304_v10 = vmax.f32 %v910_v6, 0.0  ;;  %v1366_v11 = vmax.f32 %v1158_v7, 0.0 }
 0x171   : > { %v914_v12 = vpop.f32.mrf.mxu0  ;;  %v1162_v13 = vpop.f32.mrf.mxu1 }
 0x172   : > { %v2717_v14 = vpack.c.bf16 %v1304_v10, %v1304_v10  ;;  %v2779_v15 = vpack.c.bf16 %v1366_v11, %v1366_v11  ;;  %v915_v16 = vadd.f32 %v3660_v59, %v914_v12  ;;  %v1163_v17 = vadd.f32 %v3660_v59, %v1162_v13 }
 0x173   : > { %v2962_v18 = vpop.f32.mrf.mxu0  ;;  %v3086_v19 = vpop.f32.mrf.mxu1 }
 0x174   : > { %1915 = vst.msk [vmem:[%s3672_s12 + $0x7c] sm:$0xf] %vm1883_vm1, %v2717_v14  ;;  %1977 = vst.msk [vmem:[%s3672_s12 + $0x174] sm:$0xf] %vm1883_vm1, %v2779_v15  ;;  %v1305_v20 = vmax.f32 %v915_v16, 0.0  ;;  %v1367_v21 = vmax.f32 %v1163_v17, 0.0 }
 0x175   : > { %v917_v22 = vpop.f32.mrf.mxu0  ;;  %v1165_v23 = vpop.f32.mrf.mxu1 }
 0x176   : > { %v2718_v24 = vpack.c.bf16 %v1305_v20, %v1305_v20  ;;  %v2780_v25 = vpack.c.bf16 %v1367_v21, %v1367_v21  ;;  %v918_v26 = vadd.f32 %v3660_v59, %v917_v22  ;;  %v1166_v27 = vadd.f32 %v3660_v59, %v1165_v23 }
 0x177   : > { %v2963_v28 = vpop.f32.mrf.mxu0  ;;  %v3087_v29 = vpop.f32.mrf.mxu1 }
 0x178   : > { %1916 = vst.msk [vmem:[%s3672_s12 + $0x80] sm:$0xf] %vm1883_vm1, %v2718_v24  ;;  %1978 = vst.msk [vmem:[%s3672_s12 + $0x178] sm:$0xf] %vm1883_vm1, %v2780_v25  ;;  %v1306_v30 = vmax.f32 %v918_v26, 0.0  ;;  %v1368_v31 = vmax.f32 %v1166_v27, 0.0 }
 0x179   : > { %v922_v32 = vpop.f32.mrf.mxu0  ;;  %v1170_v33 = vpop.f32.mrf.mxu1 }
 0x17a   : > { %v2719_v34 = vpack.c.bf16 %v1306_v30, %v1306_v30  ;;  %v2781_v35 = vpack.c.bf16 %v1368_v31, %v1368_v31  ;;  %v923_v36 = vadd.f32 %v3660_v59, %v922_v32  ;;  %v1171_v37 = vadd.f32 %v3660_v59, %v1170_v33  ;;  %v3936_v33 = vld [vmem:[%s4269_s2] ss:$0 sm:$0xff] }
 0x17b   : > { %v2966_v38 = vpop.f32.mrf.mxu0  ;;  %v3090_v39 = vpop.f32.mrf.mxu1 }
 0x17c   : > { %1917 = vst.msk [vmem:[%s3672_s12 + $0x84] sm:$0xf] %vm1883_vm1, %v2719_v34  ;;  %1979 = vst.msk [vmem:[%s3672_s12 + $0x17c] sm:$0xf] %vm1883_vm1, %v2781_v35  ;;  %v1307_v40 = vmax.f32 %v923_v36, 0.0  ;;  %v1369_v41 = vmax.f32 %v1171_v37, 0.0 }
 0x17d   : > { %v925_v42 = vpop.f32.mrf.mxu0  ;;  %v1173_v43 = vpop.f32.mrf.mxu1 }
 0x17e   : > { %v2720_v44 = vpack.c.bf16 %v1307_v40, %v1307_v40  ;;  %v2782_v45 = vpack.c.bf16 %v1369_v41, %v1369_v41  ;;  %v926_v46 = vadd.f32 %v3660_v59, %v925_v42  ;;  %v1174_v47 = vadd.f32 %v3660_v59, %v1173_v43 }
 0x17f   : > { %v2967_v48 = vpop.f32.mrf.mxu0  ;;  %v3091_v49 = vpop.f32.mrf.mxu1 }
 0x180   : > { %1918 = vst.msk [vmem:[%s3672_s12 + $0x88] sm:$0xf] %vm1883_vm1, %v2720_v44  ;;  %1980 = vst.msk [vmem:[%s3672_s12 + $0x180] sm:$0xf] %vm1883_vm1, %v2782_v45  ;;  %v1308_v50 = vmax.f32 %v926_v46, 0.0  ;;  %v1370_v51 = vmax.f32 %v1174_v47, 0.0 }
 0x181   : > { %v930_v52 = vpop.f32.mrf.mxu0  ;;  %v1178_v53 = vpop.f32.mrf.mxu1 }
 0x182   : > { %v2721_v54 = vpack.c.bf16 %v1308_v50, %v1308_v50  ;;  %v2783_v55 = vpack.c.bf16 %v1370_v51, %v1370_v51  ;;  %v931_v56 = vadd.f32 %v3660_v59, %v930_v52  ;;  %v1179_v57 = vadd.f32 %v3660_v59, %v1178_v53 }
 0x183   : > { %v2970_v58 = vpop.f32.mrf.mxu0  ;;  %v3094_v60 = vpop.f32.mrf.mxu1 }
 0x184   : > { %1919 = vst.msk [vmem:[%s3672_s12 + $0x8c] sm:$0xf] %vm1883_vm1, %v2721_v54  ;;  %1981 = vst.msk [vmem:[%s3672_s12 + $0x184] sm:$0xf] %vm1883_vm1, %v2783_v55  ;;  %v1309_v1 = vmax.f32 %v931_v56, 0.0  ;;  %v1371_v61 = vmax.f32 %v1179_v57, 0.0 }
 0x185   : > { %v933_v62 = vpop.f32.mrf.mxu0  ;;  %v1181_v63 = vpop.f32.mrf.mxu1 }
 0x186   : > { %v2722_v0 = vpack.c.bf16 %v1309_v1, %v1309_v1  ;;  %v2784_v2 = vpack.c.bf16 %v1371_v61, %v1371_v61  ;;  %v934_v3 = vadd.f32 %v3660_v59, %v933_v62  ;;  %v1182_v4 = vadd.f32 %v3660_v59, %v1181_v63 }
 0x187   : > { %v2971_v5 = vpop.f32.mrf.mxu0  ;;  %v3095_v6 = vpop.f32.mrf.mxu1 }
 0x188   : > { %1920 = vst.msk [vmem:[%s3672_s12 + $0x90] sm:$0xf] %vm1883_vm1, %v2722_v0  ;;  %1982 = vst.msk [vmem:[%s3672_s12 + $0x188] sm:$0xf] %vm1883_vm1, %v2784_v2  ;;  %v1310_v7 = vmax.f32 %v934_v3, 0.0  ;;  %v1372_v8 = vmax.f32 %v1182_v4, 0.0 }
 0x189   : > { %v938_v9 = vpop.f32.mrf.mxu0  ;;  %v1186_v10 = vpop.f32.mrf.mxu1 }
 0x18a   : > { %v2723_v11 = vpack.c.bf16 %v1310_v7, %v1310_v7  ;;  %v2785_v12 = vpack.c.bf16 %v1372_v8, %v1372_v8  ;;  %v939_v13 = vadd.f32 %v3660_v59, %v938_v9  ;;  %v1187_v14 = vadd.f32 %v3660_v59, %v1186_v10 }
 0x18b   : > { %v2974_v15 = vpop.f32.mrf.mxu0  ;;  %v3098_v16 = vpop.f32.mrf.mxu1 }
 0x18c   : > { %1921 = vst.msk [vmem:[%s3672_s12 + $0x94] sm:$0xf] %vm1883_vm1, %v2723_v11  ;;  %1983 = vst.msk [vmem:[%s3672_s12 + $0x18c] sm:$0xf] %vm1883_vm1, %v2785_v12  ;;  %v1311_v17 = vmax.f32 %v939_v13, 0.0  ;;  %v1373_v18 = vmax.f32 %v1187_v14, 0.0 }
 0x18d   : > { %v941_v19 = vpop.f32.mrf.mxu0  ;;  %v1189_v20 = vpop.f32.mrf.mxu1 }
 0x18e   : > { %v2724_v21 = vpack.c.bf16 %v1311_v17, %v1311_v17  ;;  %v2786_v22 = vpack.c.bf16 %v1373_v18, %v1373_v18  ;;  %v942_v23 = vadd.f32 %v3660_v59, %v941_v19  ;;  %v1190_v24 = vadd.f32 %v3660_v59, %v1189_v20 }
 0x18f   : > { %v2975_v25 = vpop.f32.mrf.mxu0  ;;  %v3099_v26 = vpop.f32.mrf.mxu1 }
 0x190   : > { %1922 = vst.msk [vmem:[%s3672_s12 + $0x98] sm:$0xf] %vm1883_vm1, %v2724_v21  ;;  %1984 = vst.msk [vmem:[%s3672_s12 + $0x190] sm:$0xf] %vm1883_vm1, %v2786_v22  ;;  %v1312_v27 = vmax.f32 %v942_v23, 0.0  ;;  %v1374_v28 = vmax.f32 %v1190_v24, 0.0 }
 0x191   : > { %v946_v29 = vpop.f32.mrf.mxu0  ;;  %v1194_v30 = vpop.f32.mrf.mxu1 }
 0x192   : > { %v2725_v31 = vpack.c.bf16 %v1312_v27, %v1312_v27  ;;  %v2787_v32 = vpack.c.bf16 %v1374_v28, %v1374_v28  ;;  %v947_v59 = vadd.f32 %v3936_v33, %v946_v29  ;;  %v1195_v34 = vadd.f32 %v3936_v33, %v1194_v30 }
 0x193   : > { %v2978_v35 = vpop.f32.mrf.mxu0  ;;  %v3102_v36 = vpop.f32.mrf.mxu1 }
 0x194   : > { %1923 = vst.msk [vmem:[%s3672_s12 + $0x9c] sm:$0xf] %vm1883_vm1, %v2725_v31  ;;  %1985 = vst.msk [vmem:[%s3672_s12 + $0x194] sm:$0xf] %vm1883_vm1, %v2787_v32  ;;  %v1313_v37 = vmax.f32 %v947_v59, 0.0  ;;  %v1375_v38 = vmax.f32 %v1195_v34, 0.0 }
 0x195   : > { %v949_v39 = vpop.f32.mrf.mxu0  ;;  %v1197_v40 = vpop.f32.mrf.mxu1 }
 0x196   : > { %v2726_v41 = vpack.c.bf16 %v1313_v37, %v1313_v37  ;;  %v2788_v42 = vpack.c.bf16 %v1375_v38, %v1375_v38  ;;  %v950_v43 = vadd.f32 %v3936_v33, %v949_v39  ;;  %v1198_v44 = vadd.f32 %v3936_v33, %v1197_v40 }
 0x197   : > { %v2979_v45 = vpop.f32.mrf.mxu0  ;;  %v3103_v46 = vpop.f32.mrf.mxu1 }
 0x198   : > { %1924 = vst.msk [vmem:[%s3672_s12 + $0xa0] sm:$0xf] %vm1883_vm1, %v2726_v41  ;;  %1986 = vst.msk [vmem:[%s3672_s12 + $0x198] sm:$0xf] %vm1883_vm1, %v2788_v42  ;;  %v1314_v47 = vmax.f32 %v950_v43, 0.0  ;;  %v1376_v48 = vmax.f32 %v1198_v44, 0.0 }
 0x199   : > { %v954_v49 = vpop.f32.mrf.mxu0  ;;  %v1202_v50 = vpop.f32.mrf.mxu1 }
 0x19a   : > { %v2727_v51 = vpack.c.bf16 %v1314_v47, %v1314_v47  ;;  %v2789_v52 = vpack.c.bf16 %v1376_v48, %v1376_v48  ;;  %v955_v53 = vadd.f32 %v3936_v33, %v954_v49  ;;  %v1203_v54 = vadd.f32 %v3936_v33, %v1202_v50 }
 0x19b   : > { %v2982_v55 = vpop.f32.mrf.mxu0  ;;  %v3106_v56 = vpop.f32.mrf.mxu1 }
 0x19c   : > { %1925 = vst.msk [vmem:[%s3672_s12 + $0xa4] sm:$0xf] %vm1883_vm1, %v2727_v51  ;;  %1987 = vst.msk [vmem:[%s3672_s12 + $0x19c] sm:$0xf] %vm1883_vm1, %v2789_v52  ;;  %v1315_v57 = vmax.f32 %v955_v53, 0.0  ;;  %v1377_v58 = vmax.f32 %v1203_v54, 0.0 }
 0x19d   : > { %v957_v60 = vpop.f32.mrf.mxu0  ;;  %v1205_v1 = vpop.f32.mrf.mxu1 }
 0x19e   : > { %v2728_v61 = vpack.c.bf16 %v1315_v57, %v1315_v57  ;;  %v2790_v62 = vpack.c.bf16 %v1377_v58, %v1377_v58  ;;  %v958_v63 = vadd.f32 %v3936_v33, %v957_v60  ;;  %v1206_v0 = vadd.f32 %v3936_v33, %v1205_v1 }
 0x19f   : > { %v2983_v2 = vpop.f32.mrf.mxu0  ;;  %v3107_v3 = vpop.f32.mrf.mxu1 }
 0x1a0   : > { %1926 = vst.msk [vmem:[%s3672_s12 + $0xa8] sm:$0xf] %vm1883_vm1, %v2728_v61  ;;  %1988 = vst.msk [vmem:[%s3672_s12 + $0x1a0] sm:$0xf] %vm1883_vm1, %v2790_v62  ;;  %v1316_v4 = vmax.f32 %v958_v63, 0.0  ;;  %v1378_v5 = vmax.f32 %v1206_v0, 0.0 }
 0x1a1   : > { %v962_v6 = vpop.f32.mrf.mxu0  ;;  %v1210_v7 = vpop.f32.mrf.mxu1 }
 0x1a2   : > { %v2729_v8 = vpack.c.bf16 %v1316_v4, %v1316_v4  ;;  %v2791_v9 = vpack.c.bf16 %v1378_v5, %v1378_v5  ;;  %v963_v10 = vadd.f32 %v3936_v33, %v962_v6  ;;  %v1211_v11 = vadd.f32 %v3936_v33, %v1210_v7 }
 0x1a3   : > { %v2986_v12 = vpop.f32.mrf.mxu0  ;;  %v3110_v13 = vpop.f32.mrf.mxu1 }
 0x1a4   : > { %1927 = vst.msk [vmem:[%s3672_s12 + $0xac] sm:$0xf] %vm1883_vm1, %v2729_v8  ;;  %1989 = vst.msk [vmem:[%s3672_s12 + $0x1a4] sm:$0xf] %vm1883_vm1, %v2791_v9  ;;  %v1317_v14 = vmax.f32 %v963_v10, 0.0  ;;  %v1379_v15 = vmax.f32 %v1211_v11, 0.0 }
 0x1a5   : > { %v965_v16 = vpop.f32.mrf.mxu0  ;;  %v1213_v17 = vpop.f32.mrf.mxu1 }
 0x1a6   : > { %v2730_v18 = vpack.c.bf16 %v1317_v14, %v1317_v14  ;;  %v2792_v19 = vpack.c.bf16 %v1379_v15, %v1379_v15  ;;  %v966_v20 = vadd.f32 %v3936_v33, %v965_v16  ;;  %v1214_v21 = vadd.f32 %v3936_v33, %v1213_v17 }
 0x1a7   : > { %v2987_v22 = vpop.f32.mrf.mxu0  ;;  %v3111_v23 = vpop.f32.mrf.mxu1 }
 0x1a8   : > { %1928 = vst.msk [vmem:[%s3672_s12 + $0xb0] sm:$0xf] %vm1883_vm1, %v2730_v18  ;;  %1990 = vst.msk [vmem:[%s3672_s12 + $0x1a8] sm:$0xf] %vm1883_vm1, %v2792_v19  ;;  %v1318_v24 = vmax.f32 %v966_v20, 0.0  ;;  %v1380_v25 = vmax.f32 %v1214_v21, 0.0 }
 0x1a9   : > { %v970_v26 = vpop.f32.mrf.mxu0  ;;  %v1218_v27 = vpop.f32.mrf.mxu1 }
 0x1aa   : > { %v2731_v28 = vpack.c.bf16 %v1318_v24, %v1318_v24  ;;  %v2793_v29 = vpack.c.bf16 %v1380_v25, %v1380_v25  ;;  %v971_v30 = vadd.f32 %v3936_v33, %v970_v26  ;;  %v1219_v31 = vadd.f32 %v3936_v33, %v1218_v27 }
 0x1ab   : > { %v2990_v32 = vpop.f32.mrf.mxu0  ;;  %v3114_v59 = vpop.f32.mrf.mxu1 }
 0x1ac   : > { %1929 = vst.msk [vmem:[%s3672_s12 + $0xb4] sm:$0xf] %vm1883_vm1, %v2731_v28  ;;  %1991 = vst.msk [vmem:[%s3672_s12 + $0x1ac] sm:$0xf] %vm1883_vm1, %v2793_v29  ;;  %v1319_v34 = vmax.f32 %v971_v30, 0.0  ;;  %v1381_v35 = vmax.f32 %v1219_v31, 0.0 }
 0x1ad   : > { %v973_v36 = vpop.f32.mrf.mxu0  ;;  %v1221_v37 = vpop.f32.mrf.mxu1 }
 0x1ae   : > { %v2732_v38 = vpack.c.bf16 %v1319_v34, %v1319_v34  ;;  %v2794_v39 = vpack.c.bf16 %v1381_v35, %v1381_v35  ;;  %v974_v40 = vadd.f32 %v3936_v33, %v973_v36  ;;  %v1222_v41 = vadd.f32 %v3936_v33, %v1221_v37 }
 0x1af   : > { %v2991_v42 = vpop.f32.mrf.mxu0  ;;  %v3115_v43 = vpop.f32.mrf.mxu1 }
 0x1b0   : > { %1930 = vst.msk [vmem:[%s3672_s12 + $0xb8] sm:$0xf] %vm1883_vm1, %v2732_v38  ;;  %1992 = vst.msk [vmem:[%s3672_s12 + $0x1b0] sm:$0xf] %vm1883_vm1, %v2794_v39  ;;  %v1320_v44 = vmax.f32 %v974_v40, 0.0  ;;  %v1382_v45 = vmax.f32 %v1222_v41, 0.0 }
 0x1b1   : > { %v978_v46 = vpop.f32.mrf.mxu0  ;;  %v1226_v47 = vpop.f32.mrf.mxu1 }
 0x1b2   : > { %v2733_v48 = vpack.c.bf16 %v1320_v44, %v1320_v44  ;;  %v2795_v49 = vpack.c.bf16 %v1382_v45, %v1382_v45  ;;  %v979_v50 = vadd.f32 %v3936_v33, %v978_v46  ;;  %v1227_v51 = vadd.f32 %v3936_v33, %v1226_v47 }
 0x1b3   : > { %v2994_v52 = vpop.f32.mrf.mxu0  ;;  %v3118_v53 = vpop.f32.mrf.mxu1 }
 0x1b4   : > { %1931 = vst.msk [vmem:[%s3672_s12 + $0xbc] sm:$0xf] %vm1883_vm1, %v2733_v48  ;;  %1993 = vst.msk [vmem:[%s3672_s12 + $0x1b4] sm:$0xf] %vm1883_vm1, %v2795_v49  ;;  %v1321_v54 = vmax.f32 %v979_v50, 0.0  ;;  %v1383_v55 = vmax.f32 %v1227_v51, 0.0 }
 0x1b5   : > { %v981_v56 = vpop.f32.mrf.mxu0  ;;  %v1229_v57 = vpop.f32.mrf.mxu1 }
 0x1b6   : > { %v2734_v58 = vpack.c.bf16 %v1321_v54, %v1321_v54  ;;  %v2796_v60 = vpack.c.bf16 %v1383_v55, %v1383_v55  ;;  %v982_v1 = vadd.f32 %v3936_v33, %v981_v56  ;;  %v1230_v61 = vadd.f32 %v3936_v33, %v1229_v57 }
 0x1b7   : > { %v2995_v62 = vpop.f32.mrf.mxu0  ;;  %v3119_v63 = vpop.f32.mrf.mxu1 }
 0x1b8   : > { %1932 = vst.msk [vmem:[%s3672_s12 + $0xc0] sm:$0xf] %vm1883_vm1, %v2734_v58  ;;  %1994 = vst.msk [vmem:[%s3672_s12 + $0x1b8] sm:$0xf] %vm1883_vm1, %v2796_v60  ;;  %v1322_v0 = vmax.f32 %v982_v1, 0.0  ;;  %v1384_v2 = vmax.f32 %v1230_v61, 0.0 }
 0x1b9   : > { %v986_v3 = vpop.f32.mrf.mxu0  ;;  %v1234_v4 = vpop.f32.mrf.mxu1 }
 0x1ba   : > { %v2735_v5 = vpack.c.bf16 %v1322_v0, %v1322_v0  ;;  %v2797_v6 = vpack.c.bf16 %v1384_v2, %v1384_v2  ;;  %v987_v7 = vadd.f32 %v3936_v33, %v986_v3  ;;  %v1235_v8 = vadd.f32 %v3936_v33, %v1234_v4 }
 0x1bb   : > { %v2998_v9 = vpop.f32.mrf.mxu0  ;;  %v3122_v10 = vpop.f32.mrf.mxu1 }
 0x1bc   : > { %1933 = vst.msk [vmem:[%s3672_s12 + $0xc4] sm:$0xf] %vm1883_vm1, %v2735_v5  ;;  %1995 = vst.msk [vmem:[%s3672_s12 + $0x1bc] sm:$0xf] %vm1883_vm1, %v2797_v6  ;;  %v1323_v11 = vmax.f32 %v987_v7, 0.0  ;;  %v1385_v12 = vmax.f32 %v1235_v8, 0.0 }
 0x1bd   : > { %v989_v13 = vpop.f32.mrf.mxu0  ;;  %v1237_v14 = vpop.f32.mrf.mxu1 }
 0x1be   : > { %v2736_v15 = vpack.c.bf16 %v1323_v11, %v1323_v11  ;;  %v2798_v16 = vpack.c.bf16 %v1385_v12, %v1385_v12  ;;  %v990_v17 = vadd.f32 %v3936_v33, %v989_v13  ;;  %v1238_v18 = vadd.f32 %v3936_v33, %v1237_v14 }
 0x1bf   : > { %v2999_v19 = vpop.f32.mrf.mxu0  ;;  %v3123_v20 = vpop.f32.mrf.mxu1 }
 0x1c0   : > { %1934 = vst.msk [vmem:[%s3672_s12 + $0xc8] sm:$0xf] %vm1883_vm1, %v2736_v15  ;;  %1996 = vst.msk [vmem:[%s3672_s12 + $0x1c0] sm:$0xf] %vm1883_vm1, %v2798_v16  ;;  %v1324_v21 = vmax.f32 %v990_v17, 0.0  ;;  %v1386_v22 = vmax.f32 %v1238_v18, 0.0 }
 0x1c1   : > { %v994_v23 = vpop.f32.mrf.mxu0  ;;  %v1242_v24 = vpop.f32.mrf.mxu1 }
 0x1c2   : > { %v2737_v25 = vpack.c.bf16 %v1324_v21, %v1324_v21  ;;  %v2799_v26 = vpack.c.bf16 %v1386_v22, %v1386_v22  ;;  %v995_v27 = vadd.f32 %v3936_v33, %v994_v23  ;;  %v1243_v28 = vadd.f32 %v3936_v33, %v1242_v24 }
 0x1c3   : > { %v3002_v29 = vpop.f32.mrf.mxu0  ;;  %v3126_v30 = vpop.f32.mrf.mxu1 }
 0x1c4   : > { %1935 = vst.msk [vmem:[%s3672_s12 + $0xcc] sm:$0xf] %vm1883_vm1, %v2737_v25  ;;  %1997 = vst.msk [vmem:[%s3672_s12 + $0x1c4] sm:$0xf] %vm1883_vm1, %v2799_v26  ;;  %v1325_v31 = vmax.f32 %v995_v27, 0.0  ;;  %v1387_v32 = vmax.f32 %v1243_v28, 0.0 }
 0x1c5   : > { %v997_v59 = vpop.f32.mrf.mxu0  ;;  %v1245_v34 = vpop.f32.mrf.mxu1 }
 0x1c6   : > { %v2738_v35 = vpack.c.bf16 %v1325_v31, %v1325_v31  ;;  %v2800_v36 = vpack.c.bf16 %v1387_v32, %v1387_v32  ;;  %v998_v37 = vadd.f32 %v3936_v33, %v997_v59  ;;  %v1246_v38 = vadd.f32 %v3936_v33, %v1245_v34 }
 0x1c7   : > { %v3003_v39 = vpop.f32.mrf.mxu0  ;;  %v3127_v40 = vpop.f32.mrf.mxu1 }
 0x1c8   : > { %1936 = vst.msk [vmem:[%s3672_s12 + $0xd0] sm:$0xf] %vm1883_vm1, %v2738_v35  ;;  %1998 = vst.msk [vmem:[%s3672_s12 + $0x1c8] sm:$0xf] %vm1883_vm1, %v2800_v36  ;;  %v1326_v41 = vmax.f32 %v998_v37, 0.0  ;;  %v1388_v42 = vmax.f32 %v1246_v38, 0.0 }
 0x1c9   : > { %v1002_v43 = vpop.f32.mrf.mxu0  ;;  %v1250_v44 = vpop.f32.mrf.mxu1 }
 0x1ca   : > { %v2739_v45 = vpack.c.bf16 %v1326_v41, %v1326_v41  ;;  %v2801_v46 = vpack.c.bf16 %v1388_v42, %v1388_v42  ;;  %v1003_v47 = vadd.f32 %v3936_v33, %v1002_v43  ;;  %v1251_v48 = vadd.f32 %v3936_v33, %v1250_v44 }
 0x1cb   : > { %v3006_v49 = vpop.f32.mrf.mxu0  ;;  %v3130_v50 = vpop.f32.mrf.mxu1 }
 0x1cc   : > { %1937 = vst.msk [vmem:[%s3672_s12 + $0xd4] sm:$0xf] %vm1883_vm1, %v2739_v45  ;;  %1999 = vst.msk [vmem:[%s3672_s12 + $0x1cc] sm:$0xf] %vm1883_vm1, %v2801_v46  ;;  %v1327_v51 = vmax.f32 %v1003_v47, 0.0  ;;  %v1389_v52 = vmax.f32 %v1251_v48, 0.0 }
 0x1cd   : > { %v1005_v53 = vpop.f32.mrf.mxu0  ;;  %v1253_v54 = vpop.f32.mrf.mxu1 }
 0x1ce   : > { %v2740_v55 = vpack.c.bf16 %v1327_v51, %v1327_v51  ;;  %v2802_v56 = vpack.c.bf16 %v1389_v52, %v1389_v52  ;;  %v1006_v57 = vadd.f32 %v3936_v33, %v1005_v53  ;;  %v1254_v58 = vadd.f32 %v3936_v33, %v1253_v54 }
 0x1cf   : > { %v3007_v60 = vpop.f32.mrf.mxu0  ;;  %v3131_v1 = vpop.f32.mrf.mxu1 }
 0x1d0   : > { %1938 = vst.msk [vmem:[%s3672_s12 + $0xd8] sm:$0xf] %vm1883_vm1, %v2740_v55  ;;  %2000 = vst.msk [vmem:[%s3672_s12 + $0x1d0] sm:$0xf] %vm1883_vm1, %v2802_v56  ;;  %v1328_v61 = vmax.f32 %v1006_v57, 0.0  ;;  %v1390_v62 = vmax.f32 %v1254_v58, 0.0 }
 0x1d1   : > { %v1010_v63 = vpop.f32.mrf.mxu0  ;;  %v1258_v0 = vpop.f32.mrf.mxu1 }
 0x1d2   : > { %v2741_v2 = vpack.c.bf16 %v1328_v61, %v1328_v61  ;;  %v2803_v3 = vpack.c.bf16 %v1390_v62, %v1390_v62  ;;  %v1011_v4 = vadd.f32 %v3936_v33, %v1010_v63  ;;  %v1259_v5 = vadd.f32 %v3936_v33, %v1258_v0 }
 0x1d3   : > { %v3010_v6 = vpop.f32.mrf.mxu0  ;;  %v3134_v7 = vpop.f32.mrf.mxu1 }
 0x1d4   : > { %1939 = vst.msk [vmem:[%s3672_s12 + $0xdc] sm:$0xf] %vm1883_vm1, %v2741_v2  ;;  %2001 = vst.msk [vmem:[%s3672_s12 + $0x1d4] sm:$0xf] %vm1883_vm1, %v2803_v3  ;;  %v1329_v8 = vmax.f32 %v1011_v4, 0.0  ;;  %v1391_v9 = vmax.f32 %v1259_v5, 0.0 }
 0x1d5   : > { %v1013_v10 = vpop.f32.mrf.mxu0  ;;  %v1261_v11 = vpop.f32.mrf.mxu1 }
 0x1d6   : > { %v2742_v12 = vpack.c.bf16 %v1329_v8, %v1329_v8  ;;  %v2804_v13 = vpack.c.bf16 %v1391_v9, %v1391_v9  ;;  %v1014_v14 = vadd.f32 %v3936_v33, %v1013_v10  ;;  %v1262_v15 = vadd.f32 %v3936_v33, %v1261_v11 }
 0x1d7   : > { %v3011_v16 = vpop.f32.mrf.mxu0  ;;  %v3135_v17 = vpop.f32.mrf.mxu1 }
 0x1d8   : > { %1940 = vst.msk [vmem:[%s3672_s12 + $0xe0] sm:$0xf] %vm1883_vm1, %v2742_v12  ;;  %2002 = vst.msk [vmem:[%s3672_s12 + $0x1d8] sm:$0xf] %vm1883_vm1, %v2804_v13  ;;  %v1330_v18 = vmax.f32 %v1014_v14, 0.0  ;;  %v1392_v19 = vmax.f32 %v1262_v15, 0.0 }
 0x1d9   : > { %v1018_v20 = vpop.f32.mrf.mxu0  ;;  %v1266_v21 = vpop.f32.mrf.mxu1 }
 0x1da   : > { %v2743_v22 = vpack.c.bf16 %v1330_v18, %v1330_v18  ;;  %v2805_v23 = vpack.c.bf16 %v1392_v19, %v1392_v19  ;;  %v1019_v24 = vadd.f32 %v3936_v33, %v1018_v20  ;;  %v1267_v25 = vadd.f32 %v3936_v33, %v1266_v21 }
 0x1db   : > { %v3014_v26 = vpop.f32.mrf.mxu0  ;;  %v3138_v27 = vpop.f32.mrf.mxu1 }
 0x1dc   : > { %1941 = vst.msk [vmem:[%s3672_s12 + $0xe4] sm:$0xf] %vm1883_vm1, %v2743_v22  ;;  %2003 = vst.msk [vmem:[%s3672_s12 + $0x1dc] sm:$0xf] %vm1883_vm1, %v2805_v23  ;;  %v1331_v28 = vmax.f32 %v1019_v24, 0.0  ;;  %v1393_v29 = vmax.f32 %v1267_v25, 0.0 }
 0x1dd   : > { %v1021_v30 = vpop.f32.mrf.mxu0  ;;  %v1269_v31 = vpop.f32.mrf.mxu1 }
 0x1de   : > { %v2744_v32 = vpack.c.bf16 %v1331_v28, %v1331_v28  ;;  %v2806_v59 = vpack.c.bf16 %v1393_v29, %v1393_v29  ;;  %v1022_v34 = vadd.f32 %v3936_v33, %v1021_v30  ;;  %v1270_v35 = vadd.f32 %v3936_v33, %v1269_v31 }
 0x1df   : > { %v3015_v36 = vpop.f32.mrf.mxu0  ;;  %v3139_v37 = vpop.f32.mrf.mxu1 }
 0x1e0   : > { %1942 = vst.msk [vmem:[%s3672_s12 + $0xe8] sm:$0xf] %vm1883_vm1, %v2744_v32  ;;  %2004 = vst.msk [vmem:[%s3672_s12 + $0x1e0] sm:$0xf] %vm1883_vm1, %v2806_v59  ;;  %v1332_v38 = vmax.f32 %v1022_v34, 0.0  ;;  %v1394_v39 = vmax.f32 %v1270_v35, 0.0 }
 0x1e1   : > { %v1026_v40 = vpop.f32.mrf.mxu0 }
 0x1e2   : > { %v2745_v41 = vpack.c.bf16 %v1332_v38, %v1332_v38  ;;  %v2807_v42 = vpack.c.bf16 %v1394_v39, %v1394_v39  ;;  %v1027_v43 = vadd.f32 %v3936_v33, %v1026_v40 }
 0x1e3   : > { %v3018_v44 = vpop.f32.mrf.mxu0 }
 0x1e4   : > { %1943 = vst.msk [vmem:[%s3672_s12 + $0xec] sm:$0xf] %vm1883_vm1, %v2745_v41  ;;  %2005 = vst.msk [vmem:[%s3672_s12 + $0x1e4] sm:$0xf] %vm1883_vm1, %v2807_v42  ;;  %v1333_v45 = vmax.f32 %v1027_v43, 0.0 }
 0x1e5   : > { %v1029_v46 = vpop.f32.mrf.mxu0 }
 0x1e6   : > { %v2746_v47 = vpack.c.bf16 %v1333_v45, %v1333_v45  ;;  %v1030_v48 = vadd.f32 %v3936_v33, %v1029_v46 }
 0x1e7   : > { %v3019_v49 = vpop.f32.mrf.mxu0 }
 0x1e8   : > { %1944 = vst.msk [vmem:[%s3672_s12 + $0xf0] sm:$0xf] %vm1883_vm1, %v2746_v47  ;;  %v1334_v50 = vmax.f32 %v1030_v48, 0.0  ;;  %2012 = sbr.rel (!%p3452_p4) target bundleno = 574 (0x23e), region = 36 }
 0x1ea   : > { %v2747_v51 = vpack.c.bf16 %v1334_v50, %v1334_v50 }
 0x1ec   : > { %1945 = vst.msk [vmem:[%s3672_s12 + $0xf4] sm:$0xf] %vm1883_vm1, %v2747_v51 }
 0x1ed   : > { %s4279_s29 = smov (!%p2015_p8, %s2014_s29), 122 }
 0x1ee   : > { %s2671_s7 = sshll.u32 %s4279_s29, 6 }
 0x1ef   : > { %p2674_p9 = scmp.eq.s32.totalorder %s2671_s7, 0 }
 0x1f0   : > { %s4081_s8 = sshrl.u32 (!%p2674_p9), %s4279_s29, 6 }
 0x1f1   : > { %2023 = sbr.rel (%p2674_p9) target bundleno = 574 (0x23e), region = 40  ;;  %p2675_p10 = scmp.le.s32.totalorder (!%p2674_p9), %s4081_s8, 0 }
 0x1f6   : > { %2430 = sbr.rel (%p2675_p10) target bundleno = 557 (0x22d), region = 112  ;;  %s4272_s15 = smov (!%p2675_p10), %s4075_s6 }
 0x1f7   : > { %s4273_s20 = smov (!%p2675_p10), %s3672_s12  ;;  %s4090_s25 = smov (!%p2675_p10), 0  }
 0x1f8   : > { %s4092_s9 = smov (!%p2675_p10), 0  }
 0x1fb LB: >> { %v2040_v33 = vld [vmem:[%s3379_s20] sm:$0xf]  ;;  %v2042_v52 = vld [vmem:[%s3379_s20 + $0x4] sm:$0xf]  ;;  %v2044_v53 = vld [vmem:[%s3379_s20 + $0x8] sm:$0xf]  ;;  %s3387_s9 = sphi %s4092_s9, %s2034_s9   ;;  %s3383_s25 = sphi %s4090_s25, %s4274_s25   ;;  %s3379_s20 = sphi %s4273_s20, %s2173_s20   ;;  %s3375_s15 = sphi %s4272_s15, %s2174_s15  }
 0x1fc   : >> { %2041 = vst [vmem:[%s3375_s15] sm:$0xf] %v2040_v33  ;;  %2043 = vst [vmem:[%s3375_s15 + $0x4] sm:$0xf] %v2042_v52  ;;  %v2046_v54 = vld [vmem:[%s3379_s20 + $0xc] sm:$0xf]  ;;  %s2168_s10 = sadd.s32 1, %s3383_s25 }
 0x1fd   : >> { %2045 = vst [vmem:[%s3375_s15 + $0x8] sm:$0xf] %v2044_v53  ;;  %v2048_v55 = vld [vmem:[%s3379_s20 + $0x10] sm:$0xf]  ;;  %v2050_v56 = vld [vmem:[%s3379_s20 + $0x14] sm:$0xf]  ;;  %p2169_p11 = scmp.ge.s32.totalorder %s2168_s10, %s4081_s8 }
 0x1fe   : >> { %2047 = vst [vmem:[%s3375_s15 + $0xc] sm:$0xf] %v2046_v54  ;;  %2049 = vst [vmem:[%s3375_s15 + $0x10] sm:$0xf] %v2048_v55  ;;  %v2052_v57 = vld [vmem:[%s3379_s20 + $0x18] sm:$0xf] }
 0x1ff   : >> { %2051 = vst [vmem:[%s3375_s15 + $0x14] sm:$0xf] %v2050_v56  ;;  %v2054_v58 = vld [vmem:[%s3379_s20 + $0x1c] sm:$0xf]  ;;  %v2056_v60 = vld [vmem:[%s3379_s20 + $0x20] sm:$0xf] }
 0x200   : >> { %2053 = vst [vmem:[%s3375_s15 + $0x18] sm:$0xf] %v2052_v57  ;;  %2055 = vst [vmem:[%s3375_s15 + $0x1c] sm:$0xf] %v2054_v58  ;;  %v2058_v1 = vld [vmem:[%s3379_s20 + $0x24] sm:$0xf] }
 0x201   : >> { %2057 = vst [vmem:[%s3375_s15 + $0x20] sm:$0xf] %v2056_v60  ;;  %v2060_v61 = vld [vmem:[%s3379_s20 + $0x28] sm:$0xf]  ;;  %v2062_v62 = vld [vmem:[%s3379_s20 + $0x2c] sm:$0xf] }
 0x202   : >> { %2059 = vst [vmem:[%s3375_s15 + $0x24] sm:$0xf] %v2058_v1  ;;  %2061 = vst [vmem:[%s3375_s15 + $0x28] sm:$0xf] %v2060_v61  ;;  %v2064_v63 = vld [vmem:[%s3379_s20 + $0x30] sm:$0xf] }
 0x203   : >> { %2063 = vst [vmem:[%s3375_s15 + $0x2c] sm:$0xf] %v2062_v62  ;;  %v2066_v0 = vld [vmem:[%s3379_s20 + $0x34] sm:$0xf]  ;;  %v2068_v2 = vld [vmem:[%s3379_s20 + $0x38] sm:$0xf] }
 0x204   : >> { %2065 = vst [vmem:[%s3375_s15 + $0x30] sm:$0xf] %v2064_v63  ;;  %2067 = vst [vmem:[%s3375_s15 + $0x34] sm:$0xf] %v2066_v0  ;;  %v2070_v3 = vld [vmem:[%s3379_s20 + $0x3c] sm:$0xf] }
 0x205   : >> { %2069 = vst [vmem:[%s3375_s15 + $0x38] sm:$0xf] %v2068_v2  ;;  %v2072_v4 = vld [vmem:[%s3379_s20 + $0x40] sm:$0xf]  ;;  %v2074_v5 = vld [vmem:[%s3379_s20 + $0x44] sm:$0xf] }
 0x206   : >> { %2071 = vst [vmem:[%s3375_s15 + $0x3c] sm:$0xf] %v2070_v3  ;;  %2073 = vst [vmem:[%s3375_s15 + $0x40] sm:$0xf] %v2072_v4  ;;  %v2076_v6 = vld [vmem:[%s3379_s20 + $0x48] sm:$0xf] }
 0x207   : >> { %2075 = vst [vmem:[%s3375_s15 + $0x44] sm:$0xf] %v2074_v5  ;;  %v2078_v7 = vld [vmem:[%s3379_s20 + $0x4c] sm:$0xf]  ;;  %v2080_v8 = vld [vmem:[%s3379_s20 + $0x50] sm:$0xf] }
 0x208   : >> { %2077 = vst [vmem:[%s3375_s15 + $0x48] sm:$0xf] %v2076_v6  ;;  %2079 = vst [vmem:[%s3375_s15 + $0x4c] sm:$0xf] %v2078_v7  ;;  %v2082_v9 = vld [vmem:[%s3379_s20 + $0x54] sm:$0xf] }
 0x209   : >> { %2081 = vst [vmem:[%s3375_s15 + $0x50] sm:$0xf] %v2080_v8  ;;  %v2084_v10 = vld [vmem:[%s3379_s20 + $0x58] sm:$0xf]  ;;  %v2086_v11 = vld [vmem:[%s3379_s20 + $0x5c] sm:$0xf] }
 0x20a   : >> { %2083 = vst [vmem:[%s3375_s15 + $0x54] sm:$0xf] %v2082_v9  ;;  %2085 = vst [vmem:[%s3375_s15 + $0x58] sm:$0xf] %v2084_v10  ;;  %v2088_v12 = vld [vmem:[%s3379_s20 + $0x60] sm:$0xf] }
 0x20b   : >> { %2087 = vst [vmem:[%s3375_s15 + $0x5c] sm:$0xf] %v2086_v11  ;;  %v2090_v13 = vld [vmem:[%s3379_s20 + $0x64] sm:$0xf]  ;;  %v2092_v14 = vld [vmem:[%s3379_s20 + $0x68] sm:$0xf] }
 0x20c   : >> { %2089 = vst [vmem:[%s3375_s15 + $0x60] sm:$0xf] %v2088_v12  ;;  %2091 = vst [vmem:[%s3375_s15 + $0x64] sm:$0xf] %v2090_v13  ;;  %v2094_v15 = vld [vmem:[%s3379_s20 + $0x6c] sm:$0xf] }
 0x20d   : >> { %2093 = vst [vmem:[%s3375_s15 + $0x68] sm:$0xf] %v2092_v14  ;;  %v2096_v16 = vld [vmem:[%s3379_s20 + $0x70] sm:$0xf]  ;;  %v2098_v17 = vld [vmem:[%s3379_s20 + $0x74] sm:$0xf] }
 0x20e   : >> { %2095 = vst [vmem:[%s3375_s15 + $0x6c] sm:$0xf] %v2094_v15  ;;  %2097 = vst [vmem:[%s3375_s15 + $0x70] sm:$0xf] %v2096_v16  ;;  %v2100_v18 = vld [vmem:[%s3379_s20 + $0x78] sm:$0xf] }
 0x20f   : >> { %2099 = vst [vmem:[%s3375_s15 + $0x74] sm:$0xf] %v2098_v17  ;;  %v2102_v19 = vld [vmem:[%s3379_s20 + $0x7c] sm:$0xf]  ;;  %v2104_v20 = vld [vmem:[%s3379_s20 + $0x80] sm:$0xf] }
 0x210   : >> { %2101 = vst [vmem:[%s3375_s15 + $0x78] sm:$0xf] %v2100_v18  ;;  %2103 = vst [vmem:[%s3375_s15 + $0x7c] sm:$0xf] %v2102_v19  ;;  %v2106_v21 = vld [vmem:[%s3379_s20 + $0x84] sm:$0xf] }
 0x211   : >> { %2105 = vst [vmem:[%s3375_s15 + $0x80] sm:$0xf] %v2104_v20  ;;  %v2108_v22 = vld [vmem:[%s3379_s20 + $0x88] sm:$0xf]  ;;  %v2110_v23 = vld [vmem:[%s3379_s20 + $0x8c] sm:$0xf] }
 0x212   : >> { %2107 = vst [vmem:[%s3375_s15 + $0x84] sm:$0xf] %v2106_v21  ;;  %2109 = vst [vmem:[%s3375_s15 + $0x88] sm:$0xf] %v2108_v22  ;;  %v2112_v24 = vld [vmem:[%s3379_s20 + $0x90] sm:$0xf] }
 0x213   : >> { %2111 = vst [vmem:[%s3375_s15 + $0x8c] sm:$0xf] %v2110_v23  ;;  %v2114_v25 = vld [vmem:[%s3379_s20 + $0x94] sm:$0xf]  ;;  %v2116_v26 = vld [vmem:[%s3379_s20 + $0x98] sm:$0xf] }
 0x214   : >> { %2113 = vst [vmem:[%s3375_s15 + $0x90] sm:$0xf] %v2112_v24  ;;  %2115 = vst [vmem:[%s3375_s15 + $0x94] sm:$0xf] %v2114_v25  ;;  %v2118_v27 = vld [vmem:[%s3379_s20 + $0x9c] sm:$0xf] }
 0x215   : >> { %2117 = vst [vmem:[%s3375_s15 + $0x98] sm:$0xf] %v2116_v26  ;;  %v2120_v28 = vld [vmem:[%s3379_s20 + $0xa0] sm:$0xf]  ;;  %v2122_v29 = vld [vmem:[%s3379_s20 + $0xa4] sm:$0xf] }
 0x216   : >> { %2119 = vst [vmem:[%s3375_s15 + $0x9c] sm:$0xf] %v2118_v27  ;;  %2121 = vst [vmem:[%s3375_s15 + $0xa0] sm:$0xf] %v2120_v28  ;;  %v2124_v30 = vld [vmem:[%s3379_s20 + $0xa8] sm:$0xf] }
 0x217   : >> { %2123 = vst [vmem:[%s3375_s15 + $0xa4] sm:$0xf] %v2122_v29  ;;  %v2126_v31 = vld [vmem:[%s3379_s20 + $0xac] sm:$0xf]  ;;  %v2128_v32 = vld [vmem:[%s3379_s20 + $0xb0] sm:$0xf] }
 0x218   : >> { %2125 = vst [vmem:[%s3375_s15 + $0xa8] sm:$0xf] %v2124_v30  ;;  %2127 = vst [vmem:[%s3375_s15 + $0xac] sm:$0xf] %v2126_v31  ;;  %v2130_v59 = vld [vmem:[%s3379_s20 + $0xb4] sm:$0xf] }
 0x219   : >> { %2129 = vst [vmem:[%s3375_s15 + $0xb0] sm:$0xf] %v2128_v32  ;;  %v2132_v34 = vld [vmem:[%s3379_s20 + $0xb8] sm:$0xf]  ;;  %v2134_v35 = vld [vmem:[%s3379_s20 + $0xbc] sm:$0xf] }
 0x21a   : >> { %2131 = vst [vmem:[%s3375_s15 + $0xb4] sm:$0xf] %v2130_v59  ;;  %2133 = vst [vmem:[%s3375_s15 + $0xb8] sm:$0xf] %v2132_v34  ;;  %v2136_v36 = vld [vmem:[%s3379_s20 + $0xc0] sm:$0xf] }
 0x21b   : >> { %2135 = vst [vmem:[%s3375_s15 + $0xbc] sm:$0xf] %v2134_v35  ;;  %v2138_v37 = vld [vmem:[%s3379_s20 + $0xc4] sm:$0xf]  ;;  %v2140_v38 = vld [vmem:[%s3379_s20 + $0xc8] sm:$0xf] }
 0x21c   : >> { %2137 = vst [vmem:[%s3375_s15 + $0xc0] sm:$0xf] %v2136_v36  ;;  %2139 = vst [vmem:[%s3375_s15 + $0xc4] sm:$0xf] %v2138_v37  ;;  %v2142_v39 = vld [vmem:[%s3379_s20 + $0xcc] sm:$0xf] }
 0x21d   : >> { %2141 = vst [vmem:[%s3375_s15 + $0xc8] sm:$0xf] %v2140_v38  ;;  %v2144_v40 = vld [vmem:[%s3379_s20 + $0xd0] sm:$0xf]  ;;  %v2146_v41 = vld [vmem:[%s3379_s20 + $0xd4] sm:$0xf] }
 0x21e   : >> { %2143 = vst [vmem:[%s3375_s15 + $0xcc] sm:$0xf] %v2142_v39  ;;  %2145 = vst [vmem:[%s3375_s15 + $0xd0] sm:$0xf] %v2144_v40  ;;  %v2148_v42 = vld [vmem:[%s3379_s20 + $0xd8] sm:$0xf] }
 0x21f   : >> { %2147 = vst [vmem:[%s3375_s15 + $0xd4] sm:$0xf] %v2146_v41  ;;  %v2150_v43 = vld [vmem:[%s3379_s20 + $0xdc] sm:$0xf]  ;;  %v2152_v44 = vld [vmem:[%s3379_s20 + $0xe0] sm:$0xf] }
 0x220   : >> { %2149 = vst [vmem:[%s3375_s15 + $0xd8] sm:$0xf] %v2148_v42  ;;  %2151 = vst [vmem:[%s3375_s15 + $0xdc] sm:$0xf] %v2150_v43  ;;  %v2154_v45 = vld [vmem:[%s3379_s20 + $0xe4] sm:$0xf] }
 0x221   : >> { %2153 = vst [vmem:[%s3375_s15 + $0xe0] sm:$0xf] %v2152_v44  ;;  %v2156_v46 = vld [vmem:[%s3379_s20 + $0xe8] sm:$0xf]  ;;  %v2158_v47 = vld [vmem:[%s3379_s20 + $0xec] sm:$0xf] }
 0x222   : >> { %2155 = vst [vmem:[%s3375_s15 + $0xe4] sm:$0xf] %v2154_v45  ;;  %2157 = vst [vmem:[%s3375_s15 + $0xe8] sm:$0xf] %v2156_v46  ;;  %v2160_v48 = vld [vmem:[%s3379_s20 + $0xf0] sm:$0xf] }
 0x223   : >> { %2159 = vst [vmem:[%s3375_s15 + $0xec] sm:$0xf] %v2158_v47  ;;  %v2162_v49 = vld [vmem:[%s3379_s20 + $0xf4] sm:$0xf]  ;;  %v2164_v50 = vld [vmem:[%s3379_s20 + $0xf8] sm:$0xf] }
 0x224   : >> { %2161 = vst [vmem:[%s3375_s15 + $0xf0] sm:$0xf] %v2160_v48  ;;  %2163 = vst [vmem:[%s3375_s15 + $0xf4] sm:$0xf] %v2162_v49  ;;  %v2166_v51 = vld [vmem:[%s3379_s20 + $0xfc] sm:$0xf] }
 0x225   : >> { %2165 = vst [vmem:[%s3375_s15 + $0xf8] sm:$0xf] %v2164_v50  ;;  %2167 = vst [vmem:[%s3375_s15 + $0xfc] sm:$0xf] %v2166_v51  ;;  %s4281_s10 = smov (%p2169_p11, %s2168_s10), 0  ;;  %s2034_s9 = sadd.s32 1, %s3387_s9  }
 0x226   : >> { %s2676_s11 = sshll.u32 %s4281_s10, 8  ;;  %p2033_p12 = scmp.ge.s32.totalorder %s2034_s9, %s4081_s8 }
 0x227   : >> { %s2173_s20 = scalar_lea.vmem %s3672_s12, %s2676_s11 [#allocation2]   ;;  %s2174_s15 = scalar_lea.vmem %s4075_s6, %s2676_s11  }
 0x228   : >> { %s4274_s25 = smov %s4281_s10  ;;  %2036 = sbr.rel (!%p2033_p12) target bundleno = 507 (0x1fb), region = 118 }
 0x22d PF: > { %s4249_s14 = sand.u32 63, %s4279_s29   ;;  %s2809_s17 = sshll.u32 %s4081_s8, 8 }
 0x22e   : > { %s2179_s18 = scalar_lea.vmem %s3672_s12, %s2809_s17 [#allocation2]   ;;  %s2181_s21 = scalar_lea.vmem %s4075_s6, %s2809_s17  }
 0x22f   : > { %p2681_p13 = scmp.le.s32.totalorder %s4249_s14, 0 }
 0x230   : > { %s3389_s22 = smov (!%p2681_p13), %s2181_s21   ;;  %s3393_s23 = smov (!%p2681_p13), %s2179_s18  }
 0x231   : > { %2444 = sbr.rel (%p2681_p13) target bundleno = 574 (0x23e), region = 123  ;;  %s3397_s24 = smov (!%p2681_p13), 0  }
 0x232   : > { %s3401_s26 = smov (!%p2681_p13), 0  }
 0x236 LB: >> { %v2191_v33 = vld [vmem:[%s3395_s23] sm:$0xf]  ;;  %s2193_s27 = sadd.s32 1, %s3399_s24  ;;  %s2185_s26 = sadd.s32 1, %s3403_s26   ;;  %s3403_s26 = sphi %s3401_s26, %s2185_s26   ;;  %s3399_s24 = sphi %s3397_s24, %s3398_s24   ;;  %s3395_s23 = sphi %s3393_s23, %s2198_s23   ;;  %s3391_s22 = sphi %s3389_s22, %s2199_s22  }
 0x237   : >> { %2192 = vst [vmem:[%s3391_s22] sm:$0xf] %v2191_v33  ;;  %p2194_p0 = scmp.ge.s32.totalorder %s2193_s27, %s4249_s14  ;;  %p2184_p1 = scmp.ge.s32.totalorder %s2185_s26, %s4249_s14 }
 0x239   : >> { %s4283_s27 = smov (%p2194_p0, %s2193_s27), 0  ;;  %2187 = sbr.rel (!%p2184_p1) target bundleno = 566 (0x236), region = 129 }
 0x23a   : >> { %s2682_s12 = sshll.u32 %s4283_s27, 2  ;;  %s3398_s24 = smov %s4283_s27  }
 0x23b   : >> { %s2198_s23 = scalar_lea.vmem %s2179_s18, %s2682_s12 [#allocation2]   ;;  %s2199_s22 = scalar_lea.vmem %s2181_s21, %s2682_s12  }
 0x23e PF: > { %p10_p2 = scmp.ge.s32.totalorder %s3442_s16, 4   ;;  %s4275_s12 = smov %s3367_s13 }
 0x23f   : > { %s4276_s13 = smov %s3450_s19  ;;  %s4277_s14 = smov %s3442_s16 }
 0x240   :  { %12 = sbr.rel (!%p10_p2) target bundleno = 2 (0x2), region = 140 }

// kernel: conv_encoder_forward.5
= control target key start
LH: loop header
LB: loop body
LE: loop exit
PB: predicated region body
PF: predicated region fallthrough
CT: control target
= control target key end

     0   :  { %s2182_s12 = smov 0   ;;  %s2184_s13 = smov 0   ;;  %s2573_s0 = inlined_call_operand.vmem [shape: bf16[392,512], index: 0, kind: input, shape index: {}]   ;;  %s2574_s1 = inlined_call_operand.vmem [shape: bf16[512,32], index: 1, kind: input, shape index: {}]   ;;  %s2575_s2 = inlined_call_operand.vmem [shape: f32[1,32], index: 2, kind: input, shape index: {}]   ;;  %s2576_s3 = inlined_call_operand.vmem [shape: bf16[392,32], index: 3, kind: output, shape index: {}]  }
   0x1   :  { %s2186_s14 = smov 0  }
   0x2 LB: > { %s2195_s15 = sadd.s32 4294967295, %s2128_s14   ;;  %s2197_s16 = sadd.s32 1, %s2128_s14   ;;  %s2128_s14 = sphi %s2186_s14, %s2583_s14   ;;  %s2124_s13 = sphi %s2184_s13, %s2582_s13   ;;  %s2120_s12 = sphi %s2182_s12, %s2581_s12  }
   0x3   : > { %s85_s17 = ssub.s32 %s2128_s14, %s2197_s16  ;;  %s88_s18 = sadd.s32 1, %s2124_s13 }
   0x4   : > { %p86_p0 = scmp.eq.s32.totalorder %s85_s17, 0  ;;  %p98_p1 = scmp.ne.s32.totalorder %s2124_s13, %s2120_s12 }
   0x5   : > { %p99_p2 = scmp.eq.s32.totalorder %s2195_s15, 1  ;;  %p1528_p3 = scmp.ge.s32.totalorder %s2128_s14, 1 }
   0x6   : > { %s2205_s19 = scalar_select %p86_p0, %s2124_s13, %s88_s18  }
   0x7   : > { %p2207_p4 = por %p99_p2, %p98_p1  ;;  %p149_p5 = scmp.lt.s32.totalorder %s2128_s14, 3 }
   0x9   : > { %p150_p6 = pnand %p1528_p3, %p149_p5 }
   0xa   : > { %s2257_s30 = smul.u32 (!%p150_p6), 26, %s2195_s15  ;;  %s175_s5 = sand.u32 (!%p150_p6), 1, %s2120_s12  }
   0xb   : > { %153 = sbr.rel (%p150_p6) target bundleno = 427 (0x1ab), region = 32 }
   0xc   : > { %p184_p7 = scmp.lt.s32.totalorder (!%p150_p6), %s2257_s30, 48  ;;  %s1870_s6 = smul.u32 (!%p150_p6), 104, %s175_s5 }
   0xe   : > { %s2377_s12 = scalar_lea.vmem (!%p150_p6), [#allocation2], %s1870_s6  }
  0x10   : > { %v1960_v0 = vld [vmem:[%s2574_s1 + $0x78] sm:$0xff]   ;;  %v1964_v4 = vld [vmem:[%s2574_s1 + $0x70] sm:$0xff]   ;;  %v1968_v8 = vld [vmem:[%s2574_s1 + $0x68] sm:$0xff]   ;;  %s185_s26 = scalar_select %p184_p7, %s2257_s30, 48  ;;  %vm1180_vm0 = vcmask 257024  }
  0x11   : > { %v1961_v1 = vld [vmem:[%s2574_s1 + $0xf8] sm:$0xff]   ;;  %1682 = vmatprep.subr.bf16.mxu0 %v1960_v0  ;;  %v1965_v5 = vld [vmem:[%s2574_s1 + $0xf0] sm:$0xff]   ;;  %v1969_v9 = vld [vmem:[%s2574_s1 + $0xe8] sm:$0xff]   ;;  %s1215_s7 = ssub.s32 (%p2207_p4), 49, %s2257_s30  ;;  %s1681_s8 = smul.u32 (%p2207_p4), 104, %s2195_s15 }
  0x12   : > { %v1962_v2 = vld [vmem:[%s2574_s1 + $0x38] sm:$0xff]   ;;  %1776 = vmatprep.subr.bf16.mxu1 %v1961_v1  ;;  %v1966_v6 = vld [vmem:[%s2574_s1 + $0x30] sm:$0xff]   ;;  %v1970_v10 = vld [vmem:[%s2574_s1 + $0x28] sm:$0xff]   ;;  %s1654_s9 = sshll.u32 %s185_s26, 4  ;;  %p1216_p8 = scmp.lt.s32.totalorder (%p2207_p4), %s1215_s7, 26 }
  0x13   : > { %v1963_v3 = vld [vmem:[%s2574_s1 + $0xb8] sm:$0xff]   ;;  %1683 = vmatpush3.bf16.msra.mxu0 %v1962_v2  ;;  %v1967_v7 = vld [vmem:[%s2574_s1 + $0xb0] sm:$0xff]   ;;  %v1971_v11 = vld [vmem:[%s2574_s1 + $0xa8] sm:$0xff]   ;;  %s2309_s24 = scalar_lea.vmem %s2573_s0, %s1654_s9  ;;  %s2462_s11 = scalar_lea.vmem (%p2207_p4), %s2576_s3, %s1681_s8  }
  0x14   : > { %1777 = vmatpush3.bf16.msra.mxu1 %v1963_v3  ;;  %1684 = vmatprep.subr.bf16.mxu0 %v1964_v4  ;;  %v1972_v12 = vld [vmem:[%s2574_s1 + $0x60] sm:$0xff]   ;;  %v1976_v16 = vld [vmem:[%s2574_s1 + $0x58] sm:$0xff]   ;;  %v1980_v20 = vld [vmem:[%s2574_s1 + $0x50] sm:$0xff]  }
  0x15   : > { %1778 = vmatprep.subr.bf16.mxu1 %v1965_v5  ;;  %v1973_v13 = vld [vmem:[%s2574_s1 + $0xe0] sm:$0xff]   ;;  %v1977_v17 = vld [vmem:[%s2574_s1 + $0xd8] sm:$0xff]   ;;  %v1981_v21 = vld [vmem:[%s2574_s1 + $0xd0] sm:$0xff]  }
  0x16   : > { %v1974_v14 = vld [vmem:[%s2574_s1 + $0x20] sm:$0xff]   ;;  %v1978_v18 = vld [vmem:[%s2574_s1 + $0x18] sm:$0xff]   ;;  %v1982_v22 = vld [vmem:[%s2574_s1 + $0x10] sm:$0xff]  }
  0x17   : > { %1685 = vmatpush3.bf16.msra.mxu0 %v1966_v6  ;;  %v1975_v15 = vld [vmem:[%s2574_s1 + $0xa0] sm:$0xff]   ;;  %v1979_v19 = vld [vmem:[%s2574_s1 + $0x98] sm:$0xff]   ;;  %v1983_v23 = vld [vmem:[%s2574_s1 + $0x90] sm:$0xff]  }
  0x18   : > { %1779 = vmatpush3.bf16.msra.mxu1 %v1967_v7  ;;  %1686 = vmatprep.subr.bf16.mxu0 %v1968_v8  ;;  %v1984_v24 = vld [vmem:[%s2574_s1 + $0x48] sm:$0xff]   ;;  %v1988_v28 = vld [vmem:[%s2574_s1 + $0x40] sm:$0xff]  }
  0x19   : > { %1780 = vmatprep.subr.bf16.mxu1 %v1969_v9  ;;  %v1985_v25 = vld [vmem:[%s2574_s1 + $0xc8] sm:$0xff]   ;;  %v1989_v29 = vld [vmem:[%s2574_s1 + $0xc0] sm:$0xff]  }
  0x1a   : > { %v1986_v26 = vld [vmem:[%s2574_s1 + $0x8] sm:$0xff]   ;;  %v1990_v30 = vld [vmem:[%s2574_s1] sm:$0xff]  }
  0x1b   : > { %1687 = vmatpush3.bf16.msra.mxu0 %v1970_v10  ;;  %v1987_v27 = vld [vmem:[%s2574_s1 + $0x88] sm:$0xff]   ;;  %v1991_v31 = vld [vmem:[%s2574_s1 + $0x80] sm:$0xff]  }
  0x1c   : > { %1781 = vmatpush3.bf16.msra.mxu1 %v1971_v11  ;;  %1688 = vmatprep.subr.bf16.mxu0 %v1972_v12  ;;  %v1992_v32 = vld [vmem:[%s2309_s24] ss:$16 sps:$4 sm:$0xff]   ;;  %v1994_v33 = vld [vmem:[%s2309_s24 + $0x4] ss:$16 sps:$4 sm:$0xff]   ;;  %v1995_v34 = vld [vmem:[%s2309_s24 + $0x8] ss:$16 sps:$4 sm:$0xff]  }
  0x1d   : > { %1782 = vmatprep.subr.bf16.mxu1 %v1973_v13  ;;  %v1997_v35 = vld [vmem:[%s2309_s24 + $0xc] ss:$16 sps:$4 sm:$0xff]   ;;  %808 = vmatprep.mubr.bf16.mxu0 %v1994_v33  ;;  %v1998_v36 = vld [vmem:[%s2309_s24 + $0x24] ss:$16 sps:$4 sm:$0xff]   ;;  %v2002_v38 = vld [vmem:[%s2309_s24 + $0x20] ss:$16 sps:$4 sm:$0xff]  }
  0x1e   : > { %945 = vmatprep.mubr.bf16.mxu1 %v1997_v35  ;;  %v2000_v37 = vld [vmem:[%s2309_s24 + $0x2c] ss:$16 sps:$4 sm:$0xff]   ;;  %v2003_v39 = vld [vmem:[%s2309_s24 + $0x28] ss:$16 sps:$4 sm:$0xff]   ;;  %v2004_v40 = vld [vmem:[%s2309_s24 + $0x44] ss:$16 sps:$4 sm:$0xff]  }
  0x1f   : > { %1689 = vmatpush3.bf16.msra.mxu0 %v1974_v14  ;;  %v2006_v41 = vld [vmem:[%s2309_s24 + $0x4c] ss:$16 sps:$4 sm:$0xff]   ;;  %v2008_v42 = vld [vmem:[%s2309_s24 + $0x40] ss:$16 sps:$4 sm:$0xff]   ;;  %v2009_v43 = vld [vmem:[%s2309_s24 + $0x48] ss:$16 sps:$4 sm:$0xff]  }
  0x20   : > { %1783 = vmatpush3.bf16.msra.mxu1 %v1975_v15  ;;  %1690 = vmatprep.subr.bf16.mxu0 %v1976_v16  ;;  %v2010_v44 = vld [vmem:[%s2309_s24 + $0x64] ss:$16 sps:$4 sm:$0xff]   ;;  %v2012_v45 = vld [vmem:[%s2309_s24 + $0x6c] ss:$16 sps:$4 sm:$0xff]   ;;  %v2014_v46 = vld [vmem:[%s2309_s24 + $0x60] ss:$16 sps:$4 sm:$0xff]  }
  0x21   : > { %1784 = vmatprep.subr.bf16.mxu1 %v1977_v17  ;;  %v2015_v47 = vld [vmem:[%s2309_s24 + $0x68] ss:$16 sps:$4 sm:$0xff]   ;;  %v2016_v48 = vld [vmem:[%s2309_s24 + $0x84] ss:$16 sps:$4 sm:$0xff]   ;;  %v2018_v49 = vld [vmem:[%s2309_s24 + $0x8c] ss:$16 sps:$4 sm:$0xff]  }
  0x22   : > { %v2020_v50 = vld [vmem:[%s2309_s24 + $0x80] ss:$16 sps:$4 sm:$0xff]   ;;  %v2021_v51 = vld [vmem:[%s2309_s24 + $0x88] ss:$16 sps:$4 sm:$0xff]   ;;  %v2022_v52 = vld [vmem:[%s2309_s24 + $0xa4] ss:$16 sps:$4 sm:$0xff]  }
  0x23   : > { %1691 = vmatpush3.bf16.msra.mxu0 %v1978_v18  ;;  %v2024_v53 = vld [vmem:[%s2309_s24 + $0xac] ss:$16 sps:$4 sm:$0xff]   ;;  %v2026_v54 = vld [vmem:[%s2309_s24 + $0xa0] ss:$16 sps:$4 sm:$0xff]   ;;  %v2027_v55 = vld [vmem:[%s2309_s24 + $0xa8] ss:$16 sps:$4 sm:$0xff]  }
  0x24   : > { %1785 = vmatpush3.bf16.msra.mxu1 %v1979_v19  ;;  %1692 = vmatprep.subr.bf16.mxu0 %v1980_v20  ;;  %v2028_v56 = vld [vmem:[%s2309_s24 + $0xc4] ss:$16 sps:$4 sm:$0xff]   ;;  %v2030_v57 = vld [vmem:[%s2309_s24 + $0xcc] ss:$16 sps:$4 sm:$0xff]   ;;  %v2032_v58 = vld [vmem:[%s2309_s24 + $0xc0] ss:$16 sps:$4 sm:$0xff]  }
  0x25   : > { %1786 = vmatprep.subr.bf16.mxu1 %v1981_v21  ;;  %v2033_v59 = vld [vmem:[%s2309_s24 + $0xc8] ss:$16 sps:$4 sm:$0xff]   ;;  %v2034_v60 = vld [vmem:[%s2309_s24 + $0xe4] ss:$16 sps:$4 sm:$0xff]   ;;  %v2036_v61 = vld [vmem:[%s2309_s24 + $0xec] ss:$16 sps:$4 sm:$0xff]  }
  0x26   : > { %v2038_v62 = vld [vmem:[%s2309_s24 + $0xe0] ss:$16 sps:$4 sm:$0xff]   ;;  %v2039_v63 = vld [vmem:[%s2309_s24 + $0xe8] ss:$16 sps:$4 sm:$0xff]   ;;  %v2040_v0 = vld [vmem:[%s2309_s24 + $0x104] ss:$16 sps:$4 sm:$0xff]  }
  0x27   : > { %1693 = vmatpush3.bf16.msra.mxu0 %v1982_v22  ;;  %v2042_v1 = vld [vmem:[%s2309_s24 + $0x10c] ss:$16 sps:$4 sm:$0xff]   ;;  %v2044_v2 = vld [vmem:[%s2309_s24 + $0x100] ss:$16 sps:$4 sm:$0xff]   ;;  %v2045_v3 = vld [vmem:[%s2309_s24 + $0x108] ss:$16 sps:$4 sm:$0xff]  }
  0x28   : > { %1787 = vmatpush3.bf16.msra.mxu1 %v1983_v23  ;;  %1694 = vmatprep.subr.bf16.mxu0 %v1984_v24  ;;  %v2046_v4 = vld [vmem:[%s2309_s24 + $0x124] ss:$16 sps:$4 sm:$0xff]   ;;  %v2048_v5 = vld [vmem:[%s2309_s24 + $0x12c] ss:$16 sps:$4 sm:$0xff]   ;;  %v2050_v6 = vld [vmem:[%s2309_s24 + $0x120] ss:$16 sps:$4 sm:$0xff]  }
  0x29   : > { %1788 = vmatprep.subr.bf16.mxu1 %v1985_v25  ;;  %v2051_v7 = vld [vmem:[%s2309_s24 + $0x128] ss:$16 sps:$4 sm:$0xff]   ;;  %v2052_v8 = vld [vmem:[%s2309_s24 + $0x144] ss:$16 sps:$4 sm:$0xff]   ;;  %v2054_v9 = vld [vmem:[%s2309_s24 + $0x14c] ss:$16 sps:$4 sm:$0xff]  }
  0x2a   : > { %v2056_v10 = vld [vmem:[%s2309_s24 + $0x140] ss:$16 sps:$4 sm:$0xff]   ;;  %v2057_v11 = vld [vmem:[%s2309_s24 + $0x148] ss:$16 sps:$4 sm:$0xff]   ;;  %v2058_v12 = vld [vmem:[%s2309_s24 + $0x164] ss:$16 sps:$4 sm:$0xff]  }
  0x2b   : > { %1695 = vmatpush3.bf16.msra.mxu0 %v1986_v26  ;;  %v2060_v13 = vld [vmem:[%s2309_s24 + $0x16c] ss:$16 sps:$4 sm:$0xff]   ;;  %v2062_v14 = vld [vmem:[%s2309_s24 + $0x160] ss:$16 sps:$4 sm:$0xff]   ;;  %v2063_v15 = vld [vmem:[%s2309_s24 + $0x168] ss:$16 sps:$4 sm:$0xff]  }
  0x2c   : > { %1789 = vmatpush3.bf16.msra.mxu1 %v1987_v27  ;;  %1696 = vmatprep.subr.bf16.mxu0 %v1988_v28  ;;  %v2064_v16 = vld [vmem:[%s2309_s24 + $0x184] ss:$16 sps:$4 sm:$0xff]   ;;  %v2066_v17 = vld [vmem:[%s2309_s24 + $0x18c] ss:$16 sps:$4 sm:$0xff]   ;;  %v2068_v18 = vld [vmem:[%s2309_s24 + $0x180] ss:$16 sps:$4 sm:$0xff]  }
  0x2d   : > { %1790 = vmatprep.subr.bf16.mxu1 %v1989_v29  ;;  %v2069_v19 = vld [vmem:[%s2309_s24 + $0x188] ss:$16 sps:$4 sm:$0xff]   ;;  %v2372_v22 = vld [vmem:[%s2575_s2] ss:$0 sm:$0xff] }
  0x2f   : > { %1697 = vmatpush3.bf16.msra.mxu0 %v1990_v30 }
  0x30   : > { %1791 = vmatpush3.bf16.msra.mxu1 %v1991_v31 }
  0x32   : > { %809 = vmatmul.mubr.bf16.vlgmr.msra.gmra.mxu0 %v1992_v32 }
  0x33   : > { %946 = vmatmul.mubr.bf16.vlgmr.msra.gmra.mxu1 %v1995_v34  ;;  %816 = vmatprep.mubr.bf16.mxu0 %v1998_v36 }
  0x34   : > { %953 = vmatprep.mubr.bf16.mxu1 %v2000_v37 }
  0x3a   : > { %817 = vmatmul.mubr.bf16.gmra.mxu0 %v2002_v38 }
  0x3b   : > { %954 = vmatmul.mubr.bf16.gmra.mxu1 %v2003_v39  ;;  %824 = vmatprep.mubr.bf16.mxu0 %v2004_v40 }
  0x3c   : > { %961 = vmatprep.mubr.bf16.mxu1 %v2006_v41 }
  0x42   : > { %825 = vmatmul.mubr.bf16.gmra.mxu0 %v2008_v42 }
  0x43   : > { %962 = vmatmul.mubr.bf16.gmra.mxu1 %v2009_v43  ;;  %832 = vmatprep.mubr.bf16.mxu0 %v2010_v44 }
  0x44   : > { %969 = vmatprep.mubr.bf16.mxu1 %v2012_v45 }
  0x4a   : > { %833 = vmatmul.mubr.bf16.gmra.mxu0 %v2014_v46 }
  0x4b   : > { %970 = vmatmul.mubr.bf16.gmra.mxu1 %v2015_v47  ;;  %840 = vmatprep.mubr.bf16.mxu0 %v2016_v48 }
  0x4c   : > { %977 = vmatprep.mubr.bf16.mxu1 %v2018_v49 }
  0x52   : > { %841 = vmatmul.mubr.bf16.gmra.mxu0 %v2020_v50 }
  0x53   : > { %978 = vmatmul.mubr.bf16.gmra.mxu1 %v2021_v51  ;;  %848 = vmatprep.mubr.bf16.mxu0 %v2022_v52 }
  0x54   : > { %985 = vmatprep.mubr.bf16.mxu1 %v2024_v53 }
  0x5a   : > { %849 = vmatmul.mubr.bf16.gmra.mxu0 %v2026_v54 }
  0x5b   : > { %986 = vmatmul.mubr.bf16.gmra.mxu1 %v2027_v55  ;;  %856 = vmatprep.mubr.bf16.mxu0 %v2028_v56 }
  0x5c   : > { %993 = vmatprep.mubr.bf16.mxu1 %v2030_v57 }
  0x62   : > { %857 = vmatmul.mubr.bf16.gmra.mxu0 %v2032_v58 }
  0x63   : > { %994 = vmatmul.mubr.bf16.gmra.mxu1 %v2033_v59  ;;  %864 = vmatprep.mubr.bf16.mxu0 %v2034_v60 }
  0x64   : > { %1001 = vmatprep.mubr.bf16.mxu1 %v2036_v61 }
  0x6a   : > { %865 = vmatmul.mubr.bf16.gmra.mxu0 %v2038_v62 }
  0x6b   : > { %1002 = vmatmul.mubr.bf16.gmra.mxu1 %v2039_v63  ;;  %872 = vmatprep.mubr.bf16.mxu0 %v2040_v0 }
  0x6c   : > { %1009 = vmatprep.mubr.bf16.mxu1 %v2042_v1 }
  0x72   : > { %873 = vmatmul.mubr.bf16.gmra.mxu0 %v2044_v2 }
  0x73   : > { %1010 = vmatmul.mubr.bf16.gmra.mxu1 %v2045_v3  ;;  %880 = vmatprep.mubr.bf16.mxu0 %v2046_v4 }
  0x74   : > { %1017 = vmatprep.mubr.bf16.mxu1 %v2048_v5 }
  0x7a   : > { %881 = vmatmul.mubr.bf16.gmra.mxu0 %v2050_v6 }
  0x7b   : > { %1018 = vmatmul.mubr.bf16.gmra.mxu1 %v2051_v7  ;;  %888 = vmatprep.mubr.bf16.mxu0 %v2052_v8 }
  0x7c   : > { %1025 = vmatprep.mubr.bf16.mxu1 %v2054_v9 }
  0x82   : > { %889 = vmatmul.mubr.bf16.gmra.mxu0 %v2056_v10 }
  0x83   : > { %1026 = vmatmul.mubr.bf16.gmra.mxu1 %v2057_v11  ;;  %896 = vmatprep.mubr.bf16.mxu0 %v2058_v12 }
  0x84   : > { %1033 = vmatprep.mubr.bf16.mxu1 %v2060_v13 }
  0x8a   : > { %897 = vmatmul.mubr.bf16.gmra.mxu0 %v2062_v14 }
  0x8b   : > { %1034 = vmatmul.mubr.bf16.gmra.mxu1 %v2063_v15  ;;  %904 = vmatprep.mubr.bf16.mxu0 %v2064_v16 }
  0x8c   : > { %1041 = vmatprep.mubr.bf16.mxu1 %v2066_v17 }
  0x92   : > { %905 = vmatmul.mubr.bf16.gmra.mxu0 %v2068_v18 }
  0x93   : > { %1042 = vmatmul.mubr.bf16.gmra.mxu1 %v2069_v19 }
  0xf2   : > { %v1698_v20 = vpop.f32.mrf.mxu0 }
  0xf3   : > { %v1792_v21 = vpop.f32.mrf.mxu1 }
  0xf4   : > { %v1699_v23 = vpop.f32.mrf.mxu0 }
  0xf5   : > { %v1700_v24 = vadd.f32 %v1699_v23, %v1698_v20  ;;  %v1793_v25 = vpop.f32.mrf.mxu1 }
  0xf6   : > { %v1701_v26 = vpop.f32.mrf.mxu0  ;;  %v1794_v28 = vadd.f32 %v1793_v25, %v1792_v21 }
  0xf7   : > { %v811_v27 = vadd.f32 %v1700_v24, %v2372_v22  ;;  %v1795_v29 = vpop.f32.mrf.mxu1 }
  0xf8   : > { %v1702_v30 = vpop.f32.mrf.mxu0 }
  0xf9   : > { %v948_v31 = vadd.f32 %v1794_v28, %v811_v27  ;;  %v1703_v32 = vadd.f32 %v1702_v30, %v1701_v26  ;;  %v1796_v33 = vpop.f32.mrf.mxu1 }
  0xfa   : > { %v1704_v34 = vpop.f32.mrf.mxu0  ;;  %v1797_v37 = vadd.f32 %v1796_v33, %v1795_v29 }
  0xfb   : > { %v1050_v35 = vmax.f32 %v948_v31, 0.0  ;;  %v814_v36 = vadd.f32 %v1703_v32, %v2372_v22  ;;  %v1798_v38 = vpop.f32.mrf.mxu1 }
  0xfc   : > { %v1705_v39 = vpop.f32.mrf.mxu0 }
  0xfd   : > { %v1655_v40 = vpack.c.bf16 %v1050_v35, %v1050_v35  ;;  %v951_v41 = vadd.f32 %v1797_v37, %v814_v36  ;;  %v1706_v42 = vadd.f32 %v1705_v39, %v1704_v34  ;;  %v1799_v43 = vpop.f32.mrf.mxu1 }
  0xfe   : > { %v1707_v44 = vpop.f32.mrf.mxu0  ;;  %v1800_v47 = vadd.f32 %v1799_v43, %v1798_v38 }
  0xff   : > { %1181 = vst.msk [vmem:[%s2377_s12] sm:$0xf] %vm1180_vm0, %v1655_v40  ;;  %v1051_v45 = vmax.f32 %v951_v41, 0.0  ;;  %v819_v46 = vadd.f32 %v1706_v42, %v2372_v22  ;;  %v1801_v48 = vpop.f32.mrf.mxu1 }
 0x100   : > { %v1708_v49 = vpop.f32.mrf.mxu0 }
 0x101   : > { %v1656_v50 = vpack.c.bf16 %v1051_v45, %v1051_v45  ;;  %v956_v51 = vadd.f32 %v1800_v47, %v819_v46  ;;  %v1709_v52 = vadd.f32 %v1708_v49, %v1707_v44  ;;  %v1802_v53 = vpop.f32.mrf.mxu1 }
 0x102   : > { %v1710_v54 = vpop.f32.mrf.mxu0  ;;  %v1803_v57 = vadd.f32 %v1802_v53, %v1801_v48 }
 0x103   : > { %1182 = vst.msk [vmem:[%s2377_s12 + $0x4] sm:$0xf] %vm1180_vm0, %v1656_v50  ;;  %v1052_v55 = vmax.f32 %v956_v51, 0.0  ;;  %v822_v56 = vadd.f32 %v1709_v52, %v2372_v22  ;;  %v1804_v58 = vpop.f32.mrf.mxu1 }
 0x104   : > { %v1711_v59 = vpop.f32.mrf.mxu0 }
 0x105   : > { %v1657_v60 = vpack.c.bf16 %v1052_v55, %v1052_v55  ;;  %v959_v61 = vadd.f32 %v1803_v57, %v822_v56  ;;  %v1712_v62 = vadd.f32 %v1711_v59, %v1710_v54  ;;  %v1805_v63 = vpop.f32.mrf.mxu1 }
 0x106   : > { %v1713_v0 = vpop.f32.mrf.mxu0  ;;  %v1806_v3 = vadd.f32 %v1805_v63, %v1804_v58 }
 0x107   : > { %1183 = vst.msk [vmem:[%s2377_s12 + $0x8] sm:$0xf] %vm1180_vm0, %v1657_v60  ;;  %v1053_v1 = vmax.f32 %v959_v61, 0.0  ;;  %v827_v2 = vadd.f32 %v1712_v62, %v2372_v22  ;;  %v1807_v4 = vpop.f32.mrf.mxu1 }
 0x108   : > { %v1714_v5 = vpop.f32.mrf.mxu0 }
 0x109   : > { %v1658_v6 = vpack.c.bf16 %v1053_v1, %v1053_v1  ;;  %v964_v7 = vadd.f32 %v1806_v3, %v827_v2  ;;  %v1715_v8 = vadd.f32 %v1714_v5, %v1713_v0  ;;  %v1808_v9 = vpop.f32.mrf.mxu1 }
 0x10a   : > { %v1716_v10 = vpop.f32.mrf.mxu0  ;;  %v1809_v13 = vadd.f32 %v1808_v9, %v1807_v4 }
 0x10b   : > { %1184 = vst.msk [vmem:[%s2377_s12 + $0xc] sm:$0xf] %vm1180_vm0, %v1658_v6  ;;  %v1054_v11 = vmax.f32 %v964_v7, 0.0  ;;  %v830_v12 = vadd.f32 %v1715_v8, %v2372_v22  ;;  %v1810_v14 = vpop.f32.mrf.mxu1 }
 0x10c   : > { %v1717_v15 = vpop.f32.mrf.mxu0 }
 0x10d   : > { %v1659_v16 = vpack.c.bf16 %v1054_v11, %v1054_v11  ;;  %v967_v17 = vadd.f32 %v1809_v13, %v830_v12  ;;  %v1718_v18 = vadd.f32 %v1717_v15, %v1716_v10  ;;  %v1811_v19 = vpop.f32.mrf.mxu1 }
 0x10e   : > { %v1719_v20 = vpop.f32.mrf.mxu0  ;;  %v1812_v24 = vadd.f32 %v1811_v19, %v1810_v14 }
 0x10f   : > { %1185 = vst.msk [vmem:[%s2377_s12 + $0x10] sm:$0xf] %vm1180_vm0, %v1659_v16  ;;  %v1055_v21 = vmax.f32 %v967_v17, 0.0  ;;  %v835_v23 = vadd.f32 %v1718_v18, %v2372_v22  ;;  %v1813_v25 = vpop.f32.mrf.mxu1 }
 0x110   : > { %v1720_v26 = vpop.f32.mrf.mxu0 }
 0x111   : > { %v1660_v27 = vpack.c.bf16 %v1055_v21, %v1055_v21  ;;  %v972_v28 = vadd.f32 %v1812_v24, %v835_v23  ;;  %v1721_v29 = vadd.f32 %v1720_v26, %v1719_v20  ;;  %v1814_v30 = vpop.f32.mrf.mxu1 }
 0x112   : > { %v1722_v31 = vpop.f32.mrf.mxu0  ;;  %v1815_v34 = vadd.f32 %v1814_v30, %v1813_v25 }
 0x113   : > { %1186 = vst.msk [vmem:[%s2377_s12 + $0x14] sm:$0xf] %vm1180_vm0, %v1660_v27  ;;  %v1056_v32 = vmax.f32 %v972_v28, 0.0  ;;  %v838_v33 = vadd.f32 %v1721_v29, %v2372_v22  ;;  %v1816_v35 = vpop.f32.mrf.mxu1 }
 0x114   : > { %v1723_v36 = vpop.f32.mrf.mxu0 }
 0x115   : > { %v1661_v37 = vpack.c.bf16 %v1056_v32, %v1056_v32  ;;  %v975_v38 = vadd.f32 %v1815_v34, %v838_v33  ;;  %v1724_v39 = vadd.f32 %v1723_v36, %v1722_v31  ;;  %v1817_v40 = vpop.f32.mrf.mxu1 }
 0x116   : > { %v1725_v41 = vpop.f32.mrf.mxu0  ;;  %v1818_v44 = vadd.f32 %v1817_v40, %v1816_v35 }
 0x117   : > { %1187 = vst.msk [vmem:[%s2377_s12 + $0x18] sm:$0xf] %vm1180_vm0, %v1661_v37  ;;  %v1057_v42 = vmax.f32 %v975_v38, 0.0  ;;  %v843_v43 = vadd.f32 %v1724_v39, %v2372_v22  ;;  %v1819_v45 = vpop.f32.mrf.mxu1 }
 0x118   : > { %v1726_v46 = vpop.f32.mrf.mxu0 }
 0x119   : > { %v1662_v47 = vpack.c.bf16 %v1057_v42, %v1057_v42  ;;  %v980_v48 = vadd.f32 %v1818_v44, %v843_v43  ;;  %v1727_v49 = vadd.f32 %v1726_v46, %v1725_v41  ;;  %v1820_v50 = vpop.f32.mrf.mxu1 }
 0x11a   : > { %v1728_v51 = vpop.f32.mrf.mxu0  ;;  %v1821_v54 = vadd.f32 %v1820_v50, %v1819_v45 }
 0x11b   : > { %1188 = vst.msk [vmem:[%s2377_s12 + $0x1c] sm:$0xf] %vm1180_vm0, %v1662_v47  ;;  %v1058_v52 = vmax.f32 %v980_v48, 0.0  ;;  %v846_v53 = vadd.f32 %v1727_v49, %v2372_v22  ;;  %v1822_v55 = vpop.f32.mrf.mxu1 }
 0x11c   : > { %v1729_v56 = vpop.f32.mrf.mxu0 }
 0x11d   : > { %v1663_v57 = vpack.c.bf16 %v1058_v52, %v1058_v52  ;;  %v983_v58 = vadd.f32 %v1821_v54, %v846_v53  ;;  %v1730_v59 = vadd.f32 %v1729_v56, %v1728_v51  ;;  %v1823_v60 = vpop.f32.mrf.mxu1 }
 0x11e   : > { %v1731_v61 = vpop.f32.mrf.mxu0  ;;  %v1824_v0 = vadd.f32 %v1823_v60, %v1822_v55 }
 0x11f   : > { %1189 = vst.msk [vmem:[%s2377_s12 + $0x20] sm:$0xf] %vm1180_vm0, %v1663_v57  ;;  %v1059_v62 = vmax.f32 %v983_v58, 0.0  ;;  %v851_v63 = vadd.f32 %v1730_v59, %v2372_v22  ;;  %v1825_v1 = vpop.f32.mrf.mxu1 }
 0x120   : > { %v1732_v2 = vpop.f32.mrf.mxu0 }
 0x121   : > { %v1664_v3 = vpack.c.bf16 %v1059_v62, %v1059_v62  ;;  %v988_v4 = vadd.f32 %v1824_v0, %v851_v63  ;;  %v1733_v5 = vadd.f32 %v1732_v2, %v1731_v61  ;;  %v1826_v6 = vpop.f32.mrf.mxu1 }
 0x122   : > { %v1734_v7 = vpop.f32.mrf.mxu0  ;;  %v1827_v10 = vadd.f32 %v1826_v6, %v1825_v1 }
 0x123   : > { %1190 = vst.msk [vmem:[%s2377_s12 + $0x24] sm:$0xf] %vm1180_vm0, %v1664_v3  ;;  %v1060_v8 = vmax.f32 %v988_v4, 0.0  ;;  %v854_v9 = vadd.f32 %v1733_v5, %v2372_v22  ;;  %v1828_v11 = vpop.f32.mrf.mxu1 }
 0x124   : > { %v1735_v12 = vpop.f32.mrf.mxu0 }
 0x125   : > { %v1665_v13 = vpack.c.bf16 %v1060_v8, %v1060_v8  ;;  %v991_v14 = vadd.f32 %v1827_v10, %v854_v9  ;;  %v1736_v15 = vadd.f32 %v1735_v12, %v1734_v7  ;;  %v1829_v16 = vpop.f32.mrf.mxu1 }
 0x126   : > { %v1737_v17 = vpop.f32.mrf.mxu0  ;;  %v1830_v20 = vadd.f32 %v1829_v16, %v1828_v11 }
 0x127   : > { %1191 = vst.msk [vmem:[%s2377_s12 + $0x28] sm:$0xf] %vm1180_vm0, %v1665_v13  ;;  %v1061_v18 = vmax.f32 %v991_v14, 0.0  ;;  %v859_v19 = vadd.f32 %v1736_v15, %v2372_v22  ;;  %v1831_v21 = vpop.f32.mrf.mxu1 }
 0x128   : > { %v1738_v23 = vpop.f32.mrf.mxu0 }
 0x129   : > { %v1666_v24 = vpack.c.bf16 %v1061_v18, %v1061_v18  ;;  %v996_v25 = vadd.f32 %v1830_v20, %v859_v19  ;;  %v1739_v26 = vadd.f32 %v1738_v23, %v1737_v17  ;;  %v1832_v27 = vpop.f32.mrf.mxu1 }
 0x12a   : > { %v1740_v28 = vpop.f32.mrf.mxu0  ;;  %v1833_v31 = vadd.f32 %v1832_v27, %v1831_v21 }
 0x12b   : > { %1192 = vst.msk [vmem:[%s2377_s12 + $0x2c] sm:$0xf] %vm1180_vm0, %v1666_v24  ;;  %v1062_v29 = vmax.f32 %v996_v25, 0.0  ;;  %v862_v30 = vadd.f32 %v1739_v26, %v2372_v22  ;;  %v1834_v32 = vpop.f32.mrf.mxu1 }
 0x12c   : > { %v1741_v33 = vpop.f32.mrf.mxu0 }
 0x12d   : > { %v1667_v34 = vpack.c.bf16 %v1062_v29, %v1062_v29  ;;  %v999_v35 = vadd.f32 %v1833_v31, %v862_v30  ;;  %v1742_v36 = vadd.f32 %v1741_v33, %v1740_v28  ;;  %v1835_v37 = vpop.f32.mrf.mxu1 }
 0x12e   : > { %v1743_v38 = vpop.f32.mrf.mxu0  ;;  %v1836_v41 = vadd.f32 %v1835_v37, %v1834_v32 }
 0x12f   : > { %1193 = vst.msk [vmem:[%s2377_s12 + $0x30] sm:$0xf] %vm1180_vm0, %v1667_v34  ;;  %v1063_v39 = vmax.f32 %v999_v35, 0.0  ;;  %v867_v40 = vadd.f32 %v1742_v36, %v2372_v22  ;;  %v1837_v42 = vpop.f32.mrf.mxu1 }
 0x130   : > { %v1744_v43 = vpop.f32.mrf.mxu0 }
 0x131   : > { %v1668_v44 = vpack.c.bf16 %v1063_v39, %v1063_v39  ;;  %v1004_v45 = vadd.f32 %v1836_v41, %v867_v40  ;;  %v1745_v46 = vadd.f32 %v1744_v43, %v1743_v38  ;;  %v1838_v47 = vpop.f32.mrf.mxu1 }
 0x132   : > { %v1746_v48 = vpop.f32.mrf.mxu0  ;;  %v1839_v51 = vadd.f32 %v1838_v47, %v1837_v42 }
 0x133   : > { %1194 = vst.msk [vmem:[%s2377_s12 + $0x34] sm:$0xf] %vm1180_vm0, %v1668_v44  ;;  %v1064_v49 = vmax.f32 %v1004_v45, 0.0  ;;  %v870_v50 = vadd.f32 %v1745_v46, %v2372_v22  ;;  %v1840_v52 = vpop.f32.mrf.mxu1 }
 0x134   : > { %v1747_v53 = vpop.f32.mrf.mxu0 }
 0x135   : > { %v1669_v54 = vpack.c.bf16 %v1064_v49, %v1064_v49  ;;  %v1007_v55 = vadd.f32 %v1839_v51, %v870_v50  ;;  %v1748_v56 = vadd.f32 %v1747_v53, %v1746_v48  ;;  %v1841_v57 = vpop.f32.mrf.mxu1 }
 0x136   : > { %v1749_v58 = vpop.f32.mrf.mxu0  ;;  %v1842_v61 = vadd.f32 %v1841_v57, %v1840_v52 }
 0x137   : > { %1195 = vst.msk [vmem:[%s2377_s12 + $0x38] sm:$0xf] %vm1180_vm0, %v1669_v54  ;;  %v1065_v59 = vmax.f32 %v1007_v55, 0.0  ;;  %v875_v60 = vadd.f32 %v1748_v56, %v2372_v22  ;;  %v1843_v62 = vpop.f32.mrf.mxu1 }
 0x138   : > { %v1750_v63 = vpop.f32.mrf.mxu0 }
 0x139   : > { %v1670_v0 = vpack.c.bf16 %v1065_v59, %v1065_v59  ;;  %v1012_v1 = vadd.f32 %v1842_v61, %v875_v60  ;;  %v1751_v2 = vadd.f32 %v1750_v63, %v1749_v58  ;;  %v1844_v3 = vpop.f32.mrf.mxu1 }
 0x13a   : > { %v1752_v4 = vpop.f32.mrf.mxu0  ;;  %v1845_v7 = vadd.f32 %v1844_v3, %v1843_v62 }
 0x13b   : > { %1196 = vst.msk [vmem:[%s2377_s12 + $0x3c] sm:$0xf] %vm1180_vm0, %v1670_v0  ;;  %v1066_v5 = vmax.f32 %v1012_v1, 0.0  ;;  %v878_v6 = vadd.f32 %v1751_v2, %v2372_v22  ;;  %v1846_v8 = vpop.f32.mrf.mxu1 }
 0x13c   : > { %v1753_v9 = vpop.f32.mrf.mxu0 }
 0x13d   : > { %v1671_v10 = vpack.c.bf16 %v1066_v5, %v1066_v5  ;;  %v1015_v11 = vadd.f32 %v1845_v7, %v878_v6  ;;  %v1754_v12 = vadd.f32 %v1753_v9, %v1752_v4  ;;  %v1847_v13 = vpop.f32.mrf.mxu1 }
 0x13e   : > { %v1755_v14 = vpop.f32.mrf.mxu0  ;;  %v1848_v17 = vadd.f32 %v1847_v13, %v1846_v8 }
 0x13f   : > { %1197 = vst.msk [vmem:[%s2377_s12 + $0x40] sm:$0xf] %vm1180_vm0, %v1671_v10  ;;  %v1067_v15 = vmax.f32 %v1015_v11, 0.0  ;;  %v883_v16 = vadd.f32 %v1754_v12, %v2372_v22  ;;  %v1849_v18 = vpop.f32.mrf.mxu1 }
 0x140   : > { %v1756_v19 = vpop.f32.mrf.mxu0 }
 0x141   : > { %v1672_v20 = vpack.c.bf16 %v1067_v15, %v1067_v15  ;;  %v1020_v21 = vadd.f32 %v1848_v17, %v883_v16  ;;  %v1757_v23 = vadd.f32 %v1756_v19, %v1755_v14  ;;  %v1850_v24 = vpop.f32.mrf.mxu1 }
 0x142   : > { %v1758_v25 = vpop.f32.mrf.mxu0  ;;  %v1851_v28 = vadd.f32 %v1850_v24, %v1849_v18 }
 0x143   : > { %1198 = vst.msk [vmem:[%s2377_s12 + $0x44] sm:$0xf] %vm1180_vm0, %v1672_v20  ;;  %v1068_v26 = vmax.f32 %v1020_v21, 0.0  ;;  %v886_v27 = vadd.f32 %v1757_v23, %v2372_v22  ;;  %v1852_v29 = vpop.f32.mrf.mxu1 }
 0x144   : > { %v1759_v30 = vpop.f32.mrf.mxu0 }
 0x145   : > { %v1673_v31 = vpack.c.bf16 %v1068_v26, %v1068_v26  ;;  %v1023_v32 = vadd.f32 %v1851_v28, %v886_v27  ;;  %v1760_v33 = vadd.f32 %v1759_v30, %v1758_v25  ;;  %v1853_v34 = vpop.f32.mrf.mxu1 }
 0x146   : > { %v1761_v35 = vpop.f32.mrf.mxu0  ;;  %v1854_v38 = vadd.f32 %v1853_v34, %v1852_v29 }
 0x147   : > { %1199 = vst.msk [vmem:[%s2377_s12 + $0x48] sm:$0xf] %vm1180_vm0, %v1673_v31  ;;  %v1069_v36 = vmax.f32 %v1023_v32, 0.0  ;;  %v891_v37 = vadd.f32 %v1760_v33, %v2372_v22  ;;  %v1855_v39 = vpop.f32.mrf.mxu1 }
 0x148   : > { %v1762_v40 = vpop.f32.mrf.mxu0 }
 0x149   : > { %v1674_v41 = vpack.c.bf16 %v1069_v36, %v1069_v36  ;;  %v1028_v42 = vadd.f32 %v1854_v38, %v891_v37  ;;  %v1763_v43 = vadd.f32 %v1762_v40, %v1761_v35  ;;  %v1856_v44 = vpop.f32.mrf.mxu1 }
 0x14a   : > { %v1764_v45 = vpop.f32.mrf.mxu0  ;;  %v1857_v48 = vadd.f32 %v1856_v44, %v1855_v39 }
 0x14b   : > { %1200 = vst.msk [vmem:[%s2377_s12 + $0x4c] sm:$0xf] %vm1180_vm0, %v1674_v41  ;;  %v1070_v46 = vmax.f32 %v1028_v42, 0.0  ;;  %v894_v47 = vadd.f32 %v1763_v43, %v2372_v22  ;;  %v1858_v49 = vpop.f32.mrf.mxu1 }
 0x14c   : > { %v1765_v50 = vpop.f32.mrf.mxu0 }
 0x14d   : > { %v1675_v51 = vpack.c.bf16 %v1070_v46, %v1070_v46  ;;  %v1031_v52 = vadd.f32 %v1857_v48, %v894_v47  ;;  %v1766_v53 = vadd.f32 %v1765_v50, %v1764_v45  ;;  %v1859_v54 = vpop.f32.mrf.mxu1 }
 0x14e   : > { %v1767_v55 = vpop.f32.mrf.mxu0  ;;  %v1860_v58 = vadd.f32 %v1859_v54, %v1858_v49 }
 0x14f   : > { %1201 = vst.msk [vmem:[%s2377_s12 + $0x50] sm:$0xf] %vm1180_vm0, %v1675_v51  ;;  %v1071_v56 = vmax.f32 %v1031_v52, 0.0  ;;  %v899_v57 = vadd.f32 %v1766_v53, %v2372_v22  ;;  %v1861_v59 = vpop.f32.mrf.mxu1 }
 0x150   : > { %v1768_v60 = vpop.f32.mrf.mxu0 }
 0x151   : > { %v1676_v61 = vpack.c.bf16 %v1071_v56, %v1071_v56  ;;  %v1036_v62 = vadd.f32 %v1860_v58, %v899_v57  ;;  %v1769_v63 = vadd.f32 %v1768_v60, %v1767_v55  ;;  %v1862_v0 = vpop.f32.mrf.mxu1 }
 0x152   : > { %v1770_v1 = vpop.f32.mrf.mxu0  ;;  %v1863_v4 = vadd.f32 %v1862_v0, %v1861_v59 }
 0x153   : > { %1202 = vst.msk [vmem:[%s2377_s12 + $0x54] sm:$0xf] %vm1180_vm0, %v1676_v61  ;;  %v1072_v2 = vmax.f32 %v1036_v62, 0.0  ;;  %v902_v3 = vadd.f32 %v1769_v63, %v2372_v22  ;;  %v1864_v5 = vpop.f32.mrf.mxu1 }
 0x154   : > { %v1771_v6 = vpop.f32.mrf.mxu0 }
 0x155   : > { %v1677_v7 = vpack.c.bf16 %v1072_v2, %v1072_v2  ;;  %v1039_v8 = vadd.f32 %v1863_v4, %v902_v3  ;;  %v1772_v9 = vadd.f32 %v1771_v6, %v1770_v1  ;;  %v1865_v10 = vpop.f32.mrf.mxu1 }
 0x156   : > { %v1773_v11 = vpop.f32.mrf.mxu0  ;;  %v1866_v14 = vadd.f32 %v1865_v10, %v1864_v5 }
 0x157   : > { %1203 = vst.msk [vmem:[%s2377_s12 + $0x58] sm:$0xf] %vm1180_vm0, %v1677_v7  ;;  %v1073_v12 = vmax.f32 %v1039_v8, 0.0  ;;  %v907_v13 = vadd.f32 %v1772_v9, %v2372_v22  ;;  %v1867_v15 = vpop.f32.mrf.mxu1 }
 0x158   : > { %v1774_v16 = vpop.f32.mrf.mxu0 }
 0x159   : > { %v1678_v17 = vpack.c.bf16 %v1073_v12, %v1073_v12  ;;  %v1044_v18 = vadd.f32 %v1866_v14, %v907_v13  ;;  %v1775_v19 = vadd.f32 %v1774_v16, %v1773_v11  ;;  %v1868_v20 = vpop.f32.mrf.mxu1 }
 0x15a   : > { %v1869_v24 = vadd.f32 %v1868_v20, %v1867_v15 }
 0x15b   : > { %1204 = vst.msk [vmem:[%s2377_s12 + $0x5c] sm:$0xf] %vm1180_vm0, %v1678_v17  ;;  %v1074_v21 = vmax.f32 %v1044_v18, 0.0  ;;  %v910_v23 = vadd.f32 %v1775_v19, %v2372_v22 }
 0x15d   : > { %v1679_v25 = vpack.c.bf16 %v1074_v21, %v1074_v21  ;;  %v1047_v26 = vadd.f32 %v1869_v24, %v910_v23 }
 0x15f   : > { %1205 = vst.msk [vmem:[%s2377_s12 + $0x60] sm:$0xf] %vm1180_vm0, %v1679_v25  ;;  %v1075_v27 = vmax.f32 %v1047_v26, 0.0  ;;  %1213 = sbr.rel (!%p2207_p4) target bundleno = 427 (0x1ab), region = 36 }
 0x161   : > { %v1680_v28 = vpack.c.bf16 %v1075_v27, %v1075_v27 }
 0x163   : > { %1206 = vst.msk [vmem:[%s2377_s12 + $0x64] sm:$0xf] %vm1180_vm0, %v1680_v28 }
 0x164   : > { %s2585_s7 = smov (!%p1216_p8, %s1215_s7), 26 }
 0x165   : > { %s1642_s14 = sshll.u32 %s2585_s7, 6 }
 0x166   : > { %p1645_p9 = scmp.eq.s32.totalorder %s1642_s14, 0 }
 0x167   : > { %2070 = sdivrem.u32 (!%p1645_p9), %s2585_s7, 26 }
 0x168   : > { %1224 = sbr.rel (%p1645_p9) target bundleno = 427 (0x1ab), region = 40 }
 0x170   : > { %s2468_s20 = spop.drf %2070 }
 0x171   : > { %p1646_p10 = scmp.le.s32.totalorder %s2468_s20, 0 }
 0x172   : > { %s2578_s15 = smov (!%p1646_p10), %s2462_s11  ;;  %s2579_s30 = smov (!%p1646_p10), %s2377_s12 }
 0x173   : > { %1481 = sbr.rel (%p1646_p10) target bundleno = 402 (0x192), region = 112  ;;  %s2477_s17 = smov (!%p1646_p10), 0  }
 0x174   : > { %s2479_s18 = smov (!%p1646_p10), 0  }
 0x178 LB: >> { %v1242_v22 = vld [vmem:[%s2136_s30] sm:$0xf]  ;;  %v1244_v29 = vld [vmem:[%s2136_s30 + $0x4] sm:$0xf]  ;;  %v1246_v30 = vld [vmem:[%s2136_s30 + $0x8] sm:$0xf]  ;;  %s2144_s18 = sphi %s2479_s18, %s1236_s18   ;;  %s2140_s17 = sphi %s2477_s17, %s2580_s17   ;;  %s2136_s30 = sphi %s2579_s30, %s1299_s30   ;;  %s2132_s15 = sphi %s2578_s15, %s1300_s15  }
 0x179   : >> { %1243 = vst [vmem:[%s2132_s15] sm:$0xf] %v1242_v22  ;;  %1245 = vst [vmem:[%s2132_s15 + $0x4] sm:$0xf] %v1244_v29  ;;  %v1248_v31 = vld [vmem:[%s2136_s30 + $0xc] sm:$0xf]  ;;  %s1294_s21 = sadd.s32 1, %s2140_s17 }
 0x17a   : >> { %1247 = vst [vmem:[%s2132_s15 + $0x8] sm:$0xf] %v1246_v30  ;;  %v1250_v32 = vld [vmem:[%s2136_s30 + $0x10] sm:$0xf]  ;;  %v1252_v33 = vld [vmem:[%s2136_s30 + $0x14] sm:$0xf]  ;;  %p1295_p11 = scmp.ge.s32.totalorder %s1294_s21, %s2468_s20 }
 0x17b   : >> { %1249 = vst [vmem:[%s2132_s15 + $0xc] sm:$0xf] %v1248_v31  ;;  %1251 = vst [vmem:[%s2132_s15 + $0x10] sm:$0xf] %v1250_v32  ;;  %v1254_v34 = vld [vmem:[%s2136_s30 + $0x18] sm:$0xf] }
 0x17c   : >> { %1253 = vst [vmem:[%s2132_s15 + $0x14] sm:$0xf] %v1252_v33  ;;  %v1256_v35 = vld [vmem:[%s2136_s30 + $0x1c] sm:$0xf]  ;;  %v1258_v36 = vld [vmem:[%s2136_s30 + $0x20] sm:$0xf] }
 0x17d   : >> { %1255 = vst [vmem:[%s2132_s15 + $0x18] sm:$0xf] %v1254_v34  ;;  %1257 = vst [vmem:[%s2132_s15 + $0x1c] sm:$0xf] %v1256_v35  ;;  %v1260_v37 = vld [vmem:[%s2136_s30 + $0x24] sm:$0xf] }
 0x17e   : >> { %1259 = vst [vmem:[%s2132_s15 + $0x20] sm:$0xf] %v1258_v36  ;;  %v1262_v38 = vld [vmem:[%s2136_s30 + $0x28] sm:$0xf]  ;;  %v1264_v39 = vld [vmem:[%s2136_s30 + $0x2c] sm:$0xf] }
 0x17f   : >> { %1261 = vst [vmem:[%s2132_s15 + $0x24] sm:$0xf] %v1260_v37  ;;  %1263 = vst [vmem:[%s2132_s15 + $0x28] sm:$0xf] %v1262_v38  ;;  %v1266_v40 = vld [vmem:[%s2136_s30 + $0x30] sm:$0xf] }
 0x180   : >> { %1265 = vst [vmem:[%s2132_s15 + $0x2c] sm:$0xf] %v1264_v39  ;;  %v1268_v41 = vld [vmem:[%s2136_s30 + $0x34] sm:$0xf]  ;;  %v1270_v42 = vld [vmem:[%s2136_s30 + $0x38] sm:$0xf] }
 0x181   : >> { %1267 = vst [vmem:[%s2132_s15 + $0x30] sm:$0xf] %v1266_v40  ;;  %1269 = vst [vmem:[%s2132_s15 + $0x34] sm:$0xf] %v1268_v41  ;;  %v1272_v43 = vld [vmem:[%s2136_s30 + $0x3c] sm:$0xf] }
 0x182   : >> { %1271 = vst [vmem:[%s2132_s15 + $0x38] sm:$0xf] %v1270_v42  ;;  %v1274_v44 = vld [vmem:[%s2136_s30 + $0x40] sm:$0xf]  ;;  %v1276_v45 = vld [vmem:[%s2136_s30 + $0x44] sm:$0xf] }
 0x183   : >> { %1273 = vst [vmem:[%s2132_s15 + $0x3c] sm:$0xf] %v1272_v43  ;;  %1275 = vst [vmem:[%s2132_s15 + $0x40] sm:$0xf] %v1274_v44  ;;  %v1278_v46 = vld [vmem:[%s2136_s30 + $0x48] sm:$0xf] }
 0x184   : >> { %1277 = vst [vmem:[%s2132_s15 + $0x44] sm:$0xf] %v1276_v45  ;;  %v1280_v47 = vld [vmem:[%s2136_s30 + $0x4c] sm:$0xf]  ;;  %v1282_v48 = vld [vmem:[%s2136_s30 + $0x50] sm:$0xf] }
 0x185   : >> { %1279 = vst [vmem:[%s2132_s15 + $0x48] sm:$0xf] %v1278_v46  ;;  %1281 = vst [vmem:[%s2132_s15 + $0x4c] sm:$0xf] %v1280_v47  ;;  %v1284_v49 = vld [vmem:[%s2136_s30 + $0x54] sm:$0xf] }
 0x186   : >> { %1283 = vst [vmem:[%s2132_s15 + $0x50] sm:$0xf] %v1282_v48  ;;  %v1286_v50 = vld [vmem:[%s2136_s30 + $0x58] sm:$0xf]  ;;  %v1288_v51 = vld [vmem:[%s2136_s30 + $0x5c] sm:$0xf] }
 0x187   : >> { %1285 = vst [vmem:[%s2132_s15 + $0x54] sm:$0xf] %v1284_v49  ;;  %1287 = vst [vmem:[%s2132_s15 + $0x58] sm:$0xf] %v1286_v50  ;;  %v1290_v52 = vld [vmem:[%s2136_s30 + $0x60] sm:$0xf] }
 0x188   : >> { %1289 = vst [vmem:[%s2132_s15 + $0x5c] sm:$0xf] %v1288_v51  ;;  %v1292_v53 = vld [vmem:[%s2136_s30 + $0x64] sm:$0xf]  ;;  %1291 = vst [vmem:[%s2132_s15 + $0x60] sm:$0xf] %v1290_v52 }
 0x189   : >> { %1293 = vst [vmem:[%s2132_s15 + $0x64] sm:$0xf] %v1292_v53  ;;  %s2587_s21 = smov (%p1295_p11, %s1294_s21), 0  ;;  %s1236_s18 = sadd.s32 1, %s2144_s18  }
 0x18a   : >> { %s1297_s22 = smul.u32 104, %s2587_s21  ;;  %p1235_p12 = scmp.ge.s32.totalorder %s1236_s18, %s2468_s20 }
 0x18b   : >> { %s2580_s17 = smov %s2587_s21 }
 0x18c   : >> { %s1299_s30 = scalar_lea.vmem %s2377_s12, %s1297_s22 [#allocation2]   ;;  %s1300_s15 = scalar_lea.vmem %s2462_s11, %s1297_s22  }
 0x18d   : > { %1238 = sbr.rel (!%p1235_p12) target bundleno = 376 (0x178), region = 118 }
 0x192 PF: > { %2072 = sdivrem.u32 %s2585_s7, 26 }
 0x193   : > { %s1647_s23 = smul.u32 104, %s2468_s20 }
 0x195   : > { %s1305_s24 = scalar_lea.vmem %s2377_s12, %s1647_s23 [#allocation2]   ;;  %s1307_s25 = scalar_lea.vmem %s2462_s11, %s1647_s23  }
 0x19b   : > { %s2073_s26 = spop.drf %2072 }
 0x19c   : > { %p1649_p13 = scmp.le.s32.totalorder %s2073_s26, 0 }
 0x19d   : > { %s2146_s27 = smov (!%p1649_p13), %s1307_s25   ;;  %s2150_s28 = smov (!%p1649_p13), %s1305_s24  }
 0x19e   : > { %1495 = sbr.rel (%p1649_p13) target bundleno = 427 (0x1ab), region = 123  ;;  %s2154_s29 = smov (!%p1649_p13), 0  }
 0x19f   : > { %s2158_s4 = smov (!%p1649_p13), 0  }
 0x1a3 LB: >> { %v1317_v54 = vld [vmem:[%s2152_s28] sm:$0xf]  ;;  %s1319_s5 = sadd.s32 1, %s2156_s29  ;;  %s1311_s4 = sadd.s32 1, %s2160_s4   ;;  %s2160_s4 = sphi %s2158_s4, %s1311_s4   ;;  %s2156_s29 = sphi %s2154_s29, %s2155_s29   ;;  %s2152_s28 = sphi %s2150_s28, %s1324_s28   ;;  %s2148_s27 = sphi %s2146_s27, %s1325_s27  }
 0x1a4   : >> { %1318 = vst [vmem:[%s2148_s27] sm:$0xf] %v1317_v54  ;;  %p1320_p0 = scmp.ge.s32.totalorder %s1319_s5, %s2073_s26  ;;  %p1310_p1 = scmp.ge.s32.totalorder %s1311_s4, %s2073_s26 }
 0x1a6   : >> { %s2589_s5 = smov (%p1320_p0, %s1319_s5), 0  ;;  %1313 = sbr.rel (!%p1310_p1) target bundleno = 419 (0x1a3), region = 129 }
 0x1a7   : >> { %s1650_s6 = sshll.u32 %s2589_s5, 2  ;;  %s2155_s29 = smov %s2589_s5  }
 0x1a8   : >> { %s1324_s28 = scalar_lea.vmem %s1305_s24, %s1650_s6 [#allocation2]   ;;  %s1325_s27 = scalar_lea.vmem %s1307_s25, %s1650_s6  }
 0x1ab PF: > { %p10_p2 = scmp.ge.s32.totalorder %s2197_s16, 4   ;;  %s2581_s12 = smov %s2124_s13 }
 0x1ac   : > { %s2582_s13 = smov %s2205_s19  ;;  %s2583_s14 = smov %s2197_s16 }
 0x1ad   :  { %12 = sbr.rel (!%p10_p2) target bundleno = 2 (0x2), region = 140 }

// kernel: conv_encoder_forward.6
= control target key start
LH: loop header
LB: loop body
LE: loop exit
PB: predicated region body
PF: predicated region fallthrough
CT: control target
= control target key end

     0   :  { %s1322_s12 = smov 0   ;;  %s1324_s13 = smov 0   ;;  %s1529_s0 = inlined_call_operand.vmem [shape: bf16[72,512], index: 0, kind: input, shape index: {}]   ;;  %s1530_s1 = inlined_call_operand.vmem [shape: bf16[512,64], index: 1, kind: input, shape index: {}]   ;;  %s1531_s2 = inlined_call_operand.vmem [shape: f32[1,64], index: 2, kind: input, shape index: {}]   ;;  %s1532_s3 = inlined_call_operand.vmem [shape: bf16[72,64], index: 3, kind: output, shape index: {}]  }
   0x1   :  { %s1326_s14 = smov 0  }
   0x2 LB: > { %s1335_s15 = sadd.s32 4294967295, %s1268_s14   ;;  %s1337_s16 = sadd.s32 1, %s1268_s14   ;;  %s1268_s14 = sphi %s1326_s14, %s1539_s14   ;;  %s1264_s13 = sphi %s1324_s13, %s1538_s13   ;;  %s1260_s12 = sphi %s1322_s12, %s1537_s12  }
   0x3   : > { %s85_s17 = ssub.s32 %s1268_s14, %s1337_s16  ;;  %s88_s18 = sadd.s32 1, %s1264_s13 }
   0x4   : > { %p86_p0 = scmp.eq.s32.totalorder %s85_s17, 0  ;;  %p98_p1 = scmp.ne.s32.totalorder %s1264_s13, %s1260_s12 }
   0x5   : > { %p99_p2 = scmp.eq.s32.totalorder %s1335_s15, 1  ;;  %p928_p3 = scmp.ge.s32.totalorder %s1268_s14, 1 }
   0x6   : > { %s1345_s19 = scalar_select %p86_p0, %s1264_s13, %s88_s18  }
   0x7   : > { %p1347_p4 = por %p99_p2, %p98_p1  ;;  %p149_p5 = scmp.lt.s32.totalorder %s1268_s14, 3 }
   0x9   : > { %p150_p6 = pnand %p928_p3, %p149_p5 }
   0xa   : > { %s1397_s30 = smul.u32 (!%p150_p6), 6, %s1335_s15  ;;  %s175_s5 = sand.u32 (!%p150_p6), 1, %s1260_s12  }
   0xb   : > { %153 = sbr.rel (%p150_p6) target bundleno = 332 (0x14c), region = 32 }
   0xc   : > { %p184_p7 = scmp.lt.s32.totalorder (!%p150_p6), %s1397_s30, 8  ;;  %s1070_s6 = smul.u32 (!%p150_p6), 24, %s175_s5 }
   0xe   : > { %s1459_s12 = scalar_lea.vmem (!%p150_p6), [#allocation2], %s1070_s6  }
  0x10   : > { %v1160_v0 = vld [vmem:[%s1530_s1 + $0x78] sm:$0xff]   ;;  %v1164_v4 = vld [vmem:[%s1530_s1 + $0x70] sm:$0xff]   ;;  %v1168_v8 = vld [vmem:[%s1530_s1 + $0x68] sm:$0xff]   ;;  %s185_s26 = scalar_select %p184_p7, %s1397_s30, 8  ;;  %vm680_vm0 = vcmask 519168  }
  0x11   : > { %v1161_v1 = vld [vmem:[%s1530_s1 + $0xf8] sm:$0xff]   ;;  %1002 = vmatprep.subr.bf16.mxu0 %v1160_v0  ;;  %v1165_v5 = vld [vmem:[%s1530_s1 + $0xf0] sm:$0xff]   ;;  %v1169_v9 = vld [vmem:[%s1530_s1 + $0xe8] sm:$0xff]   ;;  %s695_s7 = ssub.s32 (%p1347_p4), 9, %s1397_s30  ;;  %s1001_s8 = smul.u32 (%p1347_p4), 24, %s1335_s15 }
  0x12   : > { %v1162_v2 = vld [vmem:[%s1530_s1 + $0x38] sm:$0xff]   ;;  %1036 = vmatprep.subr.bf16.mxu1 %v1161_v1  ;;  %v1166_v6 = vld [vmem:[%s1530_s1 + $0x30] sm:$0xff]   ;;  %v1170_v10 = vld [vmem:[%s1530_s1 + $0x28] sm:$0xff]   ;;  %s994_s9 = sshll.u32 %s185_s26, 4  ;;  %p696_p8 = scmp.lt.s32.totalorder (%p1347_p4), %s695_s7, 6 }
  0x13   : > { %v1163_v3 = vld [vmem:[%s1530_s1 + $0xb8] sm:$0xff]   ;;  %1003 = vmatpush3.bf16.msra.mxu0 %v1162_v2  ;;  %v1167_v7 = vld [vmem:[%s1530_s1 + $0xb0] sm:$0xff]   ;;  %v1171_v11 = vld [vmem:[%s1530_s1 + $0xa8] sm:$0xff]   ;;  %s188_s24 = scalar_lea.vmem %s1529_s0, %s994_s9  ;;  %s1480_s11 = scalar_lea.vmem (%p1347_p4), %s1532_s3, %s1001_s8  }
  0x14   : > { %1037 = vmatpush3.bf16.msra.mxu1 %v1163_v3  ;;  %1004 = vmatprep.subr.bf16.mxu0 %v1164_v4  ;;  %v1172_v12 = vld [vmem:[%s1530_s1 + $0x60] sm:$0xff]   ;;  %v1176_v16 = vld [vmem:[%s1530_s1 + $0x58] sm:$0xff]   ;;  %v1180_v20 = vld [vmem:[%s1530_s1 + $0x50] sm:$0xff]  }
  0x15   : > { %1038 = vmatprep.subr.bf16.mxu1 %v1165_v5  ;;  %v1173_v13 = vld [vmem:[%s1530_s1 + $0xe0] sm:$0xff]   ;;  %v1177_v17 = vld [vmem:[%s1530_s1 + $0xd8] sm:$0xff]   ;;  %v1181_v21 = vld [vmem:[%s1530_s1 + $0xd0] sm:$0xff]  }
  0x16   : > { %v1174_v14 = vld [vmem:[%s1530_s1 + $0x20] sm:$0xff]   ;;  %v1178_v18 = vld [vmem:[%s1530_s1 + $0x18] sm:$0xff]   ;;  %v1182_v22 = vld [vmem:[%s1530_s1 + $0x10] sm:$0xff]  }
  0x17   : > { %1005 = vmatpush3.bf16.msra.mxu0 %v1166_v6  ;;  %v1175_v15 = vld [vmem:[%s1530_s1 + $0xa0] sm:$0xff]   ;;  %v1179_v19 = vld [vmem:[%s1530_s1 + $0x98] sm:$0xff]   ;;  %v1183_v23 = vld [vmem:[%s1530_s1 + $0x90] sm:$0xff]  }
  0x18   : > { %1039 = vmatpush3.bf16.msra.mxu1 %v1167_v7  ;;  %1006 = vmatprep.subr.bf16.mxu0 %v1168_v8  ;;  %v1184_v24 = vld [vmem:[%s1530_s1 + $0x48] sm:$0xff]   ;;  %v1188_v28 = vld [vmem:[%s1530_s1 + $0x40] sm:$0xff]  }
  0x19   : > { %1040 = vmatprep.subr.bf16.mxu1 %v1169_v9  ;;  %v1185_v25 = vld [vmem:[%s1530_s1 + $0xc8] sm:$0xff]   ;;  %v1189_v29 = vld [vmem:[%s1530_s1 + $0xc0] sm:$0xff]  }
  0x1a   : > { %v1186_v26 = vld [vmem:[%s1530_s1 + $0x8] sm:$0xff]   ;;  %v1190_v30 = vld [vmem:[%s1530_s1] sm:$0xff]  }
  0x1b   : > { %1007 = vmatpush3.bf16.msra.mxu0 %v1170_v10  ;;  %v1187_v27 = vld [vmem:[%s1530_s1 + $0x88] sm:$0xff]   ;;  %v1191_v31 = vld [vmem:[%s1530_s1 + $0x80] sm:$0xff]  }
  0x1c   : > { %1041 = vmatpush3.bf16.msra.mxu1 %v1171_v11  ;;  %1008 = vmatprep.subr.bf16.mxu0 %v1172_v12  ;;  %v1192_v32 = vld [vmem:[%s188_s24] ss:$16 sps:$4 sm:$0xff]   ;;  %v1194_v33 = vld [vmem:[%s188_s24 + $0x4] ss:$16 sps:$4 sm:$0xff]   ;;  %v1195_v34 = vld [vmem:[%s188_s24 + $0x8] ss:$16 sps:$4 sm:$0xff]  }
  0x1d   : > { %1042 = vmatprep.subr.bf16.mxu1 %v1173_v13  ;;  %v1197_v35 = vld [vmem:[%s188_s24 + $0xc] ss:$16 sps:$4 sm:$0xff]   ;;  %568 = vmatprep.mubr.bf16.mxu0 %v1194_v33  ;;  %v1198_v36 = vld [vmem:[%s188_s24 + $0x24] ss:$16 sps:$4 sm:$0xff]   ;;  %v1202_v38 = vld [vmem:[%s188_s24 + $0x20] ss:$16 sps:$4 sm:$0xff]  }
  0x1e   : > { %625 = vmatprep.mubr.bf16.mxu1 %v1197_v35  ;;  %v1200_v37 = vld [vmem:[%s188_s24 + $0x2c] ss:$16 sps:$4 sm:$0xff]   ;;  %v1203_v39 = vld [vmem:[%s188_s24 + $0x28] ss:$16 sps:$4 sm:$0xff]   ;;  %v1204_v40 = vld [vmem:[%s188_s24 + $0x44] ss:$16 sps:$4 sm:$0xff]  }
  0x1f   : > { %1009 = vmatpush3.bf16.msra.mxu0 %v1174_v14  ;;  %v1206_v41 = vld [vmem:[%s188_s24 + $0x4c] ss:$16 sps:$4 sm:$0xff]   ;;  %v1208_v42 = vld [vmem:[%s188_s24 + $0x40] ss:$16 sps:$4 sm:$0xff]   ;;  %v1209_v43 = vld [vmem:[%s188_s24 + $0x48] ss:$16 sps:$4 sm:$0xff]  }
  0x20   : > { %1043 = vmatpush3.bf16.msra.mxu1 %v1175_v15  ;;  %1010 = vmatprep.subr.bf16.mxu0 %v1176_v16  ;;  %v931_v46 = vld [vmem:[%s1531_s2] ss:$0 sm:$0xff] }
  0x21   : > { %1044 = vmatprep.subr.bf16.mxu1 %v1177_v17 }
  0x23   : > { %1011 = vmatpush3.bf16.msra.mxu0 %v1178_v18 }
  0x24   : > { %1045 = vmatpush3.bf16.msra.mxu1 %v1179_v19  ;;  %1012 = vmatprep.subr.bf16.mxu0 %v1180_v20 }
  0x25   : > { %1046 = vmatprep.subr.bf16.mxu1 %v1181_v21 }
  0x27   : > { %1013 = vmatpush3.bf16.msra.mxu0 %v1182_v22 }
  0x28   : > { %1047 = vmatpush3.bf16.msra.mxu1 %v1183_v23  ;;  %1014 = vmatprep.subr.bf16.mxu0 %v1184_v24 }
  0x29   : > { %1048 = vmatprep.subr.bf16.mxu1 %v1185_v25 }
  0x2b   : > { %1015 = vmatpush3.bf16.msra.mxu0 %v1186_v26 }
  0x2c   : > { %1049 = vmatpush3.bf16.msra.mxu1 %v1187_v27  ;;  %1016 = vmatprep.subr.bf16.mxu0 %v1188_v28 }
  0x2d   : > { %1050 = vmatprep.subr.bf16.mxu1 %v1189_v29 }
  0x2f   : > { %1017 = vmatpush3.bf16.msra.mxu0 %v1190_v30 }
  0x30   : > { %1051 = vmatpush3.bf16.msra.mxu1 %v1191_v31 }
  0x32   : > { %569 = vmatmul.mubr.bf16.vlgmr.msra.gmra.mxu0 %v1192_v32 }
  0x33   : > { %626 = vmatmul.mubr.bf16.vlgmr.msra.gmra.mxu1 %v1195_v34  ;;  %576 = vmatprep.mubr.bf16.mxu0 %v1198_v36 }
  0x34   : > { %633 = vmatprep.mubr.bf16.mxu1 %v1200_v37 }
  0x3a   : > { %577 = vmatmul.mubr.bf16.gmra.mxu0 %v1202_v38 }
  0x3b   : > { %634 = vmatmul.mubr.bf16.gmra.mxu1 %v1203_v39  ;;  %584 = vmatprep.mubr.bf16.mxu0 %v1204_v40 }
  0x3c   : > { %641 = vmatprep.mubr.bf16.mxu1 %v1206_v41 }
  0x42   : > { %585 = vmatmul.mubr.bf16.gmra.mxu0 %v1208_v42 }
  0x43   : > { %642 = vmatmul.mubr.bf16.gmra.mxu1 %v1209_v43 }
  0xf2   : > { %v1018_v44 = vpop.f32.mrf.mxu0 }
  0xf3   : > { %v1052_v45 = vpop.f32.mrf.mxu1 }
  0xf4   : > { %v1019_v47 = vpop.f32.mrf.mxu0 }
  0xf5   : > { %v1020_v48 = vadd.f32 %v1019_v47, %v1018_v44  ;;  %v1053_v49 = vpop.f32.mrf.mxu1 }
  0xf6   : > { %v1021_v50 = vpop.f32.mrf.mxu0  ;;  %v1054_v52 = vadd.f32 %v1053_v49, %v1052_v45 }
  0xf7   : > { %v571_v51 = vadd.f32 %v1020_v48, %v931_v46  ;;  %v1055_v53 = vpop.f32.mrf.mxu1 }
  0xf8   : > { %v1022_v54 = vpop.f32.mrf.mxu0 }
  0xf9   : > { %v628_v55 = vadd.f32 %v1054_v52, %v571_v51  ;;  %v1023_v56 = vadd.f32 %v1022_v54, %v1021_v50  ;;  %v1056_v57 = vpop.f32.mrf.mxu1 }
  0xfa   : > { %v1024_v58 = vpop.f32.mrf.mxu0  ;;  %v1057_v61 = vadd.f32 %v1056_v57, %v1055_v53 }
  0xfb   : > { %v650_v59 = vmax.f32 %v628_v55, 0.0  ;;  %v574_v60 = vadd.f32 %v1023_v56, %v931_v46  ;;  %v1058_v62 = vpop.f32.mrf.mxu1 }
  0xfc   : > { %v1025_v63 = vpop.f32.mrf.mxu0 }
  0xfd   : > { %v995_v0 = vpack.c.bf16 %v650_v59, %v650_v59  ;;  %v631_v1 = vadd.f32 %v1057_v61, %v574_v60  ;;  %v1026_v2 = vadd.f32 %v1025_v63, %v1024_v58  ;;  %v1059_v3 = vpop.f32.mrf.mxu1 }
  0xfe   : > { %v1027_v4 = vpop.f32.mrf.mxu0  ;;  %v1060_v7 = vadd.f32 %v1059_v3, %v1058_v62 }
  0xff   : > { %681 = vst.msk [vmem:[%s1459_s12] sm:$0xf] %vm680_vm0, %v995_v0  ;;  %v651_v5 = vmax.f32 %v631_v1, 0.0  ;;  %v579_v6 = vadd.f32 %v1026_v2, %v931_v46  ;;  %v1061_v8 = vpop.f32.mrf.mxu1 }
 0x100   : > { %v1028_v9 = vpop.f32.mrf.mxu0 }
 0x101   : > { %v996_v10 = vpack.c.bf16 %v651_v5, %v651_v5  ;;  %v636_v11 = vadd.f32 %v1060_v7, %v579_v6  ;;  %v1029_v12 = vadd.f32 %v1028_v9, %v1027_v4  ;;  %v1062_v13 = vpop.f32.mrf.mxu1 }
 0x102   : > { %v1030_v14 = vpop.f32.mrf.mxu0  ;;  %v1063_v17 = vadd.f32 %v1062_v13, %v1061_v8 }
 0x103   : > { %682 = vst.msk [vmem:[%s1459_s12 + $0x4] sm:$0xf] %vm680_vm0, %v996_v10  ;;  %v652_v15 = vmax.f32 %v636_v11, 0.0  ;;  %v582_v16 = vadd.f32 %v1029_v12, %v931_v46  ;;  %v1064_v18 = vpop.f32.mrf.mxu1 }
 0x104   : > { %v1031_v19 = vpop.f32.mrf.mxu0 }
 0x105   : > { %v997_v20 = vpack.c.bf16 %v652_v15, %v652_v15  ;;  %v639_v21 = vadd.f32 %v1063_v17, %v582_v16  ;;  %v1032_v22 = vadd.f32 %v1031_v19, %v1030_v14  ;;  %v1065_v23 = vpop.f32.mrf.mxu1 }
 0x106   : > { %v1033_v24 = vpop.f32.mrf.mxu0  ;;  %v1066_v27 = vadd.f32 %v1065_v23, %v1064_v18 }
 0x107   : > { %683 = vst.msk [vmem:[%s1459_s12 + $0x8] sm:$0xf] %vm680_vm0, %v997_v20  ;;  %v653_v25 = vmax.f32 %v639_v21, 0.0  ;;  %v587_v26 = vadd.f32 %v1032_v22, %v931_v46  ;;  %v1067_v28 = vpop.f32.mrf.mxu1 }
 0x108   : > { %v1034_v29 = vpop.f32.mrf.mxu0 }
 0x109   : > { %v998_v30 = vpack.c.bf16 %v653_v25, %v653_v25  ;;  %v644_v31 = vadd.f32 %v1066_v27, %v587_v26  ;;  %v1035_v32 = vadd.f32 %v1034_v29, %v1033_v24  ;;  %v1068_v33 = vpop.f32.mrf.mxu1 }
 0x10a   : > { %v1069_v36 = vadd.f32 %v1068_v33, %v1067_v28 }
 0x10b   : > { %684 = vst.msk [vmem:[%s1459_s12 + $0xc] sm:$0xf] %vm680_vm0, %v998_v30  ;;  %v654_v34 = vmax.f32 %v644_v31, 0.0  ;;  %v590_v35 = vadd.f32 %v1035_v32, %v931_v46 }
 0x10d   : > { %v999_v37 = vpack.c.bf16 %v654_v34, %v654_v34  ;;  %v647_v38 = vadd.f32 %v1069_v36, %v590_v35 }
 0x10f   : > { %685 = vst.msk [vmem:[%s1459_s12 + $0x10] sm:$0xf] %vm680_vm0, %v999_v37  ;;  %v655_v39 = vmax.f32 %v647_v38, 0.0  ;;  %693 = sbr.rel (!%p1347_p4) target bundleno = 332 (0x14c), region = 36 }
 0x111   : > { %v1000_v40 = vpack.c.bf16 %v655_v39, %v655_v39 }
 0x113   : > { %686 = vst.msk [vmem:[%s1459_s12 + $0x14] sm:$0xf] %vm680_vm0, %v1000_v40 }
 0x114   : > { %s1541_s7 = smov (!%p696_p8, %s695_s7), 6 }
 0x115   : > { %s982_s14 = sshll.u32 %s1541_s7, 6 }
 0x116   : > { %p985_p9 = scmp.eq.s32.totalorder %s982_s14, 0 }
 0x117   : > { %1210 = sdivrem.u32 (!%p985_p9), %s1541_s7, 6 }
 0x118   : > { %704 = sbr.rel (%p985_p9) target bundleno = 332 (0x14c), region = 40 }
 0x120   : > { %s1486_s20 = spop.drf %1210 }
 0x121   : > { %p986_p10 = scmp.le.s32.totalorder %s1486_s20, 0 }
 0x122   : > { %s1534_s15 = smov (!%p986_p10), %s1480_s11  ;;  %s1535_s30 = smov (!%p986_p10), %s1459_s12 }
 0x123   : > { %881 = sbr.rel (%p986_p10) target bundleno = 307 (0x133), region = 112  ;;  %s1495_s17 = smov (!%p986_p10), 0  }
 0x124   : > { %s1497_s18 = smov (!%p986_p10), 0  }
 0x128 LB: >> { %v722_v41 = vld [vmem:[%s1276_s30] sm:$0xf]  ;;  %v724_v42 = vld [vmem:[%s1276_s30 + $0x4] sm:$0xf]  ;;  %v726_v43 = vld [vmem:[%s1276_s30 + $0x8] sm:$0xf]  ;;  %s1284_s18 = sphi %s1497_s18, %s716_s18   ;;  %s1280_s17 = sphi %s1495_s17, %s1536_s17   ;;  %s1276_s30 = sphi %s1535_s30, %s739_s30   ;;  %s1272_s15 = sphi %s1534_s15, %s740_s15  }
 0x129   : >> { %723 = vst [vmem:[%s1272_s15] sm:$0xf] %v722_v41  ;;  %725 = vst [vmem:[%s1272_s15 + $0x4] sm:$0xf] %v724_v42  ;;  %v728_v44 = vld [vmem:[%s1276_s30 + $0xc] sm:$0xf]  ;;  %s734_s21 = sadd.s32 1, %s1280_s17 }
 0x12a   : >> { %727 = vst [vmem:[%s1272_s15 + $0x8] sm:$0xf] %v726_v43  ;;  %v730_v45 = vld [vmem:[%s1276_s30 + $0x10] sm:$0xf]  ;;  %v732_v46 = vld [vmem:[%s1276_s30 + $0x14] sm:$0xf]  ;;  %p735_p11 = scmp.ge.s32.totalorder %s734_s21, %s1486_s20 }
 0x12b   : >> { %729 = vst [vmem:[%s1272_s15 + $0xc] sm:$0xf] %v728_v44  ;;  %731 = vst [vmem:[%s1272_s15 + $0x10] sm:$0xf] %v730_v45  ;;  %s716_s18 = sadd.s32 1, %s1284_s18  }
 0x12c   : >> { %733 = vst [vmem:[%s1272_s15 + $0x14] sm:$0xf] %v732_v46  ;;  %s1543_s21 = smov (%p735_p11, %s734_s21), 0  ;;  %p715_p12 = scmp.ge.s32.totalorder %s716_s18, %s1486_s20 }
 0x12d   : >> { %s737_s22 = smul.u32 24, %s1543_s21  ;;  %s1536_s17 = smov %s1543_s21 }
 0x12e   : > { %718 = sbr.rel (!%p715_p12) target bundleno = 296 (0x128), region = 118 }
 0x12f   : >> { %s739_s30 = scalar_lea.vmem %s1459_s12, %s737_s22 [#allocation2]   ;;  %s740_s15 = scalar_lea.vmem %s1480_s11, %s737_s22  }
 0x133 PF: > { %1212 = sdivrem.u32 %s1541_s7, 6 }
 0x134   : > { %s987_s23 = smul.u32 24, %s1486_s20 }
 0x136   : > { %s745_s24 = scalar_lea.vmem %s1459_s12, %s987_s23 [#allocation2]   ;;  %s747_s25 = scalar_lea.vmem %s1480_s11, %s987_s23  }
 0x13c   : > { %s1213_s26 = spop.drf %1212 }
 0x13d   : > { %p989_p13 = scmp.le.s32.totalorder %s1213_s26, 0 }
 0x13e   : > { %s1286_s27 = smov (!%p989_p13), %s747_s25   ;;  %s1290_s28 = smov (!%p989_p13), %s745_s24  }
 0x13f   : > { %895 = sbr.rel (%p989_p13) target bundleno = 332 (0x14c), region = 123  ;;  %s1294_s29 = smov (!%p989_p13), 0  }
 0x140   : > { %s1298_s4 = smov (!%p989_p13), 0  }
 0x144 LB: >> { %v757_v47 = vld [vmem:[%s1292_s28] sm:$0xf]  ;;  %s759_s5 = sadd.s32 1, %s1296_s29  ;;  %s751_s4 = sadd.s32 1, %s1300_s4   ;;  %s1300_s4 = sphi %s1298_s4, %s751_s4   ;;  %s1296_s29 = sphi %s1294_s29, %s1295_s29   ;;  %s1292_s28 = sphi %s1290_s28, %s764_s28   ;;  %s1288_s27 = sphi %s1286_s27, %s765_s27  }
 0x145   : >> { %758 = vst [vmem:[%s1288_s27] sm:$0xf] %v757_v47  ;;  %p760_p0 = scmp.ge.s32.totalorder %s759_s5, %s1213_s26  ;;  %p750_p1 = scmp.ge.s32.totalorder %s751_s4, %s1213_s26 }
 0x147   : >> { %s1545_s5 = smov (%p760_p0, %s759_s5), 0  ;;  %753 = sbr.rel (!%p750_p1) target bundleno = 324 (0x144), region = 129 }
 0x148   : >> { %s990_s6 = sshll.u32 %s1545_s5, 2  ;;  %s1295_s29 = smov %s1545_s5  }
 0x149   : >> { %s764_s28 = scalar_lea.vmem %s745_s24, %s990_s6 [#allocation2]   ;;  %s765_s27 = scalar_lea.vmem %s747_s25, %s990_s6  }
 0x14c PF: > { %p10_p2 = scmp.ge.s32.totalorder %s1337_s16, 4   ;;  %s1537_s12 = smov %s1264_s13 }
 0x14d   : > { %s1538_s13 = smov %s1345_s19  ;;  %s1539_s14 = smov %s1337_s16 }
 0x14e   :  { %12 = sbr.rel (!%p10_p2) target bundleno = 2 (0x2), region = 140 }

// kernel: conv_encoder_forward.7
= control target key start
LH: loop header
LB: loop body
LE: loop exit
PB: predicated region body
PF: predicated region fallthrough
CT: control target
= control target key end

     0   :  { %v170_v28 = vlaneseq  ;;  %v2715_v36 = vmov 1966171168   ;;  %s3727_s0 = inlined_call_operand.vmem [shape: bf16[4,2,1024], index: 0, kind: input, shape index: {}]   ;;  %s3728_s1 = inlined_call_operand.vmem [shape: bf16[1024,64], index: 1, kind: input, shape index: {}]   ;;  %s3729_s2 = inlined_call_operand.vmem [shape: f32[1,64], index: 2, kind: input, shape index: {}]   ;;  %s3730_s3 = inlined_call_operand.vmem [shape: bf16[256,256], index: 3, kind: input, shape index: {}]   ;;  %s3731_s4 = inlined_call_operand.vmem [shape: f32[1,256], index: 4, kind: input, shape index: {}]   ;;  %s3732_s5 = inlined_call_operand.vmem [shape: bf16[256,10], index: 5, kind: input, shape index: {}]   ;;  %s3733_s6 = inlined_call_operand.vmem [shape: f32[1,10], index: 6, kind: input, shape index: {}]   ;;  %s3734_s7 = inlined_call_operand.hbm [shape: f32[2,10], index: 7, kind: output, shape index: {}]  }
   0x1   :  { %v2761_v0 = vld [vmem:[%s3728_s1 + $0x78] sm:$0xff]   ;;  %v2784_v4 = vld [vmem:[%s3728_s1 + $0x70] sm:$0xff]   ;;  %v2808_v8 = vld [vmem:[%s3728_s1 + $0x68] sm:$0xff]   ;;  %v168_v37 = vunpack.c.l.s4 %v2715_v36 }
   0x2   :  { %v2766_v1 = vld [vmem:[%s3728_s1 + $0xf8] sm:$0xff]   ;;  %2143 = vmatprep.subr.bf16.mxu0 %v2761_v0  ;;  %v2790_v5 = vld [vmem:[%s3728_s1 + $0xf0] sm:$0xff]   ;;  %v2814_v9 = vld [vmem:[%s3728_s1 + $0xe8] sm:$0xff]   ;;  %v2948_v33 = vshrl.u32 %v170_v28, 7 }
   0x3   :  { %v2772_v2 = vld [vmem:[%s3728_s1 + $0x38] sm:$0xff]   ;;  %2165 = vmatprep.subr.bf16.mxu1 %v2766_v1  ;;  %v2796_v6 = vld [vmem:[%s3728_s1 + $0x30] sm:$0xff]   ;;  %v2820_v10 = vld [vmem:[%s3728_s1 + $0x28] sm:$0xff]   ;;  %v169_v40 = vunpack.c.0.s8 %v168_v37 }
   0x4   :  { %v2778_v3 = vld [vmem:[%s3728_s1 + $0xb8] sm:$0xff]   ;;  %2144 = vmatpush3.bf16.msra.mxu0 %v2772_v2  ;;  %v2802_v7 = vld [vmem:[%s3728_s1 + $0xb0] sm:$0xff]   ;;  %v2826_v11 = vld [vmem:[%s3728_s1 + $0xa8] sm:$0xff]   ;;  %3766 = vst [vmem:[#allocation5_spill] sm:$0xff] %v2948_v33 }
   0x5   :  { %2166 = vmatpush3.bf16.msra.mxu1 %v2778_v3  ;;  %2145 = vmatprep.subr.bf16.mxu0 %v2784_v4  ;;  %v2832_v12 = vld [vmem:[%s3728_s1 + $0x60] sm:$0xff]   ;;  %v2856_v16 = vld [vmem:[%s3728_s1 + $0x58] sm:$0xff]   ;;  %v2880_v20 = vld [vmem:[%s3728_s1 + $0x50] sm:$0xff]   ;;  %v2968_v41 = vsub.s32 %v169_v40, %v2948_v33 }
   0x6   :  { %2167 = vmatprep.subr.bf16.mxu1 %v2790_v5  ;;  %v2838_v13 = vld [vmem:[%s3728_s1 + $0xe0] sm:$0xff]   ;;  %v2862_v17 = vld [vmem:[%s3728_s1 + $0xd8] sm:$0xff]   ;;  %v2886_v21 = vld [vmem:[%s3728_s1 + $0xd0] sm:$0xff]  }
   0x7   :  { %v2844_v14 = vld [vmem:[%s3728_s1 + $0x20] sm:$0xff]   ;;  %v2868_v18 = vld [vmem:[%s3728_s1 + $0x18] sm:$0xff]   ;;  %v2892_v22 = vld [vmem:[%s3728_s1 + $0x10] sm:$0xff]  }
   0x8   :  { %2146 = vmatpush3.bf16.msra.mxu0 %v2796_v6  ;;  %v2850_v15 = vld [vmem:[%s3728_s1 + $0xa0] sm:$0xff]   ;;  %v2874_v19 = vld [vmem:[%s3728_s1 + $0x98] sm:$0xff]   ;;  %v2898_v23 = vld [vmem:[%s3728_s1 + $0x90] sm:$0xff]  }
   0x9   :  { %2168 = vmatpush3.bf16.msra.mxu1 %v2802_v7  ;;  %2147 = vmatprep.subr.bf16.mxu0 %v2808_v8  ;;  %v2904_v24 = vld [vmem:[%s3728_s1 + $0x48] sm:$0xff]   ;;  %v2928_v29 = vld [vmem:[%s3728_s1 + $0x40] sm:$0xff]   ;;  %v2957_v35 = vld [vmem:[%s3728_s1 + $0x178] sm:$0xff]  }
   0xa   :  { %2169 = vmatprep.subr.bf16.mxu1 %v2814_v9  ;;  %v2910_v25 = vld [vmem:[%s3728_s1 + $0xc8] sm:$0xff]   ;;  %v2934_v30 = vld [vmem:[%s3728_s1 + $0xc0] sm:$0xff]   ;;  %v2964_v38 = vld [vmem:[%s3728_s1 + $0x1f8] sm:$0xff]  }
   0xb   :  { %v2916_v26 = vld [vmem:[%s3728_s1 + $0x8] sm:$0xff]   ;;  %v2940_v31 = vld [vmem:[%s3728_s1] sm:$0xff]   ;;  %v2980_v47 = vld [vmem:[%s3728_s1 + $0x138] sm:$0xff]  }
   0xc   :  { %2148 = vmatpush3.bf16.msra.mxu0 %v2820_v10  ;;  %v2922_v27 = vld [vmem:[%s3728_s1 + $0x88] sm:$0xff]   ;;  %v2946_v32 = vld [vmem:[%s3728_s1 + $0x80] sm:$0xff]   ;;  %v2986_v49 = vld [vmem:[%s3728_s1 + $0x1b8] sm:$0xff]  }
   0xd   :  { %2170 = vmatpush3.bf16.msra.mxu1 %v2826_v11  ;;  %2149 = vmatprep.subr.bf16.mxu0 %v2832_v12  ;;  %v29_v34 = vld [vmem:[%s3727_s0] sm:$0xff]  ;;  %v2992_v52 = vld [vmem:[%s3728_s1 + $0x170] sm:$0xff]   ;;  %v3014_v58 = vld [vmem:[%s3728_s1 + $0x168] sm:$0xff]  }
   0xe   :  { %2171 = vmatprep.subr.bf16.mxu1 %v2838_v13  ;;  %v166_v39 = vcombine.high %v29_v34, %v29_v34  ;;  %v173_v42 = vrot.slane %v29_v34, %v2968_v41  ;;  %v2997_v54 = vld [vmem:[%s3728_s1 + $0x1f0] sm:$0xff]   ;;  %v3020_v59 = vld [vmem:[%s3728_s1 + $0x1e8] sm:$0xff]   ;;  %v3038_v62 = vld [vmem:[%s3728_s1 + $0x160] sm:$0xff]  }
   0xf   :  { %v3002_v55 = vld [vmem:[%s3728_s1 + $0x130] sm:$0xff]   ;;  %3767 = vst [vmem:[#allocation6_spill] sm:$0xff] %v3020_v59  ;;  %v3026_v60 = vld [vmem:[%s3728_s1 + $0x128] sm:$0xff]   ;;  %v3044_v63 = vld [vmem:[%s3728_s1 + $0x1e0] sm:$0xff]  }
  0x10   :  { %2150 = vmatpush3.bf16.msra.mxu0 %v2844_v14  ;;  %v2972_v43 = vrot.slane %v166_v39, %v2968_v41  ;;  %v181_v44 = vcombine.high %v173_v42, %v173_v42  ;;  %v189_v45 = vrot.slane %v173_v42, %v2968_v41  ;;  %v3008_v57 = vld [vmem:[%s3728_s1 + $0x1b0] sm:$0xff]   ;;  %v3032_v61 = vld [vmem:[%s3728_s1 + $0x1a8] sm:$0xff]   ;;  %3769 = vst [vmem:[#allocation8_spill] sm:$0xff] %v3044_v63  ;;  %v3050_v28 = vld [vmem:[%s3728_s1 + $0x120] sm:$0xff]  }
  0x11   :  { %2172 = vmatpush3.bf16.msra.mxu1 %v2850_v15  ;;  %2151 = vmatprep.subr.bf16.mxu0 %v2856_v16  ;;  %3768 = vst [vmem:[#allocation7_spill] sm:$0xff] %v3032_v61  ;;  %v3056_v34 = vld [vmem:[%s3728_s1 + $0x1a0] sm:$0xff]   ;;  %v3062_v36 = vld [vmem:[%s3728_s1 + $0x158] sm:$0xff]   ;;  %v3086_v42 = vld [vmem:[%s3728_s1 + $0x150] sm:$0xff]  }
  0x12   :  { %2173 = vmatprep.subr.bf16.mxu1 %v2862_v17  ;;  %v182_v46 = vcombine.high %v2972_v43, %v2972_v43  ;;  %v203_v48 = vrot.slane %v181_v44, %v2968_v41  ;;  %v211_v51 = vcombine.high %v189_v45, %v189_v45  ;;  %3770 = vst [vmem:[#allocation9_spill] sm:$0xff] %v3056_v34  ;;  %v3068_v37 = vld [vmem:[%s3728_s1 + $0x1d8] sm:$0xff]   ;;  %3774 = vst [vmem:[#allocation13_spill] sm:$0xff] %v3086_v42  ;;  %v3092_v44 = vld [vmem:[%s3728_s1 + $0x1d0] sm:$0xff]  }
  0x13   :  { %3771 = vst [vmem:[#allocation10_spill] sm:$0xff] %v3068_v37  ;;  %v3074_v39 = vld [vmem:[%s3728_s1 + $0x118] sm:$0xff]   ;;  %3775 = vst [vmem:[#allocation14_spill] sm:$0xff] %v3092_v44  ;;  %v3139_v33 = vld [vmem:[%s3728_s1 + $0x1c0] sm:$0xff]  }
  0x14   :  { %2152 = vmatpush3.bf16.msra.mxu0 %v2868_v18  ;;  %v210_v50 = vrot.slane %v182_v46, %v2968_v41  ;;  %639 = vmatprep.mubr.bf16.mxu0 %v203_v48  ;;  %v213_v53 = vcombine.high %v203_v48, %v203_v48  ;;  %3772 = vst [vmem:[#allocation11_spill] sm:$0xff] %v3074_v39  ;;  %v3080_v40 = vld [vmem:[%s3728_s1 + $0x198] sm:$0xff]   ;;  %v3104_v46 = vld [vmem:[%s3728_s1 + $0x190] sm:$0xff]   ;;  %v3109_v48 = vld [vmem:[%s3728_s1 + $0x148] sm:$0xff]  }
  0x15   :  { %2174 = vmatpush3.bf16.msra.mxu1 %v2874_v19  ;;  %2153 = vmatprep.subr.bf16.mxu0 %v2880_v20  ;;  %3773 = vst [vmem:[#allocation12_spill] sm:$0xff] %v3080_v40  ;;  %3777 = vst [vmem:[#allocation16_spill] sm:$0xff] %v3104_v46 }
  0x16   :  { %2175 = vmatprep.subr.bf16.mxu1 %v2886_v21  ;;  %v214_v56 = vcombine.high %v210_v50, %v210_v50  ;;  %679 = vmatprep.mubr.bf16.mxu1 %v213_v53  ;;  %3778 = vst [vmem:[#allocation17_spill] sm:$0xff] %v3109_v48  ;;  %v3127_v53 = vld [vmem:[%s3728_s1 + $0x140] sm:$0xff]   ;;  %3781 = vst [vmem:[#allocation20_spill] sm:$0xff] %v3139_v33 }
  0x18   :  { %2154 = vmatpush3.bf16.msra.mxu0 %v2892_v22 }
  0x19   :  { %2176 = vmatpush3.bf16.msra.mxu1 %v2898_v23  ;;  %2155 = vmatprep.subr.bf16.mxu0 %v2904_v24 }
  0x1a   :  { %2177 = vmatprep.subr.bf16.mxu1 %v2910_v25 }
  0x1c   :  { %2156 = vmatpush3.bf16.msra.mxu0 %v2916_v26 }
  0x1d   :  { %2178 = vmatpush3.bf16.msra.mxu1 %v2922_v27  ;;  %2157 = vmatprep.subr.bf16.mxu0 %v2928_v29 }
  0x1e   :  { %2179 = vmatprep.subr.bf16.mxu1 %v2934_v30 }
  0x20   :  { %2158 = vmatpush3.bf16.msra.mxu0 %v2940_v31 }
  0x21   :  { %2180 = vmatpush3.bf16.msra.mxu1 %v2946_v32  ;;  %2187 = vmatprep.subr.bf16.mxu0 %v2957_v35 }
  0x22   :  { %2209 = vmatprep.subr.bf16.mxu1 %v2964_v38 }
  0x23   :  { %640 = vmatmul.mubr.bf16.vlgmr.msra.gmra.mxu0 %v189_v45  ;;  %v3098_v45 = vld [vmem:[%s3728_s1 + $0x110] sm:$0xff]  }
  0x24   :  { %2188 = vmatpush3.bf16.msra.mxu0 %v2980_v47  ;;  %680 = vmatmul.mubr.bf16.vlgmr.msra.gmra.mxu1 %v211_v51  ;;  %3776 = vst [vmem:[#allocation15_spill] sm:$0xff] %v3098_v45  ;;  %v3121_v51 = vld [vmem:[%s3728_s1 + $0x108] sm:$0xff]  }
  0x25   :  { %2189 = vmatprep.subr.bf16.mxu0 %v2992_v52  ;;  %2210 = vmatpush3.bf16.msra.mxu1 %v2986_v49 }
  0x26   :  { %719 = vmatprep.mubr.bf16.mxu0 %v210_v50  ;;  %2211 = vmatprep.subr.bf16.mxu1 %v2997_v54  ;;  %v3115_v50 = vld [vmem:[%s3728_s1 + $0x1c8] sm:$0xff]  }
  0x27   :  { %759 = vmatprep.mubr.bf16.mxu1 %v214_v56  ;;  %3779 = vst [vmem:[#allocation18_spill] sm:$0xff] %v3115_v50  ;;  %v3133_v56 = vld [vmem:[%s3728_s1 + $0x188] sm:$0xff]  }
  0x28   :  { %2190 = vmatpush3.bf16.msra.mxu0 %v3002_v55  ;;  %3780 = vst [vmem:[#allocation19_spill] sm:$0xff] %v3133_v56 }
  0x29   :  { %2191 = vmatprep.subr.bf16.mxu0 %v3014_v58  ;;  %2212 = vmatpush3.bf16.msra.mxu1 %v3008_v57 }
  0x2a   :  { %2213 = vmatprep.subr.bf16.mxu1 %v3020_v59 }
  0x2c   :  { %2192 = vmatpush3.bf16.msra.mxu0 %v3026_v60 }
  0x2d   :  { %2193 = vmatprep.subr.bf16.mxu0 %v3038_v62  ;;  %2214 = vmatpush3.bf16.msra.mxu1 %v3032_v61 }
  0x2e   :  { %2215 = vmatprep.subr.bf16.mxu1 %v3044_v63 }
  0x30   :  { %2194 = vmatpush3.bf16.msra.mxu0 %v3050_v28 }
  0x31   :  { %2195 = vmatprep.subr.bf16.mxu0 %v3062_v36  ;;  %2216 = vmatpush3.bf16.msra.mxu1 %v3056_v34 }
  0x32   :  { %2217 = vmatprep.subr.bf16.mxu1 %v3068_v37 }
  0x34   :  { %2196 = vmatpush3.bf16.msra.mxu0 %v3074_v39 }
  0x35   :  { %2197 = vmatprep.subr.bf16.mxu0 %v3086_v42  ;;  %2218 = vmatpush3.bf16.msra.mxu1 %v3080_v40  ;;  %v3145_v42 = vld [vmem:[%s3728_s1 + $0x100] sm:$0xff]  }
  0x36   :  { %2219 = vmatprep.subr.bf16.mxu1 %v3092_v44 }
  0x38   :  { %2198 = vmatpush3.bf16.msra.mxu0 %v3098_v45  ;;  %v196_v45 = vrot.slane %v2972_v43, %v2968_v41 }
  0x39   :  { %2199 = vmatprep.subr.bf16.mxu0 %v3109_v48  ;;  %2220 = vmatpush3.bf16.msra.mxu1 %v3104_v46  ;;  %v3152_v48 = vld [vmem:[%s3728_s1 + $0x180] sm:$0xff]  }
  0x3a   :  { %2221 = vmatprep.subr.bf16.mxu1 %v3115_v50  ;;  %3782 = vst [vmem:[#allocation21_spill] sm:$0xff] %v3152_v48  ;;  %v212_v39 = vcombine.high %v196_v45, %v196_v45 }
  0x3c   :  { %2200 = vmatpush3.bf16.msra.mxu0 %v3121_v51 }
  0x3d   :  { %2201 = vmatprep.subr.bf16.mxu0 %v3127_v53  ;;  %2222 = vmatpush3.bf16.msra.mxu1 %v3133_v56 }
  0x3e   :  { %2223 = vmatprep.subr.bf16.mxu1 %v3139_v33 }
  0x40   :  { %2202 = vmatpush3.bf16.msra.mxu0 %v3145_v42 }
  0x41   :  { %2253 = vmatprep.subr.bf16.mxu0 %v2766_v1  ;;  %2224 = vmatpush3.bf16.msra.mxu1 %v3152_v48 }
  0x43   :  { %720 = vmatmul.mubr.bf16.vlgmr.msra.gmra.mxu0 %v196_v45 }
  0x44   :  { %2254 = vmatpush3.bf16.msra.mxu0 %v2778_v3  ;;  %760 = vmatmul.mubr.bf16.vlgmr.msra.gmra.mxu1 %v212_v39 }
  0x45   :  { %2255 = vmatprep.subr.bf16.mxu0 %v2790_v5 }
  0x48   :  { %2256 = vmatpush3.bf16.msra.mxu0 %v2802_v7 }
  0x49   :  { %2257 = vmatprep.subr.bf16.mxu0 %v2814_v9 }
  0x4a   :  { %12 = vsyncpa [#allocation3], 0  ;;  %v2585_v1 = vld [vmem:[%s3730_s3 + $0x30] ss:$8 sps:$4 sm:$0xff]   ;;  %v2587_v3 = vld [vmem:[%s3730_s3 + $0x34] ss:$8 sps:$4 sm:$0xff]  }
  0x4b   :  { %829 = vmatprep.subr.bf16.mxu1 %v2587_v3  ;;  %v2590_v5 = vld [vmem:[%s3730_s3 + $0x24] ss:$8 sps:$4 sm:$0xff]   ;;  %v2588_v7 = vld [vmem:[%s3730_s3 + $0x20] ss:$8 sps:$4 sm:$0xff]   ;;  %v2593_v9 = vld [vmem:[%s3730_s3 + $0x14] ss:$8 sps:$4 sm:$0xff]  }
  0x4c   :  { %2258 = vmatpush3.bf16.msra.mxu0 %v2826_v11  ;;  %830 = vmatpush1.bf16.msra.mxu1 %v2585_v1  ;;  %v2591_v11 = vld [vmem:[%s3730_s3 + $0x10] ss:$8 sps:$4 sm:$0xff]   ;;  %v2096_v43 = vld [vmem:[%s3727_s0 + $0x8] sm:$0xff]  ;;  %vm817_vm0 = vcmask 523264   ;;  %vm2006_vm3 = vcmask 74752  }
  0x4d   :  { %2259 = vmatprep.subr.bf16.mxu0 %v2838_v13  ;;  %831 = vmatprep.subr.bf16.mxu1 %v2590_v5  ;;  %v2596_v13 = vld [vmem:[%s3730_s3 + $0x4] ss:$8 sps:$4 sm:$0xff]   ;;  %v885_v39 = vrot.slane %v2096_v43, %v2968_v41 }
  0x4f   :  { %v893_v45 = vcombine.high %v885_v39, %v885_v39  ;;  %v3212_v3 = vrot.slane %v885_v39, %v2968_v41 }
  0x50   :  { %2260 = vmatpush3.bf16.msra.mxu0 %v2850_v15  ;;  %832 = vmatpush1.bf16.msra.mxu1 %v2588_v7  ;;  %v2594_v15 = vld [vmem:[%s3730_s3] ss:$8 sps:$4 sm:$0xff]  }
  0x51   :  { %2261 = vmatprep.subr.bf16.mxu0 %v2862_v17  ;;  %833 = vmatprep.subr.bf16.mxu1 %v2593_v9  ;;  %v3745_v17 = vmov 0   ;;  %v3209_v1 = vrot.slane %v893_v45, %v2968_v41  ;;  %v923_v7 = vcombine.high %v3212_v3, %v3212_v3  ;;  %v878_v9 = vcombine.high %v2096_v43, %v2096_v43 }
  0x52   :  { %853 = vmatprep.mubr.bf16.mxu1 %v3745_v17 }
  0x53   :  { %v925_v5 = vcombine.high %v3209_v1, %v3209_v1 }
  0x54   :  { %2262 = vmatpush3.bf16.msra.mxu0 %v2874_v19  ;;  %834 = vmatpush1.bf16.msra.mxu1 %v2591_v11  ;;  %v892_v11 = vrot.slane %v878_v9, %v2968_v41 }
  0x55   :  { %2263 = vmatprep.subr.bf16.mxu0 %v2886_v21  ;;  %835 = vmatprep.subr.bf16.mxu1 %v2596_v13 }
  0x56   :  { %1007 = vmatprep.mubr.bf16.mxu0 %v925_v5  ;;  %v894_v13 = vcombine.high %v892_v11, %v892_v11  ;;  %v3237_v39 = vrot.slane %v892_v11, %v2968_v41 }
  0x58   :  { %2264 = vmatpush3.bf16.msra.mxu0 %v2898_v23  ;;  %836 = vmatpush1.bf16.msra.mxu1 %v2594_v15  ;;  %v3234_v15 = vrot.slane %v894_v13, %v2968_v41  ;;  %v924_v45 = vcombine.high %v3237_v39, %v3237_v39 }
  0x59   :  { %2265 = vmatprep.subr.bf16.mxu0 %v2910_v25  ;;  %2231 = vmatprep.subr.bf16.mxu1 %v2761_v0 }
  0x5a   :  { %v926_v43 = vcombine.high %v3234_v15, %v3234_v15 }
  0x5c   :  { %2266 = vmatpush3.bf16.msra.mxu0 %v2922_v27 }
  0x5d   :  { %2267 = vmatprep.subr.bf16.mxu0 %v2934_v30 }
  0x60   :  { %2268 = vmatpush3.bf16.msra.mxu0 %v2946_v32 }
  0x61   :  { %2297 = vmatprep.subr.bf16.mxu0 %v2964_v38 }
  0x63   :  { %1008 = vmatmul.mubr.bf16.vlgmr.msra.gmra.mxu0 %v923_v7 }
  0x64   :  { %2298 = vmatpush3.bf16.msra.mxu0 %v2986_v49  ;;  %1087 = vmatprep.mubr.bf16.mxu0 %v926_v43 }
  0x65   :  { %2299 = vmatprep.subr.bf16.mxu0 %v2997_v54 }
  0x68   :  { %2300 = vmatpush3.bf16.msra.mxu0 %v3008_v57 }
  0x69   :  { %2301 = vmatprep.subr.bf16.mxu0 %v3020_v59 }
  0x6c   :  { %2302 = vmatpush3.bf16.msra.mxu0 %v3032_v61 }
  0x6d   :  { %2303 = vmatprep.subr.bf16.mxu0 %v3044_v63 }
  0x70   :  { %2304 = vmatpush3.bf16.msra.mxu0 %v3056_v34 }
  0x71   :  { %2305 = vmatprep.subr.bf16.mxu0 %v3068_v37 }
  0x74   :  { %2306 = vmatpush3.bf16.msra.mxu0 %v3080_v40 }
  0x75   :  { %2307 = vmatprep.subr.bf16.mxu0 %v3092_v44 }
  0x78   :  { %2308 = vmatpush3.bf16.msra.mxu0 %v3104_v46 }
  0x79   :  { %2309 = vmatprep.subr.bf16.mxu0 %v3115_v50 }
  0x7c   :  { %2310 = vmatpush3.bf16.msra.mxu0 %v3133_v56 }
  0x7d   :  { %2311 = vmatprep.subr.bf16.mxu0 %v3139_v33 }
  0x80   :  { %2312 = vmatpush3.bf16.msra.mxu0 %v3152_v48  ;;  %v3264_v48 = vld [vmem:[%s3729_s2] ss:$0 sm:$0xff] }
  0x81   :  { %2319 = vmatprep.subr.bf16.mxu0 %v2761_v0 }
  0x83   :  { %1088 = vmatmul.mubr.bf16.vlgmr.msra.gmra.mxu0 %v924_v45 }
  0x84   :  { %2320 = vmatpush3.bf16.msra.mxu0 %v2772_v2 }
  0x85   :  { %2321 = vmatprep.subr.bf16.mxu0 %v2784_v4 }
  0x88   :  { %2322 = vmatpush3.bf16.msra.mxu0 %v2796_v6 }
  0x89   :  { %2323 = vmatprep.subr.bf16.mxu0 %v2808_v8 }
  0x8c   :  { %2324 = vmatpush3.bf16.msra.mxu0 %v2820_v10 }
  0x8d   :  { %2325 = vmatprep.subr.bf16.mxu0 %v2832_v12 }
  0x90   :  { %2326 = vmatpush3.bf16.msra.mxu0 %v2844_v14 }
  0x91   :  { %2327 = vmatprep.subr.bf16.mxu0 %v2856_v16 }
  0x94   :  { %2328 = vmatpush3.bf16.msra.mxu0 %v2868_v18 }
  0x95   :  { %2329 = vmatprep.subr.bf16.mxu0 %v2880_v20 }
  0x98   :  { %2330 = vmatpush3.bf16.msra.mxu0 %v2892_v22 }
  0x99   :  { %2331 = vmatprep.subr.bf16.mxu0 %v2904_v24 }
  0x9c   :  { %2332 = vmatpush3.bf16.msra.mxu0 %v2916_v26 }
  0x9d   :  { %2333 = vmatprep.subr.bf16.mxu0 %v2928_v29 }
  0xa0   :  { %2334 = vmatpush3.bf16.msra.mxu0 %v2940_v31 }
  0xa1   :  { %2363 = vmatprep.subr.bf16.mxu0 %v2957_v35 }
  0xe3   :  { %v2159_v0 = vpop.f32.mrf.mxu0 }
  0xe4   :  { %v2181_v5 = vpop.f32.mrf.mxu1 }
  0xe5   :  { %v2160_v7 = vpop.f32.mrf.mxu0 }
  0xe6   :  { %v2182_v9 = vpop.f32.mrf.mxu1  ;;  %v2161_v17 = vadd.f32 %v2160_v7, %v2159_v0 }
  0xe7   :  { %v2162_v11 = vpop.f32.mrf.mxu0 }
  0xe8   :  { %v2184_v13 = vpop.f32.mrf.mxu1  ;;  %v642_v33 = vadd.f32 %v2161_v17, %v3264_v48  ;;  %v2183_v11 = vadd.f32 %v2182_v9, %v2181_v5 }
  0xe9   :  { %v2163_v43 = vpop.f32.mrf.mxu0 }
  0xea   :  { %v2185_v45 = vpop.f32.mrf.mxu1  ;;  %v682_v44 = vadd.f32 %v2183_v11, %v642_v33  ;;  %v2601_v33 = vld [vmem:[%s3730_s3 + $0x60] ss:$8 sps:$4 sm:$0xff]  }
 0x103   :  { %v2203_v56 = vpop.f32.mrf.mxu0 }
 0x104   :  { %v2225_v50 = vpop.f32.mrf.mxu1 }
 0x105   :  { %v2204_v46 = vpop.f32.mrf.mxu0 }
 0x106   :  { %v2205_v13 = vadd.f32 %v2204_v46, %v2203_v56  ;;  %v2226_v43 = vpop.f32.mrf.mxu1  ;;  %v2106_v46 = vld [vmem:[%s3727_s0 + $0x10] sm:$0xff]  ;;  %v3337_v56 = vld [vmem:[%s3728_s1 + $0xf8] sm:$0xff]  }
 0x107   :  { %v2206_v45 = vpop.f32.mrf.mxu0  ;;  %v2227_v37 = vadd.f32 %v2226_v43, %v2225_v50  ;;  %v1201_v50 = vrot.slane %v2106_v46, %v2968_v41 }
 0x108   :  { %v722_v40 = vadd.f32 %v2205_v13, %v682_v44  ;;  %v2228_v34 = vpop.f32.mrf.mxu1  ;;  %v2607_v44 = vld [vmem:[%s3730_s3 + $0x40] ss:$8 sps:$4 sm:$0xff]  }
 0x109   :  { %v2207_v63 = vpop.f32.mrf.mxu0  ;;  %v1209_v17 = vcombine.high %v1201_v50, %v1201_v50 }
 0x10a   :  { %v762_v0 = vadd.f32 %v2227_v37, %v722_v40  ;;  %v2229_v7 = vpop.f32.mrf.mxu1  ;;  %v2606_v63 = vld [vmem:[%s3730_s3 + $0x54] ss:$8 sps:$4 sm:$0xff]   ;;  %v2604_v37 = vld [vmem:[%s3730_s3 + $0x50] ss:$8 sps:$4 sm:$0xff]   ;;  %v2609_v40 = vld [vmem:[%s3730_s3 + $0x44] ss:$8 sps:$4 sm:$0xff]  }
 0x10c   :  { %v767_v61 = vmax.f32 %v762_v0, 0.0 }
 0x10e   :  { %v768_v59 = vpack.c.bf16 %v767_v61, %v767_v61 }
 0x110   :  { %2095 = vmatmul.mubr.msk.bf16.vlgmr.msra.gmra.mxu1 %vm817_vm0, %v768_v59 }
 0x111   :  { %2232 = vmatpush3.bf16.msra.mxu1 %v2772_v2  ;;  %967 = vmatprep.mubr.bf16.mxu1 %v3209_v1  ;;  %v3783_v2 = vld [vmem:[#allocation11_spill] sm:$0xff]  ;;  %v1231_v1 = vrot.slane %v1209_v17, %v2968_v41  ;;  %v3401_v17 = vld [vmem:[%s3728_s1 + $0xa8] sm:$0xff]  }
 0x112   :  { %2233 = vmatprep.subr.bf16.mxu1 %v2784_v4  ;;  %v3784_v4 = vld [vmem:[#allocation13_spill] sm:$0xff] }
 0x113   :  { %1283 = vmatprep.mubr.bf16.mxu0 %v1231_v1 }
 0x115   :  { %2234 = vmatpush3.bf16.msra.mxu1 %v2796_v6  ;;  %v3785_v6 = vld [vmem:[#allocation15_spill] sm:$0xff] }
 0x116   :  { %2235 = vmatprep.subr.bf16.mxu1 %v2808_v8  ;;  %v3786_v8 = vld [vmem:[#allocation17_spill] sm:$0xff] }
 0x119   :  { %2236 = vmatpush3.bf16.msra.mxu1 %v2820_v10  ;;  %v3787_v10 = vmov 0  }
 0x11a   :  { %2237 = vmatprep.subr.bf16.mxu1 %v2832_v12 }
 0x11d   :  { %2238 = vmatpush3.bf16.msra.mxu1 %v2844_v14 }
 0x11e   :  { %2239 = vmatprep.subr.bf16.mxu1 %v2856_v16 }
 0x121   :  { %2240 = vmatpush3.bf16.msra.mxu1 %v2868_v18 }
 0x122   :  { %2241 = vmatprep.subr.bf16.mxu1 %v2880_v20 }
 0x123   :  { %v2269_v12 = vpop.f32.mrf.mxu0 }
 0x125   :  { %2242 = vmatpush3.bf16.msra.mxu1 %v2892_v22  ;;  %v2270_v14 = vpop.f32.mrf.mxu0  ;;  %v2598_v22 = vld [vmem:[%s3730_s3 + $0x70] ss:$8 sps:$4 sm:$0xff]  }
 0x126   :  { %2243 = vmatprep.subr.bf16.mxu1 %v2904_v24  ;;  %v3304_v16 = vadd.f32 %v2270_v14, %v2269_v12  ;;  %v2600_v24 = vld [vmem:[%s3730_s3 + $0x74] ss:$8 sps:$4 sm:$0xff]  }
 0x127   :  { %v2272_v18 = vpop.f32.mrf.mxu0 }
 0x129   :  { %2244 = vmatpush3.bf16.msra.mxu1 %v2916_v26  ;;  %v2273_v20 = vpop.f32.mrf.mxu0 }
 0x12a   :  { %2245 = vmatprep.subr.bf16.mxu1 %v2928_v29  ;;  %v2603_v29 = vld [vmem:[%s3730_s3 + $0x64] ss:$8 sps:$4 sm:$0xff]  }
 0x12d   :  { %2246 = vmatpush3.bf16.msra.mxu1 %v2940_v31 }
 0x12e   :  { %2275 = vmatprep.subr.bf16.mxu1 %v2957_v35 }
 0x130   :  { %968 = vmatmul.mubr.bf16.vlgmr.msra.gmra.mxu1 %v3212_v3  ;;  %v3342_v3 = vrot.slane %v1201_v50, %v2968_v41  ;;  %v3395_v50 = vld [vmem:[%s3728_s1 + $0xe8] sm:$0xff]  }
 0x131   :  { %2276 = vmatpush3.bf16.msra.mxu1 %v2980_v47  ;;  %1047 = vmatprep.mubr.bf16.mxu1 %v3234_v15  ;;  %v1194_v15 = vcombine.high %v2106_v46, %v2106_v46  ;;  %v3377_v46 = vld [vmem:[%s3728_s1 + $0xb8] sm:$0xff]  }
 0x132   :  { %2277 = vmatprep.subr.bf16.mxu1 %v2992_v52  ;;  %1284 = vmatmul.mubr.bf16.vlgmr.msra.gmra.mxu0 %v3342_v3 }
 0x133   :  { %2364 = vmatpush3.bf16.msra.mxu0 %v2980_v47 }
 0x134   :  { %2365 = vmatprep.subr.bf16.mxu0 %v2992_v52 }
 0x135   :  { %2278 = vmatpush3.bf16.msra.mxu1 %v3002_v55 }
 0x136   :  { %2279 = vmatprep.subr.bf16.mxu1 %v3014_v58 }
 0x137   :  { %2366 = vmatpush3.bf16.msra.mxu0 %v3002_v55 }
 0x138   :  { %2367 = vmatprep.subr.bf16.mxu0 %v3014_v58 }
 0x139   :  { %2280 = vmatpush3.bf16.msra.mxu1 %v3026_v60 }
 0x13a   :  { %2281 = vmatprep.subr.bf16.mxu1 %v3038_v62 }
 0x13b   :  { %2368 = vmatpush3.bf16.msra.mxu0 %v3026_v60 }
 0x13c   :  { %2369 = vmatprep.subr.bf16.mxu0 %v3038_v62 }
 0x13d   :  { %2282 = vmatpush3.bf16.msra.mxu1 %v3050_v28 }
 0x13e   :  { %2283 = vmatprep.subr.bf16.mxu1 %v3062_v36 }
 0x13f   :  { %2370 = vmatpush3.bf16.msra.mxu0 %v3050_v28 }
 0x140   :  { %2371 = vmatprep.subr.bf16.mxu0 %v3062_v36 }
 0x141   :  { %2284 = vmatpush3.bf16.msra.mxu1 %v3783_v2 }
 0x142   :  { %2285 = vmatprep.subr.bf16.mxu1 %v3784_v4 }
 0x143   :  { %v2313_v26 = vpop.f32.mrf.mxu0  ;;  %2372 = vmatpush3.bf16.msra.mxu0 %v3783_v2 }
 0x144   :  { %2373 = vmatprep.subr.bf16.mxu0 %v3784_v4 }
 0x145   :  { %2286 = vmatpush3.bf16.msra.mxu1 %v3785_v6  ;;  %v2314_v31 = vpop.f32.mrf.mxu0 }
 0x146   :  { %2287 = vmatprep.subr.bf16.mxu1 %v3786_v8  ;;  %v2315_v59 = vadd.f32 %v2314_v31, %v2313_v26 }
 0x147   :  { %v2316_v61 = vpop.f32.mrf.mxu0  ;;  %2374 = vmatpush3.bf16.msra.mxu0 %v3785_v6 }
 0x148   :  { %2375 = vmatprep.subr.bf16.mxu0 %v3786_v8 }
 0x149   :  { %2288 = vmatpush3.bf16.msra.mxu1 %v3121_v51  ;;  %v2317_v34 = vpop.f32.mrf.mxu0 }
 0x14a   :  { %2289 = vmatprep.subr.bf16.mxu1 %v3127_v53 }
 0x14b   :  { %2376 = vmatpush3.bf16.msra.mxu0 %v3121_v51 }
 0x14c   :  { %2377 = vmatprep.subr.bf16.mxu0 %v3127_v53 }
 0x14d   :  { %2290 = vmatpush3.bf16.msra.mxu1 %v3145_v42 }
 0x14e   :  { %1156 = vmatprep.subr.bf16.mxu1 %v2600_v24 }
 0x14f   :  { %2378 = vmatpush3.bf16.msra.mxu0 %v3145_v42 }
 0x150   :  { %1048 = vmatmul.mubr.bf16.vlgmr.msra.gmra.mxu1 %v3237_v39  ;;  %v1208_v39 = vrot.slane %v1194_v15, %v2968_v41  ;;  %v3413_v15 = vld [vmem:[%s3728_s1 + $0xa0] sm:$0xff]  }
 0x151   :  { %1180 = vmatprep.mubr.bf16.mxu1 %v3787_v10  ;;  %1157 = vmatpush1.bf16.msra.mxu1 %v2598_v22 }
 0x152   :  { %1158 = vmatprep.subr.bf16.mxu1 %v2603_v29  ;;  %v1210_v5 = vcombine.high %v1208_v39, %v1208_v39  ;;  %v3363_v11 = vrot.slane %v1208_v39, %v2968_v41  ;;  %v3419_v39 = vld [vmem:[%s3728_s1 + $0xd8] sm:$0xff]  }
 0x154   :  { %v1238_v9 = vrot.slane %v1210_v5, %v2968_v41  ;;  %v1239_v5 = vcombine.high %v3342_v3, %v3342_v3  ;;  %v1240_v3 = vcombine.high %v3363_v11, %v3363_v11 }
 0x155   :  { %1159 = vmatpush1.bf16.msra.mxu1 %v2601_v33 }
 0x156   :  { %1160 = vmatprep.subr.bf16.mxu1 %v2606_v63  ;;  %1363 = vmatprep.mubr.bf16.mxu0 %v1238_v9 }
 0x157   :  { %1364 = vmatmul.mubr.bf16.vlgmr.msra.gmra.mxu0 %v3363_v11  ;;  %v2664_v11 = vld [vmem:[%s3728_s1 + $0x30] sm:$0xff]  }
 0x158   :  { %1496 = vmatprep.mubr.bf16.mxu0 %v3787_v10 }
 0x159   :  { %1161 = vmatpush1.bf16.msra.mxu1 %v2604_v37 }
 0x15a   :  { %1162 = vmatprep.subr.bf16.mxu1 %v2609_v40  ;;  %v1241_v40 = vcombine.high %v1231_v1, %v1231_v1  ;;  %v3407_v1 = vld [vmem:[%s3728_s1 + $0xe0] sm:$0xff]  }
 0x15d   :  { %1163 = vmatpush1.bf16.msra.mxu1 %v2607_v44 }
 0x15e   :  { %2341 = vmatprep.subr.bf16.mxu1 %v3337_v56 }
 0x1d0   :  { %v3367_v13 = vpop.f32.mrf.mxu1 }
 0x1d2   :  { %v3369_v43 = vpop.f32.mrf.mxu1 }
 0x1d4   :  { %v859_v45 = vpop.f32.mrf.mxu1 }
 0x1d5   :  { %v1242_v45 = vcombine.high %v1238_v9, %v1238_v9  ;;  %v3799_v9 = vld [vmem:[#allocation21_spill] sm:$0xff] }
 0x1d6   :  { %v860_v0 = vpop.f32.mrf.mxu1 }
 0x1d7   :  { %v2661_v0 = vld [vmem:[%s3728_s1 + $0x78] sm:$0xff]  }
 0x1f0   :  { %v2247_v7 = vpop.f32.mrf.mxu1 }
 0x1f2   :  { %v2248_v12 = vpop.f32.mrf.mxu1 }
 0x1f3   :  { %v2249_v20 = vadd.f32 %v2248_v12, %v2247_v7  ;;  %v2662_v7 = vld [vmem:[%s3728_s1 + $0x38] sm:$0xff]   ;;  %v2663_v12 = vld [vmem:[%s3728_s1 + $0x70] sm:$0xff]  }
 0x1f4   :  { %v2250_v14 = vpop.f32.mrf.mxu1 }
 0x1f5   :  { %v970_v22 = vadd.f32 %v2249_v20, %v3264_v48  ;;  %v2335_v14 = vpop.f32.mrf.mxu0 }
 0x1f6   :  { %v2251_v18 = vpop.f32.mrf.mxu1 }
 0x1f7   :  { %v1010_v29 = vadd.f32 %v3304_v16, %v970_v22  ;;  %v3383_v16 = vld [vmem:[%s3728_s1 + $0xf0] sm:$0xff]   ;;  %v2665_v18 = vld [vmem:[%s3728_s1 + $0x68] sm:$0xff]   ;;  %v2336_v20 = vpop.f32.mrf.mxu0 }
 0x1f8   :  { %v3464_v22 = vadd.f32 %v2336_v20, %v2335_v14  ;;  %v2622_v14 = vld [vmem:[%s3730_s3 + $0x84] ss:$8 sps:$4 sm:$0xff]   ;;  %v2116_v20 = vld [vmem:[%s3727_s0 + $0x18] sm:$0xff] }
 0x210   :  { %v2291_v24 = vpop.f32.mrf.mxu1 }
 0x212   :  { %v2292_v26 = vpop.f32.mrf.mxu1 }
 0x213   :  { %v2293_v31 = vadd.f32 %v2292_v26, %v2291_v24  ;;  %v2666_v24 = vld [vmem:[%s3728_s1 + $0x28] sm:$0xff]   ;;  %v2338_v26 = vpop.f32.mrf.mxu0 }
 0x214   :  { %v2294_v33 = vpop.f32.mrf.mxu1 }
 0x215   :  { %v1050_v61 = vadd.f32 %v2293_v31, %v1010_v29  ;;  %v2667_v29 = vld [vmem:[%s3728_s1 + $0x60] sm:$0xff]   ;;  %v2339_v31 = vpop.f32.mrf.mxu0 }
 0x216   :  { %v2295_v63 = vpop.f32.mrf.mxu1  ;;  %v2668_v33 = vld [vmem:[%s3728_s1 + $0x20] sm:$0xff]  }
 0x217   :  { %v1090_v34 = vadd.f32 %v2315_v59, %v1050_v61  ;;  %v3389_v59 = vld [vmem:[%s3728_s1 + $0xb0] sm:$0xff]   ;;  %v2669_v61 = vld [vmem:[%s3728_s1 + $0x58] sm:$0xff]  }
 0x218   :  { %v2670_v63 = vld [vmem:[%s3728_s1 + $0x18] sm:$0xff]  }
 0x219   :  { %v1095_v37 = vmax.f32 %v1090_v34, 0.0  ;;  %v2671_v34 = vld [vmem:[%s3728_s1 + $0x50] sm:$0xff]  }
 0x21b   :  { %v1096_v44 = vpack.c.bf16 %v1095_v37, %v1095_v37  ;;  %v2672_v37 = vld [vmem:[%s3728_s1 + $0x10] sm:$0xff]  }
 0x21d   :  { %2105 = vmatmul.mubr.msk.bf16.vlgmr.msra.gmra.mxu1 %vm817_vm0, %v1096_v44  ;;  %v2674_v44 = vld [vmem:[%s3728_s1 + $0x8] sm:$0xff]  }
 0x21e   :  { %2342 = vmatpush3.bf16.msra.mxu1 %v3377_v46  ;;  %1323 = vmatprep.mubr.bf16.mxu1 %v1241_v40  ;;  %v2673_v40 = vld [vmem:[%s3728_s1 + $0x48] sm:$0xff]  }
 0x21f   :  { %2343 = vmatprep.subr.bf16.mxu1 %v3383_v16 }
 0x222   :  { %2344 = vmatpush3.bf16.msra.mxu1 %v3389_v59 }
 0x223   :  { %2345 = vmatprep.subr.bf16.mxu1 %v3395_v50 }
 0x226   :  { %2346 = vmatpush3.bf16.msra.mxu1 %v3401_v17 }
 0x227   :  { %2347 = vmatprep.subr.bf16.mxu1 %v3407_v1 }
 0x22a   :  { %2348 = vmatpush3.bf16.msra.mxu1 %v3413_v15 }
 0x22b   :  { %2349 = vmatprep.subr.bf16.mxu1 %v3419_v39 }
 0x22e   :  { %2350 = vmatpush3.bf16.msra.mxu1 %v2874_v19  ;;  %v3788_v19 = vld [vmem:[#allocation6_spill] sm:$0xff] }
 0x22f   :  { %2351 = vmatprep.subr.bf16.mxu1 %v2886_v21  ;;  %v3789_v21 = vld [vmem:[#allocation7_spill] sm:$0xff] }
 0x232   :  { %2352 = vmatpush3.bf16.msra.mxu1 %v2898_v23  ;;  %v3790_v23 = vld [vmem:[#allocation8_spill] sm:$0xff] }
 0x233   :  { %2353 = vmatprep.subr.bf16.mxu1 %v2910_v25  ;;  %v3791_v25 = vld [vmem:[#allocation9_spill] sm:$0xff] }
 0x236   :  { %2354 = vmatpush3.bf16.msra.mxu1 %v2922_v27  ;;  %v3792_v27 = vld [vmem:[#allocation10_spill] sm:$0xff] }
 0x237   :  { %2355 = vmatprep.subr.bf16.mxu1 %v2934_v30  ;;  %v3793_v30 = vld [vmem:[#allocation12_spill] sm:$0xff] }
 0x23a   :  { %2356 = vmatpush3.bf16.msra.mxu1 %v2946_v32  ;;  %v3794_v32 = vld [vmem:[#allocation14_spill] sm:$0xff] }
 0x23b   :  { %2385 = vmatprep.subr.bf16.mxu1 %v2964_v38  ;;  %v3795_v38 = vld [vmem:[#allocation16_spill] sm:$0xff] }
 0x23d   :  { %1324 = vmatmul.mubr.bf16.vlgmr.msra.gmra.mxu1 %v1239_v5  ;;  %v2675_v5 = vld [vmem:[%s3728_s1 + $0x40] sm:$0xff]  }
 0x23e   :  { %2386 = vmatpush3.bf16.msra.mxu1 %v2986_v49  ;;  %1403 = vmatprep.mubr.bf16.mxu1 %v1242_v45  ;;  %v3796_v49 = vld [vmem:[#allocation18_spill] sm:$0xff]  ;;  %v2676_v45 = vld [vmem:[%s3728_s1] sm:$0xff]  }
 0x23f   :  { %2387 = vmatprep.subr.bf16.mxu1 %v2997_v54  ;;  %v3797_v54 = vld [vmem:[#allocation19_spill] sm:$0xff] }
 0x242   :  { %2388 = vmatpush3.bf16.msra.mxu1 %v3008_v57  ;;  %v3798_v57 = vld [vmem:[#allocation20_spill] sm:$0xff] }
 0x243   :  { %2389 = vmatprep.subr.bf16.mxu1 %v3788_v19  ;;  %v2379_v19 = vpop.f32.mrf.mxu0 }
 0x246   :  { %2390 = vmatpush3.bf16.msra.mxu1 %v3789_v21  ;;  %v2380_v21 = vpop.f32.mrf.mxu0 }
 0x247   :  { %2391 = vmatprep.subr.bf16.mxu1 %v3790_v23  ;;  %v3500_v23 = vadd.f32 %v2380_v21, %v2379_v19 }
 0x24a   :  { %2392 = vmatpush3.bf16.msra.mxu1 %v3791_v25  ;;  %v2611_v25 = vld [vmem:[%s3730_s3 + $0xb0] ss:$8 sps:$4 sm:$0xff]  }
 0x24b   :  { %2393 = vmatprep.subr.bf16.mxu1 %v3792_v27  ;;  %v2613_v27 = vld [vmem:[%s3730_s3 + $0xb4] ss:$8 sps:$4 sm:$0xff]  }
 0x24c   :  { %1472 = vmatprep.subr.bf16.mxu0 %v2613_v27 }
 0x24d   :  { %1473 = vmatpush1.bf16.msra.mxu0 %v2611_v25 }
 0x24e   :  { %2394 = vmatpush3.bf16.msra.mxu1 %v3793_v30 }
 0x24f   :  { %2395 = vmatprep.subr.bf16.mxu1 %v3794_v32 }
 0x252   :  { %2396 = vmatpush3.bf16.msra.mxu1 %v3795_v38 }
 0x253   :  { %2397 = vmatprep.subr.bf16.mxu1 %v3796_v49 }
 0x256   :  { %2398 = vmatpush3.bf16.msra.mxu1 %v3797_v54 }
 0x257   :  { %2399 = vmatprep.subr.bf16.mxu1 %v3798_v57 }
 0x25a   :  { %2400 = vmatpush3.bf16.msra.mxu1 %v3799_v9 }
 0x25b   :  { %2407 = vmatprep.subr.bf16.mxu1 %v2661_v0  ;;  %v2616_v0 = vld [vmem:[%s3730_s3 + $0xa4] ss:$8 sps:$4 sm:$0xff]  }
 0x25c   :  { %1474 = vmatprep.subr.bf16.mxu0 %v2616_v0 }
 0x25d   :  { %1404 = vmatmul.mubr.bf16.vlgmr.msra.gmra.mxu1 %v1240_v3  ;;  %v2382_v3 = vpop.f32.mrf.mxu0 }
 0x25e   :  { %2408 = vmatpush3.bf16.msra.mxu1 %v2662_v7 }
 0x25f   :  { %2409 = vmatprep.subr.bf16.mxu1 %v2663_v12  ;;  %v2383_v7 = vpop.f32.mrf.mxu0  ;;  %v2619_v12 = vld [vmem:[%s3730_s3 + $0x94] ss:$8 sps:$4 sm:$0xff]  }
 0x262   :  { %2410 = vmatpush3.bf16.msra.mxu1 %v2664_v11  ;;  %v2617_v11 = vld [vmem:[%s3730_s3 + $0x90] ss:$8 sps:$4 sm:$0xff]  }
 0x263   :  { %2411 = vmatprep.subr.bf16.mxu1 %v2665_v18  ;;  %v2620_v18 = vld [vmem:[%s3730_s3 + $0x80] ss:$8 sps:$4 sm:$0xff]  }
 0x266   :  { %2412 = vmatpush3.bf16.msra.mxu1 %v2666_v24  ;;  %v1517_v24 = vrot.slane %v2116_v20, %v2968_v41 }
 0x267   :  { %2413 = vmatprep.subr.bf16.mxu1 %v2667_v29 }
 0x268   :  { %v1525_v26 = vcombine.high %v1517_v24, %v1517_v24  ;;  %v3533_v31 = vrot.slane %v1517_v24, %v2968_v41  ;;  %v2691_v24 = vld [vmem:[%s3728_s1 + $0x1a0] sm:$0xff]  }
 0x26a   :  { %2414 = vmatpush3.bf16.msra.mxu1 %v2668_v33  ;;  %v1547_v29 = vrot.slane %v1525_v26, %v2968_v41  ;;  %v2692_v26 = vld [vmem:[%s3728_s1 + $0x1d8] sm:$0xff]  }
 0x26b   :  { %2415 = vmatprep.subr.bf16.mxu1 %v2669_v61 }
 0x26c   :  { %1599 = vmatprep.mubr.bf16.mxu1 %v1547_v29  ;;  %v1557_v0 = vcombine.high %v1547_v29, %v1547_v29 }
 0x26e   :  { %2416 = vmatpush3.bf16.msra.mxu1 %v2670_v63  ;;  %v1286_v63 = vadd.f32 %v3464_v22, %v3264_v48  ;;  %v2677_v22 = vld [vmem:[%s3728_s1 + $0x98] sm:$0xff]  }
 0x26f   :  { %2417 = vmatprep.subr.bf16.mxu1 %v2671_v34 }
 0x272   :  { %2418 = vmatpush3.bf16.msra.mxu1 %v2672_v37 }
 0x273   :  { %2419 = vmatprep.subr.bf16.mxu1 %v2673_v40 }
 0x276   :  { %2420 = vmatpush3.bf16.msra.mxu1 %v2674_v44 }
 0x277   :  { %2421 = vmatprep.subr.bf16.mxu1 %v2675_v5 }
 0x27a   :  { %2422 = vmatpush3.bf16.msra.mxu1 %v2676_v45 }
 0x27b   :  { %2451 = vmatprep.subr.bf16.mxu1 %v2957_v35  ;;  %v2614_v35 = vld [vmem:[%s3730_s3 + $0xa0] ss:$8 sps:$4 sm:$0xff]  }
 0x27c   :  { %1475 = vmatpush1.bf16.msra.mxu0 %v2614_v35  ;;  %v2685_v35 = vld [vmem:[%s3728_s1 + $0x1b8] sm:$0xff]  }
 0x27d   :  { %1476 = vmatprep.subr.bf16.mxu0 %v2619_v12  ;;  %1600 = vmatmul.mubr.bf16.vlgmr.msra.gmra.mxu1 %v3533_v31  ;;  %v2686_v12 = vld [vmem:[%s3728_s1 + $0x1f0] sm:$0xff]  }
 0x27e   :  { %2452 = vmatpush3.bf16.msra.mxu1 %v2980_v47  ;;  %v1510_v47 = vcombine.high %v2116_v20, %v2116_v20  ;;  %v2690_v20 = vld [vmem:[%s3728_s1 + $0x1e0] sm:$0xff]  }
 0x27f   :  { %2453 = vmatprep.subr.bf16.mxu1 %v2992_v52 }
 0x280   :  { %1477 = vmatpush1.bf16.msra.mxu0 %v2617_v11  ;;  %v1524_v52 = vrot.slane %v1510_v47, %v2968_v41  ;;  %v2687_v11 = vld [vmem:[%s3728_s1 + $0x1b0] sm:$0xff]  }
 0x281   :  { %1478 = vmatprep.subr.bf16.mxu0 %v2622_v14  ;;  %v2688_v14 = vld [vmem:[%s3728_s1 + $0x1e8] sm:$0xff]  }
 0x282   :  { %2454 = vmatpush3.bf16.msra.mxu1 %v3002_v55  ;;  %v1526_v55 = vcombine.high %v1524_v52, %v1524_v52 }
 0x283   :  { %2455 = vmatprep.subr.bf16.mxu1 %v3014_v58 }
 0x284   :  { %1479 = vmatpush1.bf16.msra.mxu0 %v2620_v18  ;;  %v3552_v58 = vrot.slane %v1526_v55, %v2968_v41  ;;  %v2689_v18 = vld [vmem:[%s3728_s1 + $0x1a8] sm:$0xff]  }
 0x285   :  { %2429 = vmatprep.subr.bf16.mxu0 %v3337_v56 }
 0x286   :  { %2456 = vmatpush3.bf16.msra.mxu1 %v3026_v60  ;;  %v3556_v60 = vrot.slane %v1524_v52, %v2968_v41  ;;  %1679 = vmatprep.mubr.bf16.mxu1 %v3552_v58 }
 0x287   :  { %2457 = vmatprep.subr.bf16.mxu1 %v3038_v62  ;;  %v3800_v62 = vld [vmem:[#allocation5_spill] sm:$0xff] }
 0x288   :  { %v1556_v29 = vcombine.high %v3556_v60, %v3556_v60 }
 0x28a   :  { %2458 = vmatpush3.bf16.msra.mxu1 %v3050_v28  ;;  %v865_v28 = vsub.s32 0, %v3800_v62 }
 0x28b   :  { %2459 = vmatprep.subr.bf16.mxu1 %v3062_v36  ;;  %v28_v36 = vld [vmem:[%s3731_s4] sm:$0x3]  ;;  %s2717_s4 = smov [#allocation2]  }
 0x28c   :  { %s2014_s27 = sshll.u32 %s2717_s4, 4  ;;  %s2015_s27 = int_to_ptr.vmem [resolvable:$true] %s2014_s27 }
 0x28d   :  { %s2693_s28 = scalar_lea.vmem %s2015_s27, 32  ;;  %p2698_p1 = scmp.lt.s32.totalorder %s2015_s27, %s2015_s27 }
 0x28e   :  { %2460 = vmatpush3.bf16.msra.mxu1 %v3783_v2  ;;  %p2694_p0 = scmp.ne.s32.totalorder %s2015_s27, %s2693_s28  ;;  %p2699_p2 = scmp.lt.s32.totalorder %s2693_s28, %s2693_s28 }
 0x28f   :  { %2461 = vmatprep.subr.bf16.mxu1 %v3784_v4 }
 0x290   :  { %p2700_p3 = por %p2699_p2, %p2698_p1 }
 0x292   :  { %2462 = vmatpush3.bf16.msra.mxu1 %v3785_v6  ;;  %p2701_p4 = pnand %p2700_p3, %p2694_p0 }
 0x293   :  { %2463 = vmatprep.subr.bf16.mxu1 %v3786_v8 }
 0x296   :  { %2464 = vmatpush3.bf16.msra.mxu1 %v3121_v51  ;;  %v869_v51 = vsub.s32 1, %v3800_v62  ;;  %v2627_v62 = vld [vmem:[%s3730_s3 + $0xe0] ss:$8 sps:$4 sm:$0xff]  }
 0x297   :  { %2465 = vmatprep.subr.bf16.mxu1 %v3127_v53  ;;  %v866_v53 = vrot.slane %v28_v36, %v865_v28  ;;  %v2632_v28 = vld [vmem:[%s3730_s3 + $0xd4] ss:$8 sps:$4 sm:$0xff]  }
 0x298   :  { %v870_v2 = vrot.slane %v28_v36, %v869_v51  ;;  %v2630_v36 = vld [vmem:[%s3730_s3 + $0xd0] ss:$8 sps:$4 sm:$0xff]   ;;  %v2635_v51 = vld [vmem:[%s3730_s3 + $0xc4] ss:$8 sps:$4 sm:$0xff]  }
 0x29a   :  { %2466 = vmatpush3.bf16.msra.mxu1 %v3145_v42  ;;  %v873_v42 = vadd.f32 %v866_v53, %v3367_v13  ;;  %v874_v4 = vadd.f32 %v870_v2, %v3369_v43  ;;  %v2633_v53 = vld [vmem:[%s3730_s3 + $0xc0] ss:$8 sps:$4 sm:$0xff]   ;;  %v2636_v2 = vld [vmem:[%s3732_s5 + $0x78] sm:$0xff]  }
 0x29d   :  { %1680 = vmatmul.mubr.bf16.vlgmr.msra.gmra.mxu1 %v3556_v60 }
 0x29e   :  { %1812 = vmatprep.mubr.bf16.mxu1 %v3787_v10 }
 0x2dd   :  { %v1182_v41 = vpop.f32.mrf.mxu1 }
 0x2de   :  { %v3568_v6 = vadd.f32 %v1182_v41, %v873_v42  ;;  %v2637_v42 = vld [vmem:[%s3732_s5 + $0x38] sm:$0xff]   ;;  %v2638_v41 = vld [vmem:[%s3732_s5 + $0x70] sm:$0xff]  }
 0x2df   :  { %v1184_v8 = vpop.f32.mrf.mxu1 }
 0x2e0   :  { %v3570_v56 = vadd.f32 %v1184_v8, %v874_v4  ;;  %v2639_v4 = vld [vmem:[%s3732_s5 + $0x30] sm:$0xff]   ;;  %v2640_v8 = vld [vmem:[%s3732_s5 + $0x68] sm:$0xff]  }
 0x2e1   :  { %v1186_v10 = vpop.f32.mrf.mxu1 }
 0x2e2   :  { %v2641_v10 = vld [vmem:[%s3732_s5 + $0x28] sm:$0xff]  }
 0x2e3   :  { %v1187_v33 = vpop.f32.mrf.mxu1 }
 0x2e4   :  { %v2642_v33 = vld [vmem:[%s3732_s5 + $0x60] sm:$0xff]  }
 0x2fd   :  { %v2357_v61 = vpop.f32.mrf.mxu1 }
 0x2ff   :  { %v2358_v34 = vpop.f32.mrf.mxu1 }
 0x300   :  { %v2359_v37 = vadd.f32 %v2358_v34, %v2357_v61  ;;  %v2643_v61 = vld [vmem:[%s3732_s5 + $0x20] sm:$0xff]   ;;  %v2645_v34 = vld [vmem:[%s3732_s5 + $0x18] sm:$0xff]  }
 0x301   :  { %v2360_v40 = vpop.f32.mrf.mxu1 }
 0x302   :  { %v1326_v44 = vadd.f32 %v2359_v37, %v1286_v63  ;;  %v2644_v63 = vld [vmem:[%s3732_s5 + $0x58] sm:$0xff]   ;;  %v2646_v37 = vld [vmem:[%s3732_s5 + $0x50] sm:$0xff]  }
 0x303   :  { %v2361_v5 = vpop.f32.mrf.mxu1 }
 0x304   :  { %v1366_v13 = vadd.f32 %v3500_v23, %v1326_v44  ;;  %v2684_v23 = vld [vmem:[%s3728_s1 + $0x1f8] sm:$0xff]  }
 0x31d   :  { %v2401_v45 = vpop.f32.mrf.mxu1 }
 0x31f   :  { %v2402_v43 = vpop.f32.mrf.mxu1 }
 0x320   :  { %v2403_v19 = vadd.f32 %v2402_v43, %v2401_v45 }
 0x321   :  { %v2404_v21 = vpop.f32.mrf.mxu1 }
 0x322   :  { %v1406_v25 = vadd.f32 %v2403_v19, %v1366_v13 }
 0x323   :  { %v2405_v27 = vpop.f32.mrf.mxu1 }
 0x324   :  { %v1411_v3 = vmax.f32 %v1406_v25, 0.0 }
 0x326   :  { %v1412_v7 = vpack.c.bf16 %v1411_v3, %v1411_v3 }
 0x328   :  { %2115 = vmatmul.mubr.msk.bf16.vlgmr.msra.gmra.mxu0 %vm817_vm0, %v1412_v7 }
 0x329   :  { %2430 = vmatpush3.bf16.msra.mxu0 %v3377_v46  ;;  %1639 = vmatprep.mubr.bf16.mxu0 %v1557_v0  ;;  %v2678_v46 = vld [vmem:[%s3728_s1 + $0xd0] sm:$0xff]  }
 0x32a   :  { %2431 = vmatprep.subr.bf16.mxu0 %v3383_v16  ;;  %v2679_v16 = vld [vmem:[%s3728_s1 + $0x90] sm:$0xff]  }
 0x32d   :  { %2432 = vmatpush3.bf16.msra.mxu0 %v3389_v59  ;;  %v2680_v59 = vld [vmem:[%s3728_s1 + $0xc8] sm:$0xff]  }
 0x32e   :  { %2433 = vmatprep.subr.bf16.mxu0 %v3395_v50  ;;  %v2681_v50 = vld [vmem:[%s3728_s1 + $0x88] sm:$0xff]  }
 0x331   :  { %2434 = vmatpush3.bf16.msra.mxu0 %v3401_v17  ;;  %v2682_v17 = vld [vmem:[%s3728_s1 + $0xc0] sm:$0xff]  }
 0x332   :  { %2435 = vmatprep.subr.bf16.mxu0 %v3407_v1  ;;  %v1555_v1 = vcombine.high %v3533_v31, %v3533_v31 }
 0x335   :  { %2436 = vmatpush3.bf16.msra.mxu0 %v3413_v15  ;;  %v2683_v15 = vld [vmem:[%s3728_s1 + $0x80] sm:$0xff]  }
 0x336   :  { %2437 = vmatprep.subr.bf16.mxu0 %v3419_v39  ;;  %v1558_v39 = vcombine.high %v3552_v58, %v3552_v58 }
 0x339   :  { %2438 = vmatpush3.bf16.msra.mxu0 %v2677_v22 }
 0x33a   :  { %2439 = vmatprep.subr.bf16.mxu0 %v2678_v46 }
 0x33d   :  { %2440 = vmatpush3.bf16.msra.mxu0 %v2679_v16  ;;  %v2423_v31 = vpop.f32.mrf.mxu1 }
 0x33e   :  { %2441 = vmatprep.subr.bf16.mxu0 %v2680_v59 }
 0x33f   :  { %v2424_v47 = vpop.f32.mrf.mxu1 }
 0x340   :  { %v2425_v52 = vadd.f32 %v2424_v47, %v2423_v31 }
 0x341   :  { %2442 = vmatpush3.bf16.msra.mxu0 %v2681_v50 }
 0x342   :  { %2443 = vmatprep.subr.bf16.mxu0 %v2682_v17  ;;  %v1602_v21 = vadd.f32 %v2425_v52, %v3264_v48  ;;  %v2647_v48 = vld [vmem:[%s3732_s5 + $0x10] sm:$0xff]  }
 0x345   :  { %2444 = vmatpush3.bf16.msra.mxu0 %v2683_v15 }
 0x346   :  { %2473 = vmatprep.subr.bf16.mxu0 %v2684_v23  ;;  %v2650_v23 = vld [vmem:[%s3732_s5 + $0x40] sm:$0xff]  }
 0x348   :  { %1640 = vmatmul.mubr.bf16.vlgmr.msra.gmra.mxu0 %v1555_v1 }
 0x349   :  { %2474 = vmatpush3.bf16.msra.mxu0 %v2685_v35  ;;  %1719 = vmatprep.mubr.bf16.mxu0 %v1558_v39  ;;  %v2649_v39 = vld [vmem:[%s3732_s5 + $0x8] sm:$0xff]   ;;  %v2651_v35 = vld [vmem:[%s3732_s5] sm:$0xff]  }
 0x34a   :  { %2475 = vmatprep.subr.bf16.mxu0 %v2686_v12 }
 0x34d   :  { %2476 = vmatpush3.bf16.msra.mxu0 %v2687_v11 }
 0x34e   :  { %2477 = vmatprep.subr.bf16.mxu0 %v2688_v14 }
 0x351   :  { %2478 = vmatpush3.bf16.msra.mxu0 %v2689_v18 }
 0x352   :  { %2479 = vmatprep.subr.bf16.mxu0 %v2690_v20 }
 0x355   :  { %2480 = vmatpush3.bf16.msra.mxu0 %v2691_v24 }
 0x356   :  { %2481 = vmatprep.subr.bf16.mxu0 %v2692_v26 }
 0x359   :  { %2482 = vmatpush3.bf16.msra.mxu0 %v3793_v30  ;;  %v2426_v30 = vpop.f32.mrf.mxu1 }
 0x35a   :  { %2483 = vmatprep.subr.bf16.mxu0 %v3794_v32 }
 0x35b   :  { %v2427_v55 = vpop.f32.mrf.mxu1 }
 0x35d   :  { %2484 = vmatpush3.bf16.msra.mxu0 %v3795_v38  ;;  %v2467_v32 = vpop.f32.mrf.mxu1 }
 0x35e   :  { %2485 = vmatprep.subr.bf16.mxu0 %v3796_v49  ;;  %v2624_v49 = vld [vmem:[%s3730_s3 + $0xf0] ss:$8 sps:$4 sm:$0xff]  }
 0x35f   :  { %v2468_v58 = vpop.f32.mrf.mxu1 }
 0x360   :  { %v2469_v38 = vadd.f32 %v2468_v58, %v2467_v32  ;;  %v2126_v32 = vld [vmem:[%s3733_s6] ss:$0 sm:$0xff] }
 0x361   :  { %2486 = vmatpush3.bf16.msra.mxu0 %v3797_v54  ;;  %v2626_v54 = vld [vmem:[%s3730_s3 + $0xf4] ss:$8 sps:$4 sm:$0xff]  }
 0x362   :  { %2487 = vmatprep.subr.bf16.mxu0 %v3798_v57  ;;  %v2470_v57 = vpop.f32.mrf.mxu1  ;;  %1788 = vmatprep.subr.bf16.mxu1 %v2626_v54 }
 0x363   :  { %1789 = vmatpush1.bf16.msra.mxu1 %v2624_v49 }
 0x364   :  { %v2471_v60 = vpop.f32.mrf.mxu1 }
 0x365   :  { %2488 = vmatpush3.bf16.msra.mxu0 %v3799_v9  ;;  %v2629_v9 = vld [vmem:[%s3730_s3 + $0xe4] ss:$8 sps:$4 sm:$0xff]  }
 0x366   :  { %1790 = vmatprep.subr.bf16.mxu1 %v2629_v9  ;;  %2495 = vmatprep.subr.bf16.mxu0 %v2636_v2 }
 0x367   :  { %1791 = vmatpush1.bf16.msra.mxu1 %v2627_v62 }
 0x368   :  { %1720 = vmatmul.mubr.bf16.vlgmr.msra.gmra.mxu0 %v1556_v29  ;;  %1792 = vmatprep.subr.bf16.mxu1 %v2632_v28 }
 0x369   :  { %2496 = vmatpush3.bf16.msra.mxu0 %v2637_v42 }
 0x36a   :  { %2497 = vmatprep.subr.bf16.mxu0 %v2638_v41 }
 0x36b   :  { %1793 = vmatpush1.bf16.msra.mxu1 %v2630_v36 }
 0x36c   :  { %1794 = vmatprep.subr.bf16.mxu1 %v2635_v51 }
 0x36d   :  { %2498 = vmatpush3.bf16.msra.mxu0 %v2639_v4 }
 0x36e   :  { %2499 = vmatprep.subr.bf16.mxu0 %v2640_v8 }
 0x36f   :  { %1795 = vmatpush1.bf16.msra.mxu1 %v2633_v53 }
 0x371   :  { %2500 = vmatpush3.bf16.msra.mxu0 %v2641_v10 }
 0x372   :  { %2501 = vmatprep.subr.bf16.mxu0 %v2642_v33 }
 0x375   :  { %2502 = vmatpush3.bf16.msra.mxu0 %v2643_v61 }
 0x376   :  { %2503 = vmatprep.subr.bf16.mxu0 %v2644_v63 }
 0x379   :  { %2504 = vmatpush3.bf16.msra.mxu0 %v2645_v34 }
 0x37a   :  { %2505 = vmatprep.subr.bf16.mxu0 %v2646_v37 }
 0x37d   :  { %2506 = vmatpush3.bf16.msra.mxu0 %v2647_v48 }
 0x3e8   :  { %v1498_v40 = vpop.f32.mrf.mxu0 }
 0x3e9   :  { %v1505_v44 = vadd.f32 %v1498_v40, %v3568_v6 }
 0x3ea   :  { %v1500_v5 = vpop.f32.mrf.mxu0 }
 0x3eb   :  { %v1506_v13 = vadd.f32 %v1500_v5, %v3570_v56  ;;  %v2648_v56 = vld [vmem:[%s3732_s5 + $0x48] sm:$0xff]  }
 0x3ec   :  { %v1502_v45 = vpop.f32.mrf.mxu0  ;;  %2507 = vmatprep.subr.bf16.mxu0 %v2648_v56 }
 0x3ed   :  { %2508 = vmatpush3.bf16.msra.mxu0 %v2649_v39 }
 0x3ee   :  { %v1503_v43 = vpop.f32.mrf.mxu0  ;;  %2509 = vmatprep.subr.bf16.mxu0 %v2650_v23 }
 0x3f1   :  { %2510 = vmatpush3.bf16.msra.mxu0 %v2651_v35 }
 0x408   :  { %v2445_v19 = vpop.f32.mrf.mxu0 }
 0x40a   :  { %v2446_v25 = vpop.f32.mrf.mxu0 }
 0x40b   :  { %v2447_v27 = vadd.f32 %v2446_v25, %v2445_v19 }
 0x40c   :  { %v2448_v3 = vpop.f32.mrf.mxu0 }
 0x40d   :  { %v1642_v0 = vadd.f32 %v2447_v27, %v1602_v21 }
 0x40e   :  { %v2449_v7 = vpop.f32.mrf.mxu0 }
 0x40f   :  { %v1682_v22 = vadd.f32 %v2469_v38, %v1642_v0 }
 0x428   :  { %v2489_v46 = vpop.f32.mrf.mxu0 }
 0x42a   :  { %v2490_v16 = vpop.f32.mrf.mxu0 }
 0x42b   :  { %v2491_v59 = vadd.f32 %v2490_v16, %v2489_v46 }
 0x42c   :  { %v2492_v50 = vpop.f32.mrf.mxu0 }
 0x42d   :  { %v1722_v17 = vadd.f32 %v2491_v59, %v1682_v22 }
 0x42e   :  { %v2493_v6 = vpop.f32.mrf.mxu0 }
 0x42f   :  { %v1727_v1 = vmax.f32 %v1722_v17, 0.0 }
 0x431   :  { %v1728_v15 = vpack.c.bf16 %v1727_v1, %v1727_v1 }
 0x433   :  { %2125 = vmatmul.mubr.msk.bf16.vlgmr.msra.gmra.mxu1 %vm817_vm0, %v1728_v15 }
 0x4f3   :  { %v1814_v12 = vpop.f32.mrf.mxu1 }
 0x4f4   :  { %v1821_v11 = vadd.f32 %v1814_v12, %v1505_v44 }
 0x4f5   :  { %v1816_v14 = vpop.f32.mrf.mxu1 }
 0x4f6   :  { %vm1823_vm1 = vcmp.ge.f32.partialorder %v1821_v11, 0.0  ;;  %v1825_v18 = vmul.f32 0.01, %v1821_v11  ;;  %v1822_v20 = vadd.f32 %v1816_v14, %v1506_v13 }
 0x4f7   :  { %v1818_v24 = vpop.f32.mrf.mxu1 }
 0x4f8   :  { %vm1824_vm2 = vcmp.ge.f32.partialorder %v1822_v20, 0.0  ;;  %v1826_v26 = vmul.f32 0.01, %v1822_v20  ;;  %v1827_v29 = vsel %vm1823_vm1, %v1821_v11, %v1825_v18 }
 0x4f9   :  { %v1819_v31 = vpop.f32.mrf.mxu1  ;;  %v1829_v30 = vpack.c.bf16 %v1827_v29, %v1827_v29 }
 0x4fa   :  { %v1828_v47 = vsel %vm1824_vm2, %v1822_v20, %v1826_v26 }
 0x4fb   :  { %v1830_v52 = vpack.c.bf16 %v1828_v47, %v1828_v47 }
 0x4fd   :  { %1998 = vmatprep.mubr.bf16.mxu0 %v1830_v52 }
 0x4fe   :  { %1999 = vmatmul.mubr.bf16.vlgmr.msra.gmra.mxu0 %v1829_v30 }
 0x5be   :  { %v2511_v55 = vpop.f32.mrf.mxu0 }
 0x5c0   :  { %v2512_v58 = vpop.f32.mrf.mxu0 }
 0x5c1   :  { %v2513_v38 = vadd.f32 %v2512_v58, %v2511_v55 }
 0x5c2   :  { %v2514_v49 = vpop.f32.mrf.mxu0 }
 0x5c3   :  { %v2001_v54 = vadd.f32 %v2513_v38, %v2126_v32 }
 0x5c4   :  { %v2515_v57 = vpop.f32.mrf.mxu0 }
 0x5c5   :  { %2007 = vst.msk [vmem:[#allocation2] sm:$0x3] %vm2006_vm3, %v2001_v54 }
 0x5c6   :  { %2704 = shalt.err (!%p2701_p4)
}
 0x5c7   :  { %2017 = dma.vmem_to_hbm [thread:$0]  %s2015_s27, 32, %s3734_s7, [#allocation3]  }
 0x5c8   :  { %2713 = dma.done.wait [#allocation3], 32  }
 0x5c9   :  { %2714 = vsyncadd [#allocation3], 4294967264 }
 0x5ca   :  { %2021 = vsyncpa [#allocation3], 1 }

</bundles_post_ra>
